<compile_context>
chip_gen: v7x
topology: tpu7x:2x2x1
jax: 0.10.0
libtpu: 0.0.40
codegen_flags: <defaults>
</compile_context>

<pallas_src>
import jax
import jax.numpy as jnp
from jax.experimental import pallas as pl
from jax.experimental.pallas import tpu as pltpu


def lstm_fc_kernel(x2_ref,     # (S*B, In)   time-major input, batch-flattened
                   wih0_ref,   # (In, 4Hp)   layer-0 input weights (transposed, gate-padded)
                   b0_ref,     # (1, 4Hp)    layer-0 bias (b_ih + b_hh, gate-padded)
                   whh0_ref,   # (Hp, 4Hp)   layer-0 hidden weights
                   w1_ref,     # (2Hp, 4Hp)  layer-1 fused [W_ih1; W_hh1]
                   b1_ref,     # (1, 4Hp)    layer-1 bias (b_ih + b_hh)
                   fcw_ref,    # (Hp, 1)     fc weight (transposed, row-padded)
                   fcb_ref,    # (1, 1)      fc bias
                   out_ref):   # (B, 1)
    SB, _ = x2_ref.shape
    B = out_ref.shape[0]
    S = SB // B
    Hp = whh0_ref.shape[0]

    # --- one-shot layer-0 input projection for all timesteps (bias folded) ---
    pre0 = (jnp.dot(x2_ref[...], wih0_ref[...],
                    preferred_element_type=jnp.float32)
            + b0_ref[...])                                   # (S*B, 4Hp)

    whh0 = whh0_ref[...]                                     # (Hp, 4Hp)
    w1 = w1_ref[...]                                         # (2Hp, 4Hp)
    # broadcast the layer-1 bias ONCE, outside the unrolled loop
    b1 = jnp.broadcast_to(b1_ref[...], (B, 4 * Hp))

    def gates_to_hc(gates, c):
        # every slice below is a multiple of 128 lanes -> full-vreg aligned
        if_ = jax.nn.sigmoid(gates[:, :2 * Hp])              # [i | f]
        i = if_[:, :Hp]
        f = if_[:, Hp:]
        g = jnp.tanh(gates[:, 2 * Hp:3 * Hp])
        o = jax.nn.sigmoid(gates[:, 3 * Hp:])
        c_new = f * c + i * g
        h_new = o * jnp.tanh(c_new)
        return h_new, c_new

    h1 = jnp.zeros((B, Hp), jnp.float32)
    c1 = jnp.zeros((B, Hp), jnp.float32)
    h2 = jnp.zeros((B, Hp), jnp.float32)
    c2 = jnp.zeros((B, Hp), jnp.float32)

    # Fully-unrolled static time loop (S is small and static); pre0 row slices
    # are static and sublane-aligned (B is a multiple of 8).
    for t in range(S):
        g0 = pre0[t * B:(t + 1) * B, :] + jnp.dot(
            h1, whh0, preferred_element_type=jnp.float32)
        h1, c1 = gates_to_hc(g0, c1)
        g1 = b1 + jnp.dot(jnp.concatenate([h1, h2], axis=-1), w1,
                          preferred_element_type=jnp.float32)
        h2, c2 = gates_to_hc(g1, c2)

    # fc(out[:, -1, :]) : last-time-step hidden of the top layer -> (B, 1)
    out_ref[...] = (jnp.dot(h2, fcw_ref[...],
                            preferred_element_type=jnp.float32)
                    + fcb_ref[...])


def _pad_rows(w, rows_to):
    return jnp.pad(w, ((0, rows_to - w.shape[0]), (0, 0)))


def _pad_gate_cols(w, H, Hp):
    """(rows, 4H) -> (rows, 4Hp): place each PyTorch gate block [i,f,g,o] at
    lane offset k*Hp so gate slices are full-128-lane aligned. Zero padding is
    exact: padded gate columns get 0 pre-activation, so padded h/c stay 0."""
    rows = w.shape[0]
    out = jnp.zeros((rows, 4 * Hp), w.dtype)
    for k in range(4):
        out = out.at[:, k * Hp:k * Hp + H].set(w[:, k * H:(k + 1) * H])
    return out


def lstm_anomaly_detector(x, params):
    """x: (batch, seq, input_size) float32 (PyTorch batch_first convention)."""
    B, S, In = x.shape
    H = params["whh0"].shape[1]
    Hp = ((H + 127) // 128) * 128      # each gate = full 128-lane slab(s)
    Bp = ((B + 7) // 8) * 8            # f32 sublane multiple

    # ---- parameter prep (pure layout glue, outside the kernel) ----
    wih0T = _pad_gate_cols(params["wih0"].T, H, Hp)                      # (In, 4Hp)
    b0 = _pad_gate_cols((params["bih0"] + params["bhh0"])[None, :], H, Hp)
    whh0T = _pad_gate_cols(_pad_rows(params["whh0"].T, Hp), H, Hp)       # (Hp, 4Hp)
    wih1T = _pad_gate_cols(_pad_rows(params["wih1"].T, Hp), H, Hp)       # (Hp, 4Hp)
    whh1T = _pad_gate_cols(_pad_rows(params["whh1"].T, Hp), H, Hp)       # (Hp, 4Hp)
    w1 = jnp.concatenate([wih1T, whh1T], axis=0)                         # (2Hp, 4Hp)
    b1 = _pad_gate_cols((params["bih1"] + params["bhh1"])[None, :], H, Hp)
    fcwT = _pad_rows(params["fcw"].T, Hp)                                # (Hp, 1)
    fcb = params["fcb"].reshape(1, 1)

    # ---- input prep: batch_first -> time-major, pad batch, flatten time ----
    x_tm = jnp.transpose(x, (1, 0, 2))                # (S, B, In)
    x_tm = jnp.pad(x_tm, ((0, 0), (0, Bp - B), (0, 0)))
    x2 = x_tm.reshape(S * Bp, In)                     # (S*Bp, In)

    # Whole problem fits comfortably in VMEM (~1 MiB) on v5e/v6e/v7x, so a
    # single ungridded call is used.  For large batch, add a "parallel" grid
    # axis over batch blocks to use v7x's second TensorCore; for long S,
    # stream x / pre0 with a (1, Bp, 4Hp) BlockSpec instead of full residency.
    vmem = pl.BlockSpec(memory_space=pltpu.MemorySpace.VMEM)
    out = pl.pallas_call(
        lstm_fc_kernel,
        out_shape=jax.ShapeDtypeStruct((Bp, 1), jnp.float32),
        in_specs=[vmem] * 8,
        out_specs=vmem,
    )(x2, wih0T, b0, whh0T, w1, b1, fcwT, fcb)
    return out[:B]


def reference_forward(x, params):
    """Pure-JAX reference matching torch.nn.LSTM(batch_first=True) + Linear."""
    B, S, In = x.shape
    H = params["whh0"].shape[1]

    def cell(x_t, h, c, wih, whh, bih, bhh):
        gates = x_t @ wih.T + bih + h @ whh.T + bhh
        i, f, g, o = jnp.split(gates, 4, axis=-1)
        i, f, o = jax.nn.sigmoid(i), jax.nn.sigmoid(f), jax.nn.sigmoid(o)
        g = jnp.tanh(g)
        c = f * c + i * g
        h = o * jnp.tanh(c)
        return h, c

    def step(carry, x_t):
        h1, c1, h2, c2 = carry
        h1, c1 = cell(x_t, h1, c1, params["wih0"], params["whh0"],
                      params["bih0"], params["bhh0"])
        h2, c2 = cell(h1, h2, c2, params["wih1"], params["whh1"],
                      params["bih1"], params["bhh1"])
        return (h1, c1, h2, c2), h2

    zeros = jnp.zeros((B, H), jnp.float32)
    (_, _, h2, _), _ = jax.lax.scan(step, (zeros, zeros, zeros, zeros),
                                    jnp.transpose(x, (1, 0, 2)))
    return h2 @ params["fcw"].T + params["fcb"]


def init_params(key, input_size, hidden_size):
    """Deterministic init mimicking PyTorch's U(-1/sqrt(H), 1/sqrt(H))."""
    H = hidden_size
    bound = 1.0 / jnp.sqrt(jnp.float32(H))
    names_shapes = [
        ("wih0", (4 * H, input_size)),
        ("whh0", (4 * H, H)),
        ("bih0", (4 * H,)),
        ("bhh0", (4 * H,)),
        ("wih1", (4 * H, H)),
        ("whh1", (4 * H, H)),
        ("bih1", (4 * H,)),
        ("bhh1", (4 * H,)),
        ("fcw", (1, H)),
        ("fcb", (1,)),
    ]
    params = {}
    keys = jax.random.split(key, len(names_shapes))
    for k, (name, shape) in zip(keys, names_shapes):
        params[name] = jax.random.uniform(k, shape, jnp.float32, -bound, bound)
    return params


if __name__ == "__main__":
    # Small shapes consistent with the module's forward:
    #   x: (batch, seq, input_size), hidden_size=32, num_layers=2.
    batch, seq, input_size, hidden_size = 2, 8, 8, 32

    key = jax.random.PRNGKey(0)
    k_x, k_p = jax.random.split(key)
    x = jax.random.normal(k_x, (batch, seq, input_size), jnp.float32)
    params = init_params(k_p, input_size, hidden_size)

    out = lstm_anomaly_detector(x, params)
    out = jax.block_until_ready(out)

    ref = jax.block_until_ready(reference_forward(x, params))
    assert out.shape == (batch, 1)
    assert jnp.allclose(out, ref, atol=1e-4, rtol=1e-4), (out, ref)

    print("KERNEL_OK")
</pallas_src>

<mosaic_0001>
module attributes {stable_mosaic.version = 11 : i64} {
  func.func @lstm_fc_kernel(%arg0: memref<64x8xf32, #tpu.memory_space<vmem>>, %arg1: memref<8x512xf32, #tpu.memory_space<vmem>>, %arg2: memref<1x512xf32, #tpu.memory_space<vmem>>, %arg3: memref<128x512xf32, #tpu.memory_space<vmem>>, %arg4: memref<256x512xf32, #tpu.memory_space<vmem>>, %arg5: memref<1x512xf32, #tpu.memory_space<vmem>>, %arg6: memref<128x1xf32, #tpu.memory_space<vmem>>, %arg7: memref<1x1xf32, #tpu.memory_space<vmem>>, %arg8: memref<8x1xf32, #tpu.memory_space<vmem>>) attributes {dimension_semantics = [], scalar_prefetch = 0 : i64, scratch_operands = 0 : i64, tpu.core_type = #tpu.core_type<tc>} {
    %c0 = arith.constant 0 : index
    %c0_0 = arith.constant 0 : index
    %0 = vector.load %arg0[%c0, %c0_0] : memref<64x8xf32, #tpu.memory_space<vmem>>, vector<64x8xf32>
    %c0_1 = arith.constant 0 : index
    %c0_2 = arith.constant 0 : index
    %1 = vector.load %arg1[%c0_1, %c0_2] : memref<8x512xf32, #tpu.memory_space<vmem>>, vector<8x512xf32>
    %cst = arith.constant dense<0.000000e+00> : vector<64x512xf32>
    %2 = tpu.matmul %0, %1, %cst {dimension_numbers = #tpu.dot_dimension_numbers<[1], [0], [0], [1], [0, 0, 1, 1], [], []>} : vector<64x8xf32>, vector<8x512xf32>, vector<64x512xf32> -> vector<64x512xf32>
    %c0_3 = arith.constant 0 : index
    %c0_4 = arith.constant 0 : index
    %3 = vector.load %arg2[%c0_3, %c0_4] : memref<1x512xf32, #tpu.memory_space<vmem>>, vector<1x512xf32>
    %4 = vector.broadcast %3 : vector<1x512xf32> to vector<64x512xf32>
    %5 = arith.addf %2, %4 : vector<64x512xf32>
    %c0_5 = arith.constant 0 : index
    %c0_6 = arith.constant 0 : index
    %6 = vector.load %arg3[%c0_5, %c0_6] : memref<128x512xf32, #tpu.memory_space<vmem>>, vector<128x512xf32>
    %c0_7 = arith.constant 0 : index
    %c0_8 = arith.constant 0 : index
    %7 = vector.load %arg4[%c0_7, %c0_8] : memref<256x512xf32, #tpu.memory_space<vmem>>, vector<256x512xf32>
    %c0_9 = arith.constant 0 : index
    %c0_10 = arith.constant 0 : index
    %8 = vector.load %arg5[%c0_9, %c0_10] : memref<1x512xf32, #tpu.memory_space<vmem>>, vector<1x512xf32>
    %9 = vector.shape_cast %8 : vector<1x512xf32> to vector<1x512xf32>
    %10 = vector.broadcast %9 : vector<1x512xf32> to vector<8x512xf32>
    %cst_11 = arith.constant 0.000000e+00 : f32
    %11 = vector.broadcast %cst_11 : f32 to vector<8x128xf32>
    %cst_12 = arith.constant 0.000000e+00 : f32
    %12 = vector.broadcast %cst_12 : f32 to vector<8x128xf32>
    %cst_13 = arith.constant 0.000000e+00 : f32
    %13 = vector.broadcast %cst_13 : f32 to vector<8x128xf32>
    %cst_14 = arith.constant 0.000000e+00 : f32
    %14 = vector.broadcast %cst_14 : f32 to vector<8x128xf32>
    %15 = vector.extract_strided_slice %5 {offsets = [0, 0], sizes = [8, 512], strides = [1, 1]} : vector<64x512xf32> to vector<8x512xf32>
    %cst_15 = arith.constant dense<0.000000e+00> : vector<8x512xf32>
    %16 = tpu.matmul %11, %6, %cst_15 {dimension_numbers = #tpu.dot_dimension_numbers<[1], [0], [0], [1], [0, 0, 1, 1], [], []>} : vector<8x128xf32>, vector<128x512xf32>, vector<8x512xf32> -> vector<8x512xf32>
    %17 = arith.addf %15, %16 : vector<8x512xf32>
    %18 = vector.extract_strided_slice %17 {offsets = [0, 0], sizes = [8, 256], strides = [1, 1]} : vector<8x512xf32> to vector<8x256xf32>
    %19 = arith.negf %18 : vector<8x256xf32>
    %20 = math.exp %19 : vector<8x256xf32>
    %cst_16 = arith.constant 1.000000e+00 : f32
    %21 = vector.broadcast %cst_16 : f32 to vector<8x256xf32>
    %22 = arith.addf %21, %20 : vector<8x256xf32>
    %23 = arith.divf %21, %22 : vector<8x256xf32>
    %24 = vector.extract_strided_slice %23 {offsets = [0, 0], sizes = [8, 128], strides = [1, 1]} : vector<8x256xf32> to vector<8x128xf32>
    %25 = vector.extract_strided_slice %23 {offsets = [0, 128], sizes = [8, 128], strides = [1, 1]} : vector<8x256xf32> to vector<8x128xf32>
    %26 = vector.extract_strided_slice %17 {offsets = [0, 256], sizes = [8, 128], strides = [1, 1]} : vector<8x512xf32> to vector<8x128xf32>
    %27 = math.tanh %26 : vector<8x128xf32>
    %28 = vector.extract_strided_slice %17 {offsets = [0, 384], sizes = [8, 128], strides = [1, 1]} : vector<8x512xf32> to vector<8x128xf32>
    %29 = arith.negf %28 : vector<8x128xf32>
    %30 = math.exp %29 : vector<8x128xf32>
    %cst_17 = arith.constant 1.000000e+00 : f32
    %31 = vector.broadcast %cst_17 : f32 to vector<8x128xf32>
    %32 = arith.addf %31, %30 : vector<8x128xf32>
    %33 = arith.divf %31, %32 : vector<8x128xf32>
    %34 = arith.mulf %25, %12 : vector<8x128xf32>
    %35 = arith.mulf %24, %27 : vector<8x128xf32>
    %36 = arith.addf %34, %35 : vector<8x128xf32>
    %37 = math.tanh %36 : vector<8x128xf32>
    %38 = arith.mulf %33, %37 : vector<8x128xf32>
    %39 = tpu.concatenate %38, %13 in 1 : vector<8x128xf32>, vector<8x128xf32> -> vector<8x256xf32>
    %cst_18 = arith.constant dense<0.000000e+00> : vector<8x512xf32>
    %40 = tpu.matmul %39, %7, %cst_18 {dimension_numbers = #tpu.dot_dimension_numbers<[1], [0], [0], [1], [0, 0, 1, 1], [], []>} : vector<8x256xf32>, vector<256x512xf32>, vector<8x512xf32> -> vector<8x512xf32>
    %41 = arith.addf %10, %40 : vector<8x512xf32>
    %42 = vector.extract_strided_slice %41 {offsets = [0, 0], sizes = [8, 256], strides = [1, 1]} : vector<8x512xf32> to vector<8x256xf32>
    %43 = arith.negf %42 : vector<8x256xf32>
    %44 = math.exp %43 : vector<8x256xf32>
    %cst_19 = arith.constant 1.000000e+00 : f32
    %45 = vector.broadcast %cst_19 : f32 to vector<8x256xf32>
    %46 = arith.addf %45, %44 : vector<8x256xf32>
    %47 = arith.divf %45, %46 : vector<8x256xf32>
    %48 = vector.extract_strided_slice %47 {offsets = [0, 0], sizes = [8, 128], strides = [1, 1]} : vector<8x256xf32> to vector<8x128xf32>
    %49 = vector.extract_strided_slice %47 {offsets = [0, 128], sizes = [8, 128], strides = [1, 1]} : vector<8x256xf32> to vector<8x128xf32>
    %50 = vector.extract_strided_slice %41 {offsets = [0, 256], sizes = [8, 128], strides = [1, 1]} : vector<8x512xf32> to vector<8x128xf32>
    %51 = math.tanh %50 : vector<8x128xf32>
    %52 = vector.extract_strided_slice %41 {offsets = [0, 384], sizes = [8, 128], strides = [1, 1]} : vector<8x512xf32> to vector<8x128xf32>
    %53 = arith.negf %52 : vector<8x128xf32>
    %54 = math.exp %53 : vector<8x128xf32>
    %cst_20 = arith.constant 1.000000e+00 : f32
    %55 = vector.broadcast %cst_20 : f32 to vector<8x128xf32>
    %56 = arith.addf %55, %54 : vector<8x128xf32>
    %57 = arith.divf %55, %56 : vector<8x128xf32>
    %58 = arith.mulf %49, %14 : vector<8x128xf32>
    %59 = arith.mulf %48, %51 : vector<8x128xf32>
    %60 = arith.addf %58, %59 : vector<8x128xf32>
    %61 = math.tanh %60 : vector<8x128xf32>
    %62 = arith.mulf %57, %61 : vector<8x128xf32>
    %63 = vector.extract_strided_slice %5 {offsets = [8, 0], sizes = [8, 512], strides = [1, 1]} : vector<64x512xf32> to vector<8x512xf32>
    %cst_21 = arith.constant dense<0.000000e+00> : vector<8x512xf32>
    %64 = tpu.matmul %38, %6, %cst_21 {dimension_numbers = #tpu.dot_dimension_numbers<[1], [0], [0], [1], [0, 0, 1, 1], [], []>} : vector<8x128xf32>, vector<128x512xf32>, vector<8x512xf32> -> vector<8x512xf32>
    %65 = arith.addf %63, %64 : vector<8x512xf32>
    %66 = vector.extract_strided_slice %65 {offsets = [0, 0], sizes = [8, 256], strides = [1, 1]} : vector<8x512xf32> to vector<8x256xf32>
    %67 = arith.negf %66 : vector<8x256xf32>
    %68 = math.exp %67 : vector<8x256xf32>
    %cst_22 = arith.constant 1.000000e+00 : f32
    %69 = vector.broadcast %cst_22 : f32 to vector<8x256xf32>
    %70 = arith.addf %69, %68 : vector<8x256xf32>
    %71 = arith.divf %69, %70 : vector<8x256xf32>
    %72 = vector.extract_strided_slice %71 {offsets = [0, 0], sizes = [8, 128], strides = [1, 1]} : vector<8x256xf32> to vector<8x128xf32>
    %73 = vector.extract_strided_slice %71 {offsets = [0, 128], sizes = [8, 128], strides = [1, 1]} : vector<8x256xf32> to vector<8x128xf32>
    %74 = vector.extract_strided_slice %65 {offsets = [0, 256], sizes = [8, 128], strides = [1, 1]} : vector<8x512xf32> to vector<8x128xf32>
    %75 = math.tanh %74 : vector<8x128xf32>
    %76 = vector.extract_strided_slice %65 {offsets = [0, 384], sizes = [8, 128], strides = [1, 1]} : vector<8x512xf32> to vector<8x128xf32>
    %77 = arith.negf %76 : vector<8x128xf32>
    %78 = math.exp %77 : vector<8x128xf32>
    %cst_23 = arith.constant 1.000000e+00 : f32
    %79 = vector.broadcast %cst_23 : f32 to vector<8x128xf32>
    %80 = arith.addf %79, %78 : vector<8x128xf32>
    %81 = arith.divf %79, %80 : vector<8x128xf32>
    %82 = arith.mulf %73, %36 : vector<8x128xf32>
    %83 = arith.mulf %72, %75 : vector<8x128xf32>
    %84 = arith.addf %82, %83 : vector<8x128xf32>
    %85 = math.tanh %84 : vector<8x128xf32>
    %86 = arith.mulf %81, %85 : vector<8x128xf32>
    %87 = tpu.concatenate %86, %62 in 1 : vector<8x128xf32>, vector<8x128xf32> -> vector<8x256xf32>
    %cst_24 = arith.constant dense<0.000000e+00> : vector<8x512xf32>
    %88 = tpu.matmul %87, %7, %cst_24 {dimension_numbers = #tpu.dot_dimension_numbers<[1], [0], [0], [1], [0, 0, 1, 1], [], []>} : vector<8x256xf32>, vector<256x512xf32>, vector<8x512xf32> -> vector<8x512xf32>
    %89 = arith.addf %10, %88 : vector<8x512xf32>
    %90 = vector.extract_strided_slice %89 {offsets = [0, 0], sizes = [8, 256], strides = [1, 1]} : vector<8x512xf32> to vector<8x256xf32>
    %91 = arith.negf %90 : vector<8x256xf32>
    %92 = math.exp %91 : vector<8x256xf32>
    %cst_25 = arith.constant 1.000000e+00 : f32
    %93 = vector.broadcast %cst_25 : f32 to vector<8x256xf32>
    %94 = arith.addf %93, %92 : vector<8x256xf32>
    %95 = arith.divf %93, %94 : vector<8x256xf32>
    %96 = vector.extract_strided_slice %95 {offsets = [0, 0], sizes = [8, 128], strides = [1, 1]} : vector<8x256xf32> to vector<8x128xf32>
    %97 = vector.extract_strided_slice %95 {offsets = [0, 128], sizes = [8, 128], strides = [1, 1]} : vector<8x256xf32> to vector<8x128xf32>
    %98 = vector.extract_strided_slice %89 {offsets = [0, 256], sizes = [8, 128], strides = [1, 1]} : vector<8x512xf32> to vector<8x128xf32>
    %99 = math.tanh %98 : vector<8x128xf32>
    %100 = vector.extract_strided_slice %89 {offsets = [0, 384], sizes = [8, 128], strides = [1, 1]} : vector<8x512xf32> to vector<8x128xf32>
    %101 = arith.negf %100 : vector<8x128xf32>
    %102 = math.exp %101 : vector<8x128xf32>
    %cst_26 = arith.constant 1.000000e+00 : f32
    %103 = vector.broadcast %cst_26 : f32 to vector<8x128xf32>
    %104 = arith.addf %103, %102 : vector<8x128xf32>
    %105 = arith.divf %103, %104 : vector<8x128xf32>
    %106 = arith.mulf %97, %60 : vector<8x128xf32>
    %107 = arith.mulf %96, %99 : vector<8x128xf32>
    %108 = arith.addf %106, %107 : vector<8x128xf32>
    %109 = math.tanh %108 : vector<8x128xf32>
    %110 = arith.mulf %105, %109 : vector<8x128xf32>
    %111 = vector.extract_strided_slice %5 {offsets = [16, 0], sizes = [8, 512], strides = [1, 1]} : vector<64x512xf32> to vector<8x512xf32>
    %cst_27 = arith.constant dense<0.000000e+00> : vector<8x512xf32>
    %112 = tpu.matmul %86, %6, %cst_27 {dimension_numbers = #tpu.dot_dimension_numbers<[1], [0], [0], [1], [0, 0, 1, 1], [], []>} : vector<8x128xf32>, vector<128x512xf32>, vector<8x512xf32> -> vector<8x512xf32>
    %113 = arith.addf %111, %112 : vector<8x512xf32>
    %114 = vector.extract_strided_slice %113 {offsets = [0, 0], sizes = [8, 256], strides = [1, 1]} : vector<8x512xf32> to vector<8x256xf32>
    %115 = arith.negf %114 : vector<8x256xf32>
    %116 = math.exp %115 : vector<8x256xf32>
    %cst_28 = arith.constant 1.000000e+00 : f32
    %117 = vector.broadcast %cst_28 : f32 to vector<8x256xf32>
    %118 = arith.addf %117, %116 : vector<8x256xf32>
    %119 = arith.divf %117, %118 : vector<8x256xf32>
    %120 = vector.extract_strided_slice %119 {offsets = [0, 0], sizes = [8, 128], strides = [1, 1]} : vector<8x256xf32> to vector<8x128xf32>
    %121 = vector.extract_strided_slice %119 {offsets = [0, 128], sizes = [8, 128], strides = [1, 1]} : vector<8x256xf32> to vector<8x128xf32>
    %122 = vector.extract_strided_slice %113 {offsets = [0, 256], sizes = [8, 128], strides = [1, 1]} : vector<8x512xf32> to vector<8x128xf32>
    %123 = math.tanh %122 : vector<8x128xf32>
    %124 = vector.extract_strided_slice %113 {offsets = [0, 384], sizes = [8, 128], strides = [1, 1]} : vector<8x512xf32> to vector<8x128xf32>
    %125 = arith.negf %124 : vector<8x128xf32>
    %126 = math.exp %125 : vector<8x128xf32>
    %cst_29 = arith.constant 1.000000e+00 : f32
    %127 = vector.broadcast %cst_29 : f32 to vector<8x128xf32>
    %128 = arith.addf %127, %126 : vector<8x128xf32>
    %129 = arith.divf %127, %128 : vector<8x128xf32>
    %130 = arith.mulf %121, %84 : vector<8x128xf32>
    %131 = arith.mulf %120, %123 : vector<8x128xf32>
    %132 = arith.addf %130, %131 : vector<8x128xf32>
    %133 = math.tanh %132 : vector<8x128xf32>
    %134 = arith.mulf %129, %133 : vector<8x128xf32>
    %135 = tpu.concatenate %134, %110 in 1 : vector<8x128xf32>, vector<8x128xf32> -> vector<8x256xf32>
    %cst_30 = arith.constant dense<0.000000e+00> : vector<8x512xf32>
    %136 = tpu.matmul %135, %7, %cst_30 {dimension_numbers = #tpu.dot_dimension_numbers<[1], [0], [0], [1], [0, 0, 1, 1], [], []>} : vector<8x256xf32>, vector<256x512xf32>, vector<8x512xf32> -> vector<8x512xf32>
    %137 = arith.addf %10, %136 : vector<8x512xf32>
    %138 = vector.extract_strided_slice %137 {offsets = [0, 0], sizes = [8, 256], strides = [1, 1]} : vector<8x512xf32> to vector<8x256xf32>
    %139 = arith.negf %138 : vector<8x256xf32>
    %140 = math.exp %139 : vector<8x256xf32>
    %cst_31 = arith.constant 1.000000e+00 : f32
    %141 = vector.broadcast %cst_31 : f32 to vector<8x256xf32>
    %142 = arith.addf %141, %140 : vector<8x256xf32>
    %143 = arith.divf %141, %142 : vector<8x256xf32>
    %144 = vector.extract_strided_slice %143 {offsets = [0, 0], sizes = [8, 128], strides = [1, 1]} : vector<8x256xf32> to vector<8x128xf32>
    %145 = vector.extract_strided_slice %143 {offsets = [0, 128], sizes = [8, 128], strides = [1, 1]} : vector<8x256xf32> to vector<8x128xf32>
    %146 = vector.extract_strided_slice %137 {offsets = [0, 256], sizes = [8, 128], strides = [1, 1]} : vector<8x512xf32> to vector<8x128xf32>
    %147 = math.tanh %146 : vector<8x128xf32>
    %148 = vector.extract_strided_slice %137 {offsets = [0, 384], sizes = [8, 128], strides = [1, 1]} : vector<8x512xf32> to vector<8x128xf32>
    %149 = arith.negf %148 : vector<8x128xf32>
    %150 = math.exp %149 : vector<8x128xf32>
    %cst_32 = arith.constant 1.000000e+00 : f32
    %151 = vector.broadcast %cst_32 : f32 to vector<8x128xf32>
    %152 = arith.addf %151, %150 : vector<8x128xf32>
    %153 = arith.divf %151, %152 : vector<8x128xf32>
    %154 = arith.mulf %145, %108 : vector<8x128xf32>
    %155 = arith.mulf %144, %147 : vector<8x128xf32>
    %156 = arith.addf %154, %155 : vector<8x128xf32>
    %157 = math.tanh %156 : vector<8x128xf32>
    %158 = arith.mulf %153, %157 : vector<8x128xf32>
    %159 = vector.extract_strided_slice %5 {offsets = [24, 0], sizes = [8, 512], strides = [1, 1]} : vector<64x512xf32> to vector<8x512xf32>
    %cst_33 = arith.constant dense<0.000000e+00> : vector<8x512xf32>
    %160 = tpu.matmul %134, %6, %cst_33 {dimension_numbers = #tpu.dot_dimension_numbers<[1], [0], [0], [1], [0, 0, 1, 1], [], []>} : vector<8x128xf32>, vector<128x512xf32>, vector<8x512xf32> -> vector<8x512xf32>
    %161 = arith.addf %159, %160 : vector<8x512xf32>
    %162 = vector.extract_strided_slice %161 {offsets = [0, 0], sizes = [8, 256], strides = [1, 1]} : vector<8x512xf32> to vector<8x256xf32>
    %163 = arith.negf %162 : vector<8x256xf32>
    %164 = math.exp %163 : vector<8x256xf32>
    %cst_34 = arith.constant 1.000000e+00 : f32
    %165 = vector.broadcast %cst_34 : f32 to vector<8x256xf32>
    %166 = arith.addf %165, %164 : vector<8x256xf32>
    %167 = arith.divf %165, %166 : vector<8x256xf32>
    %168 = vector.extract_strided_slice %167 {offsets = [0, 0], sizes = [8, 128], strides = [1, 1]} : vector<8x256xf32> to vector<8x128xf32>
    %169 = vector.extract_strided_slice %167 {offsets = [0, 128], sizes = [8, 128], strides = [1, 1]} : vector<8x256xf32> to vector<8x128xf32>
    %170 = vector.extract_strided_slice %161 {offsets = [0, 256], sizes = [8, 128], strides = [1, 1]} : vector<8x512xf32> to vector<8x128xf32>
    %171 = math.tanh %170 : vector<8x128xf32>
    %172 = vector.extract_strided_slice %161 {offsets = [0, 384], sizes = [8, 128], strides = [1, 1]} : vector<8x512xf32> to vector<8x128xf32>
    %173 = arith.negf %172 : vector<8x128xf32>
    %174 = math.exp %173 : vector<8x128xf32>
    %cst_35 = arith.constant 1.000000e+00 : f32
    %175 = vector.broadcast %cst_35 : f32 to vector<8x128xf32>
    %176 = arith.addf %175, %174 : vector<8x128xf32>
    %177 = arith.divf %175, %176 : vector<8x128xf32>
    %178 = arith.mulf %169, %132 : vector<8x128xf32>
    %179 = arith.mulf %168, %171 : vector<8x128xf32>
    %180 = arith.addf %178, %179 : vector<8x128xf32>
    %181 = math.tanh %180 : vector<8x128xf32>
    %182 = arith.mulf %177, %181 : vector<8x128xf32>
    %183 = tpu.concatenate %182, %158 in 1 : vector<8x128xf32>, vector<8x128xf32> -> vector<8x256xf32>
    %cst_36 = arith.constant dense<0.000000e+00> : vector<8x512xf32>
    %184 = tpu.matmul %183, %7, %cst_36 {dimension_numbers = #tpu.dot_dimension_numbers<[1], [0], [0], [1], [0, 0, 1, 1], [], []>} : vector<8x256xf32>, vector<256x512xf32>, vector<8x512xf32> -> vector<8x512xf32>
    %185 = arith.addf %10, %184 : vector<8x512xf32>
    %186 = vector.extract_strided_slice %185 {offsets = [0, 0], sizes = [8, 256], strides = [1, 1]} : vector<8x512xf32> to vector<8x256xf32>
    %187 = arith.negf %186 : vector<8x256xf32>
    %188 = math.exp %187 : vector<8x256xf32>
    %cst_37 = arith.constant 1.000000e+00 : f32
    %189 = vector.broadcast %cst_37 : f32 to vector<8x256xf32>
    %190 = arith.addf %189, %188 : vector<8x256xf32>
    %191 = arith.divf %189, %190 : vector<8x256xf32>
    %192 = vector.extract_strided_slice %191 {offsets = [0, 0], sizes = [8, 128], strides = [1, 1]} : vector<8x256xf32> to vector<8x128xf32>
    %193 = vector.extract_strided_slice %191 {offsets = [0, 128], sizes = [8, 128], strides = [1, 1]} : vector<8x256xf32> to vector<8x128xf32>
    %194 = vector.extract_strided_slice %185 {offsets = [0, 256], sizes = [8, 128], strides = [1, 1]} : vector<8x512xf32> to vector<8x128xf32>
    %195 = math.tanh %194 : vector<8x128xf32>
    %196 = vector.extract_strided_slice %185 {offsets = [0, 384], sizes = [8, 128], strides = [1, 1]} : vector<8x512xf32> to vector<8x128xf32>
    %197 = arith.negf %196 : vector<8x128xf32>
    %198 = math.exp %197 : vector<8x128xf32>
    %cst_38 = arith.constant 1.000000e+00 : f32
    %199 = vector.broadcast %cst_38 : f32 to vector<8x128xf32>
    %200 = arith.addf %199, %198 : vector<8x128xf32>
    %201 = arith.divf %199, %200 : vector<8x128xf32>
    %202 = arith.mulf %193, %156 : vector<8x128xf32>
    %203 = arith.mulf %192, %195 : vector<8x128xf32>
    %204 = arith.addf %202, %203 : vector<8x128xf32>
    %205 = math.tanh %204 : vector<8x128xf32>
    %206 = arith.mulf %201, %205 : vector<8x128xf32>
    %207 = vector.extract_strided_slice %5 {offsets = [32, 0], sizes = [8, 512], strides = [1, 1]} : vector<64x512xf32> to vector<8x512xf32>
    %cst_39 = arith.constant dense<0.000000e+00> : vector<8x512xf32>
    %208 = tpu.matmul %182, %6, %cst_39 {dimension_numbers = #tpu.dot_dimension_numbers<[1], [0], [0], [1], [0, 0, 1, 1], [], []>} : vector<8x128xf32>, vector<128x512xf32>, vector<8x512xf32> -> vector<8x512xf32>
    %209 = arith.addf %207, %208 : vector<8x512xf32>
    %210 = vector.extract_strided_slice %209 {offsets = [0, 0], sizes = [8, 256], strides = [1, 1]} : vector<8x512xf32> to vector<8x256xf32>
    %211 = arith.negf %210 : vector<8x256xf32>
    %212 = math.exp %211 : vector<8x256xf32>
    %cst_40 = arith.constant 1.000000e+00 : f32
    %213 = vector.broadcast %cst_40 : f32 to vector<8x256xf32>
    %214 = arith.addf %213, %212 : vector<8x256xf32>
    %215 = arith.divf %213, %214 : vector<8x256xf32>
    %216 = vector.extract_strided_slice %215 {offsets = [0, 0], sizes = [8, 128], strides = [1, 1]} : vector<8x256xf32> to vector<8x128xf32>
    %217 = vector.extract_strided_slice %215 {offsets = [0, 128], sizes = [8, 128], strides = [1, 1]} : vector<8x256xf32> to vector<8x128xf32>
    %218 = vector.extract_strided_slice %209 {offsets = [0, 256], sizes = [8, 128], strides = [1, 1]} : vector<8x512xf32> to vector<8x128xf32>
    %219 = math.tanh %218 : vector<8x128xf32>
    %220 = vector.extract_strided_slice %209 {offsets = [0, 384], sizes = [8, 128], strides = [1, 1]} : vector<8x512xf32> to vector<8x128xf32>
    %221 = arith.negf %220 : vector<8x128xf32>
    %222 = math.exp %221 : vector<8x128xf32>
    %cst_41 = arith.constant 1.000000e+00 : f32
    %223 = vector.broadcast %cst_41 : f32 to vector<8x128xf32>
    %224 = arith.addf %223, %222 : vector<8x128xf32>
    %225 = arith.divf %223, %224 : vector<8x128xf32>
    %226 = arith.mulf %217, %180 : vector<8x128xf32>
    %227 = arith.mulf %216, %219 : vector<8x128xf32>
    %228 = arith.addf %226, %227 : vector<8x128xf32>
    %229 = math.tanh %228 : vector<8x128xf32>
    %230 = arith.mulf %225, %229 : vector<8x128xf32>
    %231 = tpu.concatenate %230, %206 in 1 : vector<8x128xf32>, vector<8x128xf32> -> vector<8x256xf32>
    %cst_42 = arith.constant dense<0.000000e+00> : vector<8x512xf32>
    %232 = tpu.matmul %231, %7, %cst_42 {dimension_numbers = #tpu.dot_dimension_numbers<[1], [0], [0], [1], [0, 0, 1, 1], [], []>} : vector<8x256xf32>, vector<256x512xf32>, vector<8x512xf32> -> vector<8x512xf32>
    %233 = arith.addf %10, %232 : vector<8x512xf32>
    %234 = vector.extract_strided_slice %233 {offsets = [0, 0], sizes = [8, 256], strides = [1, 1]} : vector<8x512xf32> to vector<8x256xf32>
    %235 = arith.negf %234 : vector<8x256xf32>
    %236 = math.exp %235 : vector<8x256xf32>
    %cst_43 = arith.constant 1.000000e+00 : f32
    %237 = vector.broadcast %cst_43 : f32 to vector<8x256xf32>
    %238 = arith.addf %237, %236 : vector<8x256xf32>
    %239 = arith.divf %237, %238 : vector<8x256xf32>
    %240 = vector.extract_strided_slice %239 {offsets = [0, 0], sizes = [8, 128], strides = [1, 1]} : vector<8x256xf32> to vector<8x128xf32>
    %241 = vector.extract_strided_slice %239 {offsets = [0, 128], sizes = [8, 128], strides = [1, 1]} : vector<8x256xf32> to vector<8x128xf32>
    %242 = vector.extract_strided_slice %233 {offsets = [0, 256], sizes = [8, 128], strides = [1, 1]} : vector<8x512xf32> to vector<8x128xf32>
    %243 = math.tanh %242 : vector<8x128xf32>
    %244 = vector.extract_strided_slice %233 {offsets = [0, 384], sizes = [8, 128], strides = [1, 1]} : vector<8x512xf32> to vector<8x128xf32>
    %245 = arith.negf %244 : vector<8x128xf32>
    %246 = math.exp %245 : vector<8x128xf32>
    %cst_44 = arith.constant 1.000000e+00 : f32
    %247 = vector.broadcast %cst_44 : f32 to vector<8x128xf32>
    %248 = arith.addf %247, %246 : vector<8x128xf32>
    %249 = arith.divf %247, %248 : vector<8x128xf32>
    %250 = arith.mulf %241, %204 : vector<8x128xf32>
    %251 = arith.mulf %240, %243 : vector<8x128xf32>
    %252 = arith.addf %250, %251 : vector<8x128xf32>
    %253 = math.tanh %252 : vector<8x128xf32>
    %254 = arith.mulf %249, %253 : vector<8x128xf32>
    %255 = vector.extract_strided_slice %5 {offsets = [40, 0], sizes = [8, 512], strides = [1, 1]} : vector<64x512xf32> to vector<8x512xf32>
    %cst_45 = arith.constant dense<0.000000e+00> : vector<8x512xf32>
    %256 = tpu.matmul %230, %6, %cst_45 {dimension_numbers = #tpu.dot_dimension_numbers<[1], [0], [0], [1], [0, 0, 1, 1], [], []>} : vector<8x128xf32>, vector<128x512xf32>, vector<8x512xf32> -> vector<8x512xf32>
    %257 = arith.addf %255, %256 : vector<8x512xf32>
    %258 = vector.extract_strided_slice %257 {offsets = [0, 0], sizes = [8, 256], strides = [1, 1]} : vector<8x512xf32> to vector<8x256xf32>
    %259 = arith.negf %258 : vector<8x256xf32>
    %260 = math.exp %259 : vector<8x256xf32>
    %cst_46 = arith.constant 1.000000e+00 : f32
    %261 = vector.broadcast %cst_46 : f32 to vector<8x256xf32>
    %262 = arith.addf %261, %260 : vector<8x256xf32>
    %263 = arith.divf %261, %262 : vector<8x256xf32>
    %264 = vector.extract_strided_slice %263 {offsets = [0, 0], sizes = [8, 128], strides = [1, 1]} : vector<8x256xf32> to vector<8x128xf32>
    %265 = vector.extract_strided_slice %263 {offsets = [0, 128], sizes = [8, 128], strides = [1, 1]} : vector<8x256xf32> to vector<8x128xf32>
    %266 = vector.extract_strided_slice %257 {offsets = [0, 256], sizes = [8, 128], strides = [1, 1]} : vector<8x512xf32> to vector<8x128xf32>
    %267 = math.tanh %266 : vector<8x128xf32>
    %268 = vector.extract_strided_slice %257 {offsets = [0, 384], sizes = [8, 128], strides = [1, 1]} : vector<8x512xf32> to vector<8x128xf32>
    %269 = arith.negf %268 : vector<8x128xf32>
    %270 = math.exp %269 : vector<8x128xf32>
    %cst_47 = arith.constant 1.000000e+00 : f32
    %271 = vector.broadcast %cst_47 : f32 to vector<8x128xf32>
    %272 = arith.addf %271, %270 : vector<8x128xf32>
    %273 = arith.divf %271, %272 : vector<8x128xf32>
    %274 = arith.mulf %265, %228 : vector<8x128xf32>
    %275 = arith.mulf %264, %267 : vector<8x128xf32>
    %276 = arith.addf %274, %275 : vector<8x128xf32>
    %277 = math.tanh %276 : vector<8x128xf32>
    %278 = arith.mulf %273, %277 : vector<8x128xf32>
    %279 = tpu.concatenate %278, %254 in 1 : vector<8x128xf32>, vector<8x128xf32> -> vector<8x256xf32>
    %cst_48 = arith.constant dense<0.000000e+00> : vector<8x512xf32>
    %280 = tpu.matmul %279, %7, %cst_48 {dimension_numbers = #tpu.dot_dimension_numbers<[1], [0], [0], [1], [0, 0, 1, 1], [], []>} : vector<8x256xf32>, vector<256x512xf32>, vector<8x512xf32> -> vector<8x512xf32>
    %281 = arith.addf %10, %280 : vector<8x512xf32>
    %282 = vector.extract_strided_slice %281 {offsets = [0, 0], sizes = [8, 256], strides = [1, 1]} : vector<8x512xf32> to vector<8x256xf32>
    %283 = arith.negf %282 : vector<8x256xf32>
    %284 = math.exp %283 : vector<8x256xf32>
    %cst_49 = arith.constant 1.000000e+00 : f32
    %285 = vector.broadcast %cst_49 : f32 to vector<8x256xf32>
    %286 = arith.addf %285, %284 : vector<8x256xf32>
    %287 = arith.divf %285, %286 : vector<8x256xf32>
    %288 = vector.extract_strided_slice %287 {offsets = [0, 0], sizes = [8, 128], strides = [1, 1]} : vector<8x256xf32> to vector<8x128xf32>
    %289 = vector.extract_strided_slice %287 {offsets = [0, 128], sizes = [8, 128], strides = [1, 1]} : vector<8x256xf32> to vector<8x128xf32>
    %290 = vector.extract_strided_slice %281 {offsets = [0, 256], sizes = [8, 128], strides = [1, 1]} : vector<8x512xf32> to vector<8x128xf32>
    %291 = math.tanh %290 : vector<8x128xf32>
    %292 = vector.extract_strided_slice %281 {offsets = [0, 384], sizes = [8, 128], strides = [1, 1]} : vector<8x512xf32> to vector<8x128xf32>
    %293 = arith.negf %292 : vector<8x128xf32>
    %294 = math.exp %293 : vector<8x128xf32>
    %cst_50 = arith.constant 1.000000e+00 : f32
    %295 = vector.broadcast %cst_50 : f32 to vector<8x128xf32>
    %296 = arith.addf %295, %294 : vector<8x128xf32>
    %297 = arith.divf %295, %296 : vector<8x128xf32>
    %298 = arith.mulf %289, %252 : vector<8x128xf32>
    %299 = arith.mulf %288, %291 : vector<8x128xf32>
    %300 = arith.addf %298, %299 : vector<8x128xf32>
    %301 = math.tanh %300 : vector<8x128xf32>
    %302 = arith.mulf %297, %301 : vector<8x128xf32>
    %303 = vector.extract_strided_slice %5 {offsets = [48, 0], sizes = [8, 512], strides = [1, 1]} : vector<64x512xf32> to vector<8x512xf32>
    %cst_51 = arith.constant dense<0.000000e+00> : vector<8x512xf32>
    %304 = tpu.matmul %278, %6, %cst_51 {dimension_numbers = #tpu.dot_dimension_numbers<[1], [0], [0], [1], [0, 0, 1, 1], [], []>} : vector<8x128xf32>, vector<128x512xf32>, vector<8x512xf32> -> vector<8x512xf32>
    %305 = arith.addf %303, %304 : vector<8x512xf32>
    %306 = vector.extract_strided_slice %305 {offsets = [0, 0], sizes = [8, 256], strides = [1, 1]} : vector<8x512xf32> to vector<8x256xf32>
    %307 = arith.negf %306 : vector<8x256xf32>
    %308 = math.exp %307 : vector<8x256xf32>
    %cst_52 = arith.constant 1.000000e+00 : f32
    %309 = vector.broadcast %cst_52 : f32 to vector<8x256xf32>
    %310 = arith.addf %309, %308 : vector<8x256xf32>
    %311 = arith.divf %309, %310 : vector<8x256xf32>
    %312 = vector.extract_strided_slice %311 {offsets = [0, 0], sizes = [8, 128], strides = [1, 1]} : vector<8x256xf32> to vector<8x128xf32>
    %313 = vector.extract_strided_slice %311 {offsets = [0, 128], sizes = [8, 128], strides = [1, 1]} : vector<8x256xf32> to vector<8x128xf32>
    %314 = vector.extract_strided_slice %305 {offsets = [0, 256], sizes = [8, 128], strides = [1, 1]} : vector<8x512xf32> to vector<8x128xf32>
    %315 = math.tanh %314 : vector<8x128xf32>
    %316 = vector.extract_strided_slice %305 {offsets = [0, 384], sizes = [8, 128], strides = [1, 1]} : vector<8x512xf32> to vector<8x128xf32>
    %317 = arith.negf %316 : vector<8x128xf32>
    %318 = math.exp %317 : vector<8x128xf32>
    %cst_53 = arith.constant 1.000000e+00 : f32
    %319 = vector.broadcast %cst_53 : f32 to vector<8x128xf32>
    %320 = arith.addf %319, %318 : vector<8x128xf32>
    %321 = arith.divf %319, %320 : vector<8x128xf32>
    %322 = arith.mulf %313, %276 : vector<8x128xf32>
    %323 = arith.mulf %312, %315 : vector<8x128xf32>
    %324 = arith.addf %322, %323 : vector<8x128xf32>
    %325 = math.tanh %324 : vector<8x128xf32>
    %326 = arith.mulf %321, %325 : vector<8x128xf32>
    %327 = tpu.concatenate %326, %302 in 1 : vector<8x128xf32>, vector<8x128xf32> -> vector<8x256xf32>
    %cst_54 = arith.constant dense<0.000000e+00> : vector<8x512xf32>
    %328 = tpu.matmul %327, %7, %cst_54 {dimension_numbers = #tpu.dot_dimension_numbers<[1], [0], [0], [1], [0, 0, 1, 1], [], []>} : vector<8x256xf32>, vector<256x512xf32>, vector<8x512xf32> -> vector<8x512xf32>
    %329 = arith.addf %10, %328 : vector<8x512xf32>
    %330 = vector.extract_strided_slice %329 {offsets = [0, 0], sizes = [8, 256], strides = [1, 1]} : vector<8x512xf32> to vector<8x256xf32>
    %331 = arith.negf %330 : vector<8x256xf32>
    %332 = math.exp %331 : vector<8x256xf32>
    %cst_55 = arith.constant 1.000000e+00 : f32
    %333 = vector.broadcast %cst_55 : f32 to vector<8x256xf32>
    %334 = arith.addf %333, %332 : vector<8x256xf32>
    %335 = arith.divf %333, %334 : vector<8x256xf32>
    %336 = vector.extract_strided_slice %335 {offsets = [0, 0], sizes = [8, 128], strides = [1, 1]} : vector<8x256xf32> to vector<8x128xf32>
    %337 = vector.extract_strided_slice %335 {offsets = [0, 128], sizes = [8, 128], strides = [1, 1]} : vector<8x256xf32> to vector<8x128xf32>
    %338 = vector.extract_strided_slice %329 {offsets = [0, 256], sizes = [8, 128], strides = [1, 1]} : vector<8x512xf32> to vector<8x128xf32>
    %339 = math.tanh %338 : vector<8x128xf32>
    %340 = vector.extract_strided_slice %329 {offsets = [0, 384], sizes = [8, 128], strides = [1, 1]} : vector<8x512xf32> to vector<8x128xf32>
    %341 = arith.negf %340 : vector<8x128xf32>
    %342 = math.exp %341 : vector<8x128xf32>
    %cst_56 = arith.constant 1.000000e+00 : f32
    %343 = vector.broadcast %cst_56 : f32 to vector<8x128xf32>
    %344 = arith.addf %343, %342 : vector<8x128xf32>
    %345 = arith.divf %343, %344 : vector<8x128xf32>
    %346 = arith.mulf %337, %300 : vector<8x128xf32>
    %347 = arith.mulf %336, %339 : vector<8x128xf32>
    %348 = arith.addf %346, %347 : vector<8x128xf32>
    %349 = math.tanh %348 : vector<8x128xf32>
    %350 = arith.mulf %345, %349 : vector<8x128xf32>
    %351 = vector.extract_strided_slice %5 {offsets = [56, 0], sizes = [8, 512], strides = [1, 1]} : vector<64x512xf32> to vector<8x512xf32>
    %cst_57 = arith.constant dense<0.000000e+00> : vector<8x512xf32>
    %352 = tpu.matmul %326, %6, %cst_57 {dimension_numbers = #tpu.dot_dimension_numbers<[1], [0], [0], [1], [0, 0, 1, 1], [], []>} : vector<8x128xf32>, vector<128x512xf32>, vector<8x512xf32> -> vector<8x512xf32>
    %353 = arith.addf %351, %352 : vector<8x512xf32>
    %354 = vector.extract_strided_slice %353 {offsets = [0, 0], sizes = [8, 256], strides = [1, 1]} : vector<8x512xf32> to vector<8x256xf32>
    %355 = arith.negf %354 : vector<8x256xf32>
    %356 = math.exp %355 : vector<8x256xf32>
    %cst_58 = arith.constant 1.000000e+00 : f32
    %357 = vector.broadcast %cst_58 : f32 to vector<8x256xf32>
    %358 = arith.addf %357, %356 : vector<8x256xf32>
    %359 = arith.divf %357, %358 : vector<8x256xf32>
    %360 = vector.extract_strided_slice %359 {offsets = [0, 0], sizes = [8, 128], strides = [1, 1]} : vector<8x256xf32> to vector<8x128xf32>
    %361 = vector.extract_strided_slice %359 {offsets = [0, 128], sizes = [8, 128], strides = [1, 1]} : vector<8x256xf32> to vector<8x128xf32>
    %362 = vector.extract_strided_slice %353 {offsets = [0, 256], sizes = [8, 128], strides = [1, 1]} : vector<8x512xf32> to vector<8x128xf32>
    %363 = math.tanh %362 : vector<8x128xf32>
    %364 = vector.extract_strided_slice %353 {offsets = [0, 384], sizes = [8, 128], strides = [1, 1]} : vector<8x512xf32> to vector<8x128xf32>
    %365 = arith.negf %364 : vector<8x128xf32>
    %366 = math.exp %365 : vector<8x128xf32>
    %cst_59 = arith.constant 1.000000e+00 : f32
    %367 = vector.broadcast %cst_59 : f32 to vector<8x128xf32>
    %368 = arith.addf %367, %366 : vector<8x128xf32>
    %369 = arith.divf %367, %368 : vector<8x128xf32>
    %370 = arith.mulf %361, %324 : vector<8x128xf32>
    %371 = arith.mulf %360, %363 : vector<8x128xf32>
    %372 = arith.addf %370, %371 : vector<8x128xf32>
    %373 = math.tanh %372 : vector<8x128xf32>
    %374 = arith.mulf %369, %373 : vector<8x128xf32>
    %375 = tpu.concatenate %374, %350 in 1 : vector<8x128xf32>, vector<8x128xf32> -> vector<8x256xf32>
    %cst_60 = arith.constant dense<0.000000e+00> : vector<8x512xf32>
    %376 = tpu.matmul %375, %7, %cst_60 {dimension_numbers = #tpu.dot_dimension_numbers<[1], [0], [0], [1], [0, 0, 1, 1], [], []>} : vector<8x256xf32>, vector<256x512xf32>, vector<8x512xf32> -> vector<8x512xf32>
    %377 = arith.addf %10, %376 : vector<8x512xf32>
    %378 = vector.extract_strided_slice %377 {offsets = [0, 0], sizes = [8, 256], strides = [1, 1]} : vector<8x512xf32> to vector<8x256xf32>
    %379 = arith.negf %378 : vector<8x256xf32>
    %380 = math.exp %379 : vector<8x256xf32>
    %cst_61 = arith.constant 1.000000e+00 : f32
    %381 = vector.broadcast %cst_61 : f32 to vector<8x256xf32>
    %382 = arith.addf %381, %380 : vector<8x256xf32>
    %383 = arith.divf %381, %382 : vector<8x256xf32>
    %384 = vector.extract_strided_slice %383 {offsets = [0, 0], sizes = [8, 128], strides = [1, 1]} : vector<8x256xf32> to vector<8x128xf32>
    %385 = vector.extract_strided_slice %383 {offsets = [0, 128], sizes = [8, 128], strides = [1, 1]} : vector<8x256xf32> to vector<8x128xf32>
    %386 = vector.extract_strided_slice %377 {offsets = [0, 256], sizes = [8, 128], strides = [1, 1]} : vector<8x512xf32> to vector<8x128xf32>
    %387 = math.tanh %386 : vector<8x128xf32>
    %388 = vector.extract_strided_slice %377 {offsets = [0, 384], sizes = [8, 128], strides = [1, 1]} : vector<8x512xf32> to vector<8x128xf32>
    %389 = arith.negf %388 : vector<8x128xf32>
    %390 = math.exp %389 : vector<8x128xf32>
    %cst_62 = arith.constant 1.000000e+00 : f32
    %391 = vector.broadcast %cst_62 : f32 to vector<8x128xf32>
    %392 = arith.addf %391, %390 : vector<8x128xf32>
    %393 = arith.divf %391, %392 : vector<8x128xf32>
    %394 = arith.mulf %385, %348 : vector<8x128xf32>
    %395 = arith.mulf %384, %387 : vector<8x128xf32>
    %396 = arith.addf %394, %395 : vector<8x128xf32>
    %397 = math.tanh %396 : vector<8x128xf32>
    %398 = arith.mulf %393, %397 : vector<8x128xf32>
    %c0_63 = arith.constant 0 : index
    %c0_64 = arith.constant 0 : index
    %399 = vector.load %arg6[%c0_63, %c0_64] : memref<128x1xf32, #tpu.memory_space<vmem>>, vector<128x1xf32>
    %cst_65 = arith.constant dense<0.000000e+00> : vector<8x1xf32>
    %400 = tpu.matmul %398, %399, %cst_65 {dimension_numbers = #tpu.dot_dimension_numbers<[1], [0], [0], [1], [0, 0, 1, 1], [], []>} : vector<8x128xf32>, vector<128x1xf32>, vector<8x1xf32> -> vector<8x1xf32>
    %c0_66 = arith.constant 0 : index
    %c0_67 = arith.constant 0 : index
    %401 = vector.load %arg7[%c0_66, %c0_67] : memref<1x1xf32, #tpu.memory_space<vmem>>, vector<1x1xf32>
    %402 = vector.broadcast %401 : vector<1x1xf32> to vector<8x1xf32>
    %403 = arith.addf %400, %402 : vector<8x1xf32>
    %c0_68 = arith.constant 0 : index
    %c0_69 = arith.constant 0 : index
    %404 = vector.load %arg8[%c0_68, %c0_69] : memref<8x1xf32, #tpu.memory_space<vmem>>, vector<8x1xf32>
    tpu.vector_store %arg8[%c0_68, %c0_69], %403 {strides = array<i32>} : memref<8x1xf32, #tpu.memory_space<vmem>>, vector<8x1xf32>,
    return
  }
}

</mosaic_0001>

<bundles_post_ra>
// kernel: tpu_custom_call.1
= control target key start
LH: loop header
LB: loop body
LE: loop exit
PB: predicated region body
PF: predicated region fallthrough
CT: control target
= control target key end

     0   :  { %s6774_s0 = inlined_call_operand.vmem [shape: f32[64,8], index: 0, kind: input, shape index: {}]   ;;  %s6775_s1 = inlined_call_operand.vmem [shape: f32[8,512], index: 1, kind: input, shape index: {}]   ;;  %s6776_s2 = inlined_call_operand.vmem [shape: f32[1,512], index: 2, kind: input, shape index: {}]   ;;  %s6777_s3 = inlined_call_operand.hbm [shape: f32[128,512], index: 3, kind: input, shape index: {}]   ;;  %s6778_s4 = inlined_call_operand.hbm [shape: f32[256,512], index: 4, kind: input, shape index: {}]   ;;  %s6779_s5 = inlined_call_operand.vmem [shape: f32[1,512], index: 5, kind: input, shape index: {}]   ;;  %s6780_s6 = inlined_call_operand.vmem [shape: f32[128,1], index: 6, kind: input, shape index: {}]   ;;  %s6781_s7 = inlined_call_operand.<no memory space> [shape: f32[1,1], index: 7, kind: input, shape index: {}]   ;;  %s6782_s8 = inlined_call_operand.vmem [shape: f32[8,1], index: 8, kind: output, shape index: {}]  }
   0x1   :  { %v13_v0 = vstv %s6781_s7 }
   0x2   :  { %14 = vst [vmem:[#allocation2] sm:$0x1] %v13_v0 }
   0x3   :  { %15 = vsyncpa [#allocation4], 0 }
   0x4   :  { %16 = vsyncpa [#allocation6], 0  ;;  %s5431_s29 = smov [#allocation3]   ;;  %s5383_s11 = scalar_lea.hbm %s6777_s3, 8192 }
   0x5   :  { %s28_s30 = sshll.u32 %s5431_s29, 4  ;;  %p5384_p0 = scmp.ne.s32.totalorder %s6777_s3, %s5383_s11  ;;  %s29_s30 = int_to_ptr.vmem [resolvable:$true] %s28_s30 }
   0x6   :  { %p5387_p1 = scmp.lt.u32.totalorder %s5383_s11, %s6777_s3 }
   0x8   :  { %p5389_p2 = pnand %p5387_p1, %p5384_p0 }
   0xa   :  { %5392 = shalt.err (!%p5389_p2)
}
   0xb   :  { %s5393_s7 = scalar_lea.vmem %s29_s30, 8192  ;;  %p5398_p4 = scmp.lt.s32.totalorder %s29_s30, %s29_s30 }
   0xc   :  { %p5394_p3 = scmp.ne.s32.totalorder %s29_s30, %s5393_s7  ;;  %p5399_p5 = scmp.lt.s32.totalorder %s5393_s7, %s5393_s7 }
   0xe   :  { %p5400_p6 = por %p5399_p5, %p5398_p4 }
  0x10   :  { %p5401_p7 = pnand %p5400_p6, %p5394_p3 }
  0x12   :  { %5404 = shalt.err (!%p5401_p7)
}
  0x13   :  { %s5432_s16 = smov 512   ;;  %s5433_s17 = smov 32  }
  0x14   :  { %34 = dma.hbm_to_vmem [thread:$0]  %s6777_s3, 8192, %s29_s30, [#allocation4], %s5432_s16, %s5432_s16, %s5433_s17  }
  0x15   :  { %s5434_s20 = smov [#allocation5]   ;;  %s5405_s24 = scalar_lea.hbm %s6778_s4, 16384 }
  0x16   :  { %s40_s21 = sshll.u32 %s5434_s20, 4  ;;  %p5406_p8 = scmp.ne.s32.totalorder %s6778_s4, %s5405_s24  ;;  %s41_s21 = int_to_ptr.vmem [resolvable:$true] %s40_s21 }
  0x17   :  { %p5409_p9 = scmp.lt.u32.totalorder %s5405_s24, %s6778_s4 }
  0x19   :  { %p5411_p10 = pnand %p5409_p9, %p5406_p8 }
  0x1b   :  { %5414 = shalt.err (!%p5411_p10)
}
  0x1c   :  { %s5415_s29 = scalar_lea.vmem %s41_s21, 16384  ;;  %p5420_p12 = scmp.lt.s32.totalorder %s41_s21, %s41_s21 }
  0x1d   :  { %p5416_p11 = scmp.ne.s32.totalorder %s41_s21, %s5415_s29  ;;  %p5421_p13 = scmp.lt.s32.totalorder %s5415_s29, %s5415_s29 }
  0x1f   :  { %p5422_p0 = por %p5421_p13, %p5420_p12 }
  0x21   :  { %p5423_p1 = pnand %p5422_p0, %p5416_p11 }
  0x23   :  { %5426 = shalt.err (!%p5423_p1)
}
  0x24   :  { %46 = dma.hbm_to_vmem [thread:$0]  %s6778_s4, 16384, %s41_s21, [#allocation6], %s5432_s16, %s5432_s16, %s5433_s17  }
  0x25   :  { %5427 = dma.done.wait [#allocation4], 8192  }
  0x26   :  { %5428 = vsyncadd [#allocation4], 4294959104 }
  0x27   :  { %5429 = dma.done.wait [#allocation6], 16384  }
  0x28   :  { %5430 = vsyncadd [#allocation6], 4294950912  ;;  %v6783_v1 = vmov 0.0   ;;  %v68_v2 = vld [vmem:[%s6775_s1 + $0x8] sm:$0xff]  ;;  %v70_v3 = vld [vmem:[%s6775_s1 + $0x18] sm:$0xff]  ;;  %vm93_vm0 = vcmask 64512  }
  0x29   :  { %182 = vmatprep.mubr.f32.mxu0 %v6783_v1  ;;  %295 = vmatprep.mubr.f32.mxu1 %v6783_v1  ;;  %v67_v4 = vld [vmem:[%s6775_s1] sm:$0xff]  ;;  %v69_v5 = vld [vmem:[%s6775_s1 + $0x10] sm:$0xff]  ;;  %v60_v18 = vld [vmem:[%s6774_s0 + $0x8] sm:$0xff]  ;;  %vm5437_vm1 = vmmov 0   ;;  %vm3371_vm2 = vcmask 7168  }
  0x2a   :  { %118 = vmatprep.subr.mxu0 %v68_v2  ;;  %231 = vmatprep.subr.mxu1 %v70_v3  ;;  %v59_v6 = vld [vmem:[%s6774_s0] sm:$0xff]  ;;  %v345_v7 = vld [vmem:[#allocation3 + $0x8] sm:$0xff]  ;;  %v346_v15 = vld [vmem:[#allocation3 + $0x10] sm:$0xff] }
  0x2b   :  { %119 = vmatpush1.msra.mxu0 %v67_v4  ;;  %232 = vmatpush1.msra.mxu1 %v69_v5  ;;  %v349_v8 = vld [vmem:[#allocation3 + $0x28] sm:$0xff]  ;;  %v347_v9 = vld [vmem:[#allocation3 + $0x18] sm:$0xff]  ;;  %v344_v13 = vld [vmem:[#allocation3] sm:$0xff] }
  0x2c   :  { %v351_v10 = vld [vmem:[#allocation3 + $0x38] sm:$0xff]  ;;  %3379 = vmatmul.mubr.msk.f32.vlgmr.msra.gmra.mrb[0].mxu0 %vm93_vm0, %v59_v6  ;;  %3387 = vmatmul.mubr.msk.f32.vlgmr.msra.gmra.mrb[0].mxu1 %vm93_vm0, %v59_v6  ;;  %v5529_v11 = vpack.c.bf16 %v349_v8, %v345_v7  ;;  %v348_v14 = vld [vmem:[#allocation3 + $0x20] sm:$0xff]  ;;  %v350_v17 = vld [vmem:[#allocation3 + $0x30] sm:$0xff] }
  0x2d   :  { %v5531_v12 = vpack.c.bf16 %v351_v10, %v347_v9  ;;  %v5533_v16 = vpack.c.bf16 %v348_v14, %v344_v13  ;;  %188 = vmatprep.mubr.f32.mxu0 %v6783_v1  ;;  %301 = vmatprep.mubr.f32.mxu1 %v6783_v1  ;;  %v353_v19 = vld [vmem:[#allocation3 + $0x48] sm:$0xff]  ;;  %v5542_v20 = vpack.c.bf16 %v350_v17, %v346_v15  ;;  %v355_v22 = vld [vmem:[#allocation3 + $0x58] sm:$0xff]  ;;  %v352_v26 = vld [vmem:[#allocation3 + $0x40] sm:$0xff] }
  0x2e   :  { %6917 = vst [vmem:[#allocation9_spill] sm:$0xff] %v5529_v11  ;;  %3497 = vmatprep.subr.bf16.mxu0 %v5529_v11  ;;  %v357_v21 = vld [vmem:[#allocation3 + $0x68] sm:$0xff]  ;;  %v359_v23 = vld [vmem:[#allocation3 + $0x78] sm:$0xff]  ;;  %v356_v27 = vld [vmem:[#allocation3 + $0x60] sm:$0xff] }
  0x2f   :  { %6918 = vst [vmem:[#allocation10_spill] sm:$0xff] %v5531_v12  ;;  %3529 = vmatprep.subr.bf16.mxu1 %v5531_v12  ;;  %3499 = vmatpush1.bf16.msra.mxu0 %v5533_v16  ;;  %v5545_v24 = vpack.c.bf16 %v357_v21, %v353_v19  ;;  %v5547_v25 = vpack.c.bf16 %v359_v23, %v355_v22  ;;  %v354_v28 = vld [vmem:[#allocation3 + $0x50] sm:$0xff]  ;;  %v361_v32 = vld [vmem:[#allocation3 + $0x88] sm:$0xff]  ;;  %v363_v35 = vld [vmem:[#allocation3 + $0x98] sm:$0xff] }
  0x30   :  { %3531 = vmatpush1.bf16.msra.mxu1 %v5542_v20  ;;  %3380 = vmatmul.mubr.msk.f32.gmra.mrb[2].mxu0 %vm93_vm0, %v60_v18  ;;  %v5551_v29 = vpack.c.bf16 %v356_v27, %v352_v26  ;;  %v358_v30 = vld [vmem:[#allocation3 + $0x70] sm:$0xff]  ;;  %v365_v34 = vld [vmem:[#allocation3 + $0xa8] sm:$0xff]  ;;  %v367_v36 = vld [vmem:[#allocation3 + $0xb8] sm:$0xff] }
  0x31   :  { %v61_v31 = vld [vmem:[%s6774_s0 + $0x10] sm:$0xff]  ;;  %3388 = vmatmul.mubr.msk.f32.gmra.mrb[2].mxu1 %vm93_vm0, %v60_v18  ;;  %3501 = vmatprep.subr.bf16.mxu0 %v5545_v24  ;;  %v5558_v33 = vpack.c.bf16 %v358_v30, %v354_v28  ;;  %v5562_v37 = vpack.c.bf16 %v365_v34, %v361_v32  ;;  %v5564_v38 = vpack.c.bf16 %v367_v36, %v363_v35  ;;  %v360_v39 = vld [vmem:[#allocation3 + $0x80] sm:$0xff]  ;;  %v62_v44 = vld [vmem:[%s6774_s0 + $0x18] sm:$0xff] }
  0x32   :  { %3533 = vmatprep.subr.bf16.mxu1 %v5547_v25  ;;  %194 = vmatprep.mubr.f32.mxu0 %v6783_v1  ;;  %v364_v40 = vld [vmem:[#allocation3 + $0xa0] sm:$0xff]  ;;  %v362_v41 = vld [vmem:[#allocation3 + $0x90] sm:$0xff]  ;;  %v369_v45 = vld [vmem:[#allocation3 + $0xc8] sm:$0xff] }
  0x33   :  { %3503 = vmatpush1.bf16.msra.mxu0 %v5551_v29  ;;  %307 = vmatprep.mubr.f32.mxu1 %v6783_v1  ;;  %v5568_v42 = vpack.c.bf16 %v364_v40, %v360_v39  ;;  %v366_v43 = vld [vmem:[#allocation3 + $0xb0] sm:$0xff]  ;;  %v373_v47 = vld [vmem:[#allocation3 + $0xe8] sm:$0xff]  ;;  %v371_v48 = vld [vmem:[#allocation3 + $0xd8] sm:$0xff] }
  0x34   :  { %3535 = vmatpush1.bf16.msra.mxu1 %v5558_v33  ;;  %3381 = vmatmul.mubr.msk.f32.gmra.mrb[4].mxu0 %vm93_vm0, %v61_v31  ;;  %v5575_v46 = vpack.c.bf16 %v366_v43, %v362_v41  ;;  %v375_v49 = vld [vmem:[#allocation3 + $0xf8] sm:$0xff]  ;;  %v5579_v50 = vpack.c.bf16 %v373_v47, %v369_v45  ;;  %v368_v51 = vld [vmem:[#allocation3 + $0xc0] sm:$0xff]  ;;  %v370_v53 = vld [vmem:[#allocation3 + $0xd0] sm:$0xff] }
  0x35   :  { %3389 = vmatmul.mubr.msk.f32.gmra.mrb[4].mxu1 %vm93_vm0, %v61_v31  ;;  %3505 = vmatprep.subr.bf16.mxu0 %v5562_v37  ;;  %v372_v52 = vld [vmem:[#allocation3 + $0xe0] sm:$0xff]  ;;  %v5583_v54 = vpack.c.bf16 %v375_v49, %v371_v48  ;;  %v374_v55 = vld [vmem:[#allocation3 + $0xf0] sm:$0xff]  ;;  %v377_v56 = vld [vmem:[#allocation3 + $0x108] sm:$0xff] }
  0x36   :  { %3537 = vmatprep.subr.bf16.mxu1 %v5564_v38  ;;  %200 = vmatprep.mubr.f32.mxu0 %v6783_v1  ;;  %v5587_v57 = vpack.c.bf16 %v372_v52, %v368_v51  ;;  %v381_v58 = vld [vmem:[#allocation3 + $0x128] sm:$0xff]  ;;  %v379_v59 = vld [vmem:[#allocation3 + $0x118] sm:$0xff]  ;;  %v5591_v61 = vpack.c.bf16 %v374_v55, %v370_v53  ;;  %v376_v62 = vld [vmem:[#allocation3 + $0x100] sm:$0xff] }
  0x37   :  { %3507 = vmatpush1.bf16.msra.mxu0 %v5568_v42  ;;  %313 = vmatprep.mubr.f32.mxu1 %v6783_v1  ;;  %v383_v60 = vld [vmem:[#allocation3 + $0x138] sm:$0xff]  ;;  %v380_v63 = vld [vmem:[#allocation3 + $0x120] sm:$0xff]  ;;  %v5598_v2 = vpack.c.bf16 %v381_v58, %v377_v56  ;;  %v378_v3 = vld [vmem:[#allocation3 + $0x110] sm:$0xff] }
  0x38   :  { %3539 = vmatpush1.bf16.msra.mxu1 %v5575_v46  ;;  %3382 = vmatmul.mubr.msk.f32.gmra.mrb[6].mxu0 %vm93_vm0, %v62_v44  ;;  %v63_v0 = vld [vmem:[%s6774_s0 + $0x20] sm:$0xff]  ;;  %v382_v4 = vld [vmem:[#allocation3 + $0x130] sm:$0xff]  ;;  %v5602_v5 = vpack.c.bf16 %v383_v60, %v379_v59  ;;  %v385_v6 = vld [vmem:[#allocation3 + $0x148] sm:$0xff]  ;;  %v5606_v8 = vpack.c.bf16 %v380_v63, %v376_v62 }
  0x39   :  { %3390 = vmatmul.mubr.msk.f32.gmra.mrb[6].mxu1 %vm93_vm0, %v62_v44  ;;  %3509 = vmatprep.subr.bf16.mxu0 %v5579_v50  ;;  %v389_v7 = vld [vmem:[#allocation3 + $0x168] sm:$0xff]  ;;  %v387_v9 = vld [vmem:[#allocation3 + $0x158] sm:$0xff]  ;;  %v5610_v13 = vpack.c.bf16 %v382_v4, %v378_v3  ;;  %v384_v14 = vld [vmem:[#allocation3 + $0x140] sm:$0xff] }
  0x3a   :  { %3541 = vmatprep.subr.bf16.mxu1 %v5583_v54  ;;  %206 = vmatprep.mubr.f32.mxu0 %v6783_v1  ;;  %v391_v10 = vld [vmem:[#allocation3 + $0x178] sm:$0xff]  ;;  %v388_v15 = vld [vmem:[#allocation3 + $0x160] sm:$0xff]  ;;  %v5617_v18 = vpack.c.bf16 %v389_v7, %v385_v6  ;;  %v386_v19 = vld [vmem:[#allocation3 + $0x150] sm:$0xff] }
  0x3b   :  { %3511 = vmatpush1.bf16.msra.mxu0 %v5587_v57  ;;  %319 = vmatprep.mubr.f32.mxu1 %v6783_v1  ;;  %v64_v17 = vld [vmem:[%s6774_s0 + $0x28] sm:$0xff]  ;;  %v390_v21 = vld [vmem:[#allocation3 + $0x170] sm:$0xff]  ;;  %v5621_v22 = vpack.c.bf16 %v391_v10, %v387_v9  ;;  %v5625_v27 = vpack.c.bf16 %v388_v15, %v384_v14  ;;  %v395_v28 = vld [vmem:[#allocation3 + $0x198] sm:$0xff] }
  0x3c   :  { %3543 = vmatpush1.bf16.msra.mxu1 %v5591_v61  ;;  %3383 = vmatmul.mubr.msk.f32.gmra.mrb[8].mxu0 %vm93_vm0, %v63_v0  ;;  %v393_v23 = vld [vmem:[#allocation3 + $0x188] sm:$0xff]  ;;  %v399_v30 = vld [vmem:[#allocation3 + $0x1b8] sm:$0xff]  ;;  %v5629_v31 = vpack.c.bf16 %v390_v21, %v386_v19  ;;  %v392_v32 = vld [vmem:[#allocation3 + $0x180] sm:$0xff] }
  0x3d   :  { %3391 = vmatmul.mubr.msk.f32.gmra.mrb[8].mxu1 %vm93_vm0, %v63_v0  ;;  %3513 = vmatprep.subr.bf16.mxu0 %v5598_v2  ;;  %v397_v26 = vld [vmem:[#allocation3 + $0x1a8] sm:$0xff]  ;;  %v396_v34 = vld [vmem:[#allocation3 + $0x1a0] sm:$0xff]  ;;  %v394_v39 = vld [vmem:[#allocation3 + $0x190] sm:$0xff]  ;;  %v5640_v41 = vpack.c.bf16 %v399_v30, %v395_v28 }
  0x3e   :  { %3545 = vmatprep.subr.bf16.mxu1 %v5602_v5  ;;  %212 = vmatprep.mubr.f32.mxu0 %v6783_v1  ;;  %v65_v35 = vld [vmem:[%s6774_s0 + $0x30] sm:$0xff]  ;;  %v5636_v36 = vpack.c.bf16 %v397_v26, %v393_v23  ;;  %v5644_v45 = vpack.c.bf16 %v396_v34, %v392_v32  ;;  %v66_v47 = vld [vmem:[%s6774_s0 + $0x38] sm:$0xff]  ;;  %v400_v52 = vld [vmem:[#allocation3 + $0x1c0] sm:$0xff] }
  0x3f   :  { %3515 = vmatpush1.bf16.msra.mxu0 %v5606_v8  ;;  %325 = vmatprep.mubr.f32.mxu1 %v6783_v1  ;;  %v398_v40 = vld [vmem:[#allocation3 + $0x1b0] sm:$0xff]  ;;  %v401_v43 = vld [vmem:[#allocation3 + $0x1c8] sm:$0xff]  ;;  %v403_v48 = vld [vmem:[#allocation3 + $0x1d8] sm:$0xff] }
  0x40   :  { %3547 = vmatpush1.bf16.msra.mxu1 %v5610_v13  ;;  %3384 = vmatmul.mubr.msk.f32.gmra.mrb[10].mxu0 %vm93_vm0, %v64_v17  ;;  %v405_v44 = vld [vmem:[#allocation3 + $0x1e8] sm:$0xff]  ;;  %v407_v49 = vld [vmem:[#allocation3 + $0x1f8] sm:$0xff]  ;;  %v5651_v51 = vpack.c.bf16 %v398_v40, %v394_v39  ;;  %v404_v53 = vld [vmem:[#allocation3 + $0x1e0] sm:$0xff] }
  0x41   :  { %3392 = vmatmul.mubr.msk.f32.gmra.mrb[10].mxu1 %vm93_vm0, %v64_v17  ;;  %3517 = vmatprep.subr.bf16.mxu0 %v5617_v18  ;;  %v402_v55 = vld [vmem:[#allocation3 + $0x1d0] sm:$0xff]  ;;  %v5655_v56 = vpack.c.bf16 %v405_v44, %v401_v43  ;;  %v409_v59 = vld [vmem:[#allocation5 + $0x8] sm:$0xff]  ;;  %v5659_v62 = vpack.c.bf16 %v407_v49, %v403_v48  ;;  %v411_v63 = vld [vmem:[#allocation5 + $0x18] sm:$0xff]  ;;  %v5663_v3 = vpack.c.bf16 %v404_v53, %v400_v52 }
  0x42   :  { %3549 = vmatprep.subr.bf16.mxu1 %v5621_v22  ;;  %218 = vmatprep.mubr.f32.mxu0 %v6783_v1  ;;  %v406_v58 = vld [vmem:[#allocation3 + $0x1f0] sm:$0xff]  ;;  %v413_v60 = vld [vmem:[#allocation5 + $0x28] sm:$0xff]  ;;  %v415_v0 = vld [vmem:[#allocation5 + $0x38] sm:$0xff] }
  0x43   :  { %3519 = vmatpush1.bf16.msra.mxu0 %v5625_v27  ;;  %331 = vmatprep.mubr.f32.mxu1 %v6783_v1  ;;  %v5667_v4 = vpack.c.bf16 %v406_v58, %v402_v55  ;;  %v5669_v6 = vpack.c.bf16 %v413_v60, %v409_v59  ;;  %v408_v7 = vld [vmem:[#allocation5] sm:$0xff]  ;;  %v410_v10 = vld [vmem:[#allocation5 + $0x10] sm:$0xff]  ;;  %v5673_v14 = vpack.c.bf16 %v415_v0, %v411_v63  ;;  %v417_v17 = vld [vmem:[#allocation5 + $0x48] sm:$0xff] }
  0x44   :  { %3551 = vmatpush1.bf16.msra.mxu1 %v5629_v31  ;;  %3385 = vmatmul.mubr.msk.f32.gmra.mrb[12].mxu0 %vm93_vm0, %v65_v35  ;;  %v412_v9 = vld [vmem:[#allocation5 + $0x20] sm:$0xff]  ;;  %v414_v15 = vld [vmem:[#allocation5 + $0x30] sm:$0xff]  ;;  %v421_v19 = vld [vmem:[#allocation5 + $0x68] sm:$0xff] }
  0x45   :  { %3393 = vmatmul.mubr.msk.f32.gmra.mrb[12].mxu1 %vm93_vm0, %v65_v35  ;;  %3521 = vmatprep.subr.bf16.mxu0 %v5636_v36  ;;  %v419_v21 = vld [vmem:[#allocation5 + $0x58] sm:$0xff]  ;;  %v5679_v26 = vpack.c.bf16 %v412_v9, %v408_v7  ;;  %v5683_v28 = vpack.c.bf16 %v414_v15, %v410_v10  ;;  %v5685_v30 = vpack.c.bf16 %v421_v19, %v417_v17  ;;  %v416_v32 = vld [vmem:[#allocation5 + $0x40] sm:$0xff]  ;;  %v418_v35 = vld [vmem:[#allocation5 + $0x50] sm:$0xff] }
  0x46   :  { %3553 = vmatprep.subr.bf16.mxu1 %v5640_v41  ;;  %224 = vmatprep.mubr.f32.mxu0 %v6783_v1  ;;  %v423_v23 = vld [vmem:[#allocation5 + $0x78] sm:$0xff]  ;;  %v420_v34 = vld [vmem:[#allocation5 + $0x60] sm:$0xff]  ;;  %v422_v40 = vld [vmem:[#allocation5 + $0x70] sm:$0xff] }
  0x47   :  { %3523 = vmatpush1.bf16.msra.mxu0 %v5644_v45  ;;  %337 = vmatprep.mubr.f32.mxu1 %v6783_v1  ;;  %v5688_v39 = vpack.c.bf16 %v423_v23, %v419_v21  ;;  %v425_v43 = vld [vmem:[#allocation5 + $0x88] sm:$0xff]  ;;  %v431_v48 = vld [vmem:[#allocation5 + $0xb8] sm:$0xff]  ;;  %v5693_v49 = vpack.c.bf16 %v420_v34, %v416_v32  ;;  %v5697_v52 = vpack.c.bf16 %v422_v40, %v418_v35  ;;  %v424_v55 = vld [vmem:[#allocation5 + $0x80] sm:$0xff] }
  0x48   :  { %3555 = vmatpush1.bf16.msra.mxu1 %v5651_v51  ;;  %3386 = vmatmul.mubr.msk.f32.gmra.mrb[14].mxu0 %vm93_vm0, %v66_v47  ;;  %v429_v44 = vld [vmem:[#allocation5 + $0xa8] sm:$0xff]  ;;  %v428_v58 = vld [vmem:[#allocation5 + $0xa0] sm:$0xff]  ;;  %v426_v59 = vld [vmem:[#allocation5 + $0x90] sm:$0xff] }
  0x49   :  { %3394 = vmatmul.mubr.msk.f32.gmra.mrb[14].mxu1 %vm93_vm0, %v66_v47  ;;  %3525 = vmatprep.subr.bf16.mxu0 %v5655_v56  ;;  %v427_v47 = vld [vmem:[#allocation5 + $0x98] sm:$0xff]  ;;  %v5699_v53 = vpack.c.bf16 %v429_v44, %v425_v43  ;;  %v430_v63 = vld [vmem:[#allocation5 + $0xb0] sm:$0xff]  ;;  %v433_v0 = vld [vmem:[#allocation5 + $0xc8] sm:$0xff]  ;;  %v5707_v15 = vpack.c.bf16 %v428_v58, %v424_v55 }
  0x4a   :  { %3557 = vmatprep.subr.bf16.mxu1 %v5659_v62  ;;  %622 = vmatprep.mubr.f32.mxu0 %v6783_v1  ;;  %v5702_v60 = vpack.c.bf16 %v431_v48, %v427_v47  ;;  %v437_v7 = vld [vmem:[#allocation5 + $0xe8] sm:$0xff]  ;;  %v435_v9 = vld [vmem:[#allocation5 + $0xd8] sm:$0xff]  ;;  %v5711_v17 = vpack.c.bf16 %v430_v63, %v426_v59  ;;  %v432_v21 = vld [vmem:[#allocation5 + $0xc0] sm:$0xff] }
  0x4b   :  { %3527 = vmatpush1.bf16.msra.mxu0 %v5663_v3  ;;  %693 = vmatprep.mubr.f32.mxu1 %v6783_v1  ;;  %v439_v10 = vld [vmem:[#allocation5 + $0xf8] sm:$0xff]  ;;  %6919 = vst [vmem:[#allocation11_spill] sm:$0xff] %v5707_v15  ;;  %v5713_v19 = vpack.c.bf16 %v437_v7, %v433_v0  ;;  %v436_v23 = vld [vmem:[#allocation5 + $0xe0] sm:$0xff]  ;;  %v434_v32 = vld [vmem:[#allocation5 + $0xd0] sm:$0xff] }
  0x4c   :  { %3559 = vmatpush1.bf16.msra.mxu1 %v5667_v4  ;;  %3561 = vmatprep.subr.bf16.mxu0 %v5669_v6  ;;  %6920 = vst [vmem:[#allocation12_spill] sm:$0xff] %v5711_v17  ;;  %v5716_v34 = vpack.c.bf16 %v439_v10, %v435_v9  ;;  %v438_v35 = vld [vmem:[#allocation5 + $0xf0] sm:$0xff]  ;;  %v441_v40 = vld [vmem:[#allocation5 + $0x108] sm:$0xff]  ;;  %v443_v44 = vld [vmem:[#allocation5 + $0x118] sm:$0xff]  ;;  %v5719_v48 = vpack.c.bf16 %v436_v23, %v432_v21 }
  0x4d   :  { %3625 = vmatprep.subr.bf16.mxu1 %v5673_v14  ;;  %6921 = vst [vmem:[#allocation13_spill] sm:$0xff] %v5713_v19  ;;  %v445_v43 = vld [vmem:[#allocation5 + $0x128] sm:$0xff]  ;;  %v447_v47 = vld [vmem:[#allocation5 + $0x138] sm:$0xff]  ;;  %v5723_v55 = vpack.c.bf16 %v438_v35, %v434_v32  ;;  %v440_v59 = vld [vmem:[#allocation5 + $0x100] sm:$0xff] }
  0x4e   :  { %623 = vmatmul.mubr.f32.vlgmr.msra.gmra.mrb[0].mxu0 %v6783_v1  ;;  %6922 = vst [vmem:[#allocation14_spill] sm:$0xff] %v5716_v34  ;;  %6923 = vst [vmem:[#allocation15_spill] sm:$0xff] %v5719_v48  ;;  %v5725_v58 = vpack.c.bf16 %v445_v43, %v441_v40  ;;  %v444_v63 = vld [vmem:[#allocation5 + $0x120] sm:$0xff]  ;;  %v5728_v0 = vpack.c.bf16 %v447_v47, %v443_v44  ;;  %v442_v7 = vld [vmem:[#allocation5 + $0x110] sm:$0xff] }
  0x4f   :  { %694 = vmatmul.mubr.f32.vlgmr.msra.gmra.mrb[0].mxu1 %v6783_v1  ;;  %3563 = vmatpush1.bf16.msra.mxu0 %v5679_v26  ;;  %6924 = vst [vmem:[#allocation16_spill] sm:$0xff] %v5723_v55  ;;  %v446_v9 = vld [vmem:[#allocation5 + $0x130] sm:$0xff]  ;;  %v5731_v10 = vpack.c.bf16 %v444_v63, %v440_v59  ;;  %v449_v23 = vld [vmem:[#allocation5 + $0x148] sm:$0xff]  ;;  %v451_v35 = vld [vmem:[#allocation5 + $0x158] sm:$0xff] }
  0x50   :  { %3627 = vmatpush1.bf16.msra.mxu1 %v5683_v28  ;;  %3565 = vmatprep.subr.bf16.mxu0 %v5685_v30  ;;  %6925 = vst [vmem:[#allocation17_spill] sm:$0xff] %v5725_v58  ;;  %6926 = vst [vmem:[#allocation18_spill] sm:$0xff] %v5728_v0  ;;  %v5735_v21 = vpack.c.bf16 %v446_v9, %v442_v7  ;;  %v453_v32 = vld [vmem:[#allocation5 + $0x168] sm:$0xff]  ;;  %v455_v43 = vld [vmem:[#allocation5 + $0x178] sm:$0xff] }
  0x51   :  { %3629 = vmatprep.subr.bf16.mxu1 %v5688_v39  ;;  %792 = vmatprep.mubr.f32.mxu0 %v6783_v1  ;;  %6927 = vst [vmem:[#allocation19_spill] sm:$0xff] %v5731_v10  ;;  %v5740_v40 = vpack.c.bf16 %v453_v32, %v449_v23  ;;  %v448_v44 = vld [vmem:[#allocation5 + $0x140] sm:$0xff]  ;;  %v5742_v59 = vpack.c.bf16 %v455_v43, %v451_v35  ;;  %v450_v7 = vld [vmem:[#allocation5 + $0x150] sm:$0xff]  ;;  %v461_v23 = vld [vmem:[#allocation5 + $0x1a8] sm:$0xff] }
  0x52   :  { %863 = vmatprep.mubr.f32.mxu1 %v6783_v1  ;;  %6928 = vst [vmem:[#allocation20_spill] sm:$0xff] %v5735_v21  ;;  %v452_v47 = vld [vmem:[#allocation5 + $0x160] sm:$0xff]  ;;  %v454_v9 = vld [vmem:[#allocation5 + $0x170] sm:$0xff]  ;;  %v459_v32 = vld [vmem:[#allocation5 + $0x198] sm:$0xff] }
  0x53   :  { %3567 = vmatpush1.bf16.msra.mxu0 %v5693_v49  ;;  %6929 = vst [vmem:[#allocation21_spill] sm:$0xff] %v5740_v40  ;;  %6930 = vst [vmem:[#allocation22_spill] sm:$0xff] %v5742_v59  ;;  %v5744_v63 = vpack.c.bf16 %v452_v47, %v448_v44  ;;  %v5747_v1 = vpack.c.bf16 %v454_v9, %v450_v7  ;;  %v463_v35 = vld [vmem:[#allocation5 + $0x1b8] sm:$0xff]  ;;  %v456_v43 = vld [vmem:[#allocation5 + $0x180] sm:$0xff] }
  0x54   :  { %3631 = vmatpush1.bf16.msra.mxu1 %v5697_v52  ;;  %3569 = vmatprep.subr.bf16.mxu0 %v5699_v53  ;;  %v460_v44 = vld [vmem:[#allocation5 + $0x1a0] sm:$0xff]  ;;  %v5754_v47 = vpack.c.bf16 %v463_v35, %v459_v32  ;;  %v458_v7 = vld [vmem:[#allocation5 + $0x190] sm:$0xff]  ;;  %v471_v32 = vld [vmem:[#allocation5 + $0x1f8] sm:$0xff] }
  0x55   :  { %3633 = vmatprep.subr.bf16.mxu1 %v5702_v60  ;;  %6931 = vst [vmem:[#allocation23_spill] sm:$0xff] %v5744_v63  ;;  %6932 = vst [vmem:[#allocation24_spill] sm:$0xff] %v5747_v1  ;;  %v462_v9 = vld [vmem:[#allocation5 + $0x1b0] sm:$0xff]  ;;  %v464_v35 = vld [vmem:[#allocation5 + $0x1c0] sm:$0xff] }
  0x56   :  { %6934 = vst [vmem:[#allocation26_spill] sm:$0xff] %v5754_v47 }
  0x57   :  { %3571 = vmatpush1.bf16.msra.mxu0 %v5707_v15 }
  0x58   :  { %3635 = vmatpush1.bf16.msra.mxu1 %v5711_v17  ;;  %3573 = vmatprep.subr.bf16.mxu0 %v5713_v19 }
  0x59   :  { %3637 = vmatprep.subr.bf16.mxu1 %v5716_v34 }
  0x5b   :  { %3575 = vmatpush1.bf16.msra.mxu0 %v5719_v48 }
  0x5c   :  { %3639 = vmatpush1.bf16.msra.mxu1 %v5723_v55  ;;  %3577 = vmatprep.subr.bf16.mxu0 %v5725_v58  ;;  %v523_v58 = vld [vmem:[#allocation5 + $0x398] sm:$0xff] }
  0x5d   :  { %3641 = vmatprep.subr.bf16.mxu1 %v5728_v0  ;;  %v5756_v0 = vpack.c.bf16 %v460_v44, %v456_v43  ;;  %v468_v43 = vld [vmem:[#allocation5 + $0x1e0] sm:$0xff]  ;;  %v527_v55 = vld [vmem:[#allocation5 + $0x3b8] sm:$0xff] }
  0x5f   :  { %3579 = vmatpush1.bf16.msra.mxu0 %v5731_v10  ;;  %6935 = vst [vmem:[#allocation27_spill] sm:$0xff] %v5756_v0 }
  0x60   :  { %3643 = vmatpush1.bf16.msra.mxu1 %v5735_v21  ;;  %3581 = vmatprep.subr.bf16.mxu0 %v5740_v40  ;;  %v457_v21 = vld [vmem:[#allocation5 + $0x188] sm:$0xff]  ;;  %v5768_v40 = vpack.c.bf16 %v468_v43, %v464_v35  ;;  %v476_v35 = vld [vmem:[#allocation5 + $0x220] sm:$0xff] }
  0x61   :  { %3645 = vmatprep.subr.bf16.mxu1 %v5742_v59  ;;  %v5752_v10 = vpack.c.bf16 %v461_v23, %v457_v21  ;;  %v5759_v59 = vpack.c.bf16 %v462_v9, %v458_v7  ;;  %v469_v21 = vld [vmem:[#allocation5 + $0x1e8] sm:$0xff]  ;;  %v467_v23 = vld [vmem:[#allocation5 + $0x1d8] sm:$0xff]  ;;  %v466_v7 = vld [vmem:[#allocation5 + $0x1d0] sm:$0xff] }
  0x62   :  { %v5766_v44 = vpack.c.bf16 %v471_v32, %v467_v23  ;;  %6939 = vst [vmem:[#allocation31_spill] sm:$0xff] %v5768_v40  ;;  %v470_v9 = vld [vmem:[#allocation5 + $0x1f0] sm:$0xff]  ;;  %v479_v23 = vld [vmem:[#allocation5 + $0x238] sm:$0xff]  ;;  %v472_v32 = vld [vmem:[#allocation5 + $0x200] sm:$0xff] }
  0x63   :  { %3583 = vmatpush1.bf16.msra.mxu0 %v5744_v63  ;;  %6933 = vst [vmem:[#allocation25_spill] sm:$0xff] %v5752_v10  ;;  %6936 = vst [vmem:[#allocation28_spill] sm:$0xff] %v5759_v59 }
  0x64   :  { %3647 = vmatpush1.bf16.msra.mxu1 %v5747_v1  ;;  %3585 = vmatprep.subr.bf16.mxu0 %v5752_v10  ;;  %v465_v1 = vld [vmem:[#allocation5 + $0x1c8] sm:$0xff]  ;;  %6938 = vst [vmem:[#allocation30_spill] sm:$0xff] %v5766_v44  ;;  %v5780_v10 = vpack.c.bf16 %v476_v35, %v472_v32  ;;  %v484_v32 = vld [vmem:[#allocation5 + $0x260] sm:$0xff] }
  0x65   :  { %3649 = vmatprep.subr.bf16.mxu1 %v5754_v47  ;;  %v5764_v63 = vpack.c.bf16 %v469_v21, %v465_v1  ;;  %v5771_v47 = vpack.c.bf16 %v470_v9, %v466_v7  ;;  %v477_v1 = vld [vmem:[#allocation5 + $0x228] sm:$0xff]  ;;  %v475_v21 = vld [vmem:[#allocation5 + $0x218] sm:$0xff]  ;;  %v474_v7 = vld [vmem:[#allocation5 + $0x210] sm:$0xff] }
  0x66   :  { %v5778_v43 = vpack.c.bf16 %v479_v23, %v475_v21  ;;  %6943 = vst [vmem:[#allocation35_spill] sm:$0xff] %v5780_v10  ;;  %v478_v9 = vld [vmem:[#allocation5 + $0x230] sm:$0xff]  ;;  %v487_v21 = vld [vmem:[#allocation5 + $0x278] sm:$0xff]  ;;  %v480_v23 = vld [vmem:[#allocation5 + $0x240] sm:$0xff] }
  0x67   :  { %3587 = vmatpush1.bf16.msra.mxu0 %v5756_v0  ;;  %6937 = vst [vmem:[#allocation29_spill] sm:$0xff] %v5764_v63  ;;  %6940 = vst [vmem:[#allocation32_spill] sm:$0xff] %v5771_v47 }
  0x68   :  { %3651 = vmatpush1.bf16.msra.mxu1 %v5759_v59  ;;  %3589 = vmatprep.subr.bf16.mxu0 %v5764_v63  ;;  %v473_v59 = vld [vmem:[#allocation5 + $0x208] sm:$0xff]  ;;  %6942 = vst [vmem:[#allocation34_spill] sm:$0xff] %v5778_v43  ;;  %v5792_v63 = vpack.c.bf16 %v484_v32, %v480_v23  ;;  %v492_v23 = vld [vmem:[#allocation5 + $0x2a0] sm:$0xff] }
  0x69   :  { %3653 = vmatprep.subr.bf16.mxu1 %v5766_v44  ;;  %v5776_v0 = vpack.c.bf16 %v477_v1, %v473_v59  ;;  %v5783_v44 = vpack.c.bf16 %v478_v9, %v474_v7  ;;  %v485_v59 = vld [vmem:[#allocation5 + $0x268] sm:$0xff]  ;;  %v483_v1 = vld [vmem:[#allocation5 + $0x258] sm:$0xff]  ;;  %v482_v7 = vld [vmem:[#allocation5 + $0x250] sm:$0xff] }
  0x6a   :  { %v5790_v35 = vpack.c.bf16 %v487_v21, %v483_v1  ;;  %6947 = vst [vmem:[#allocation39_spill] sm:$0xff] %v5792_v63  ;;  %v486_v9 = vld [vmem:[#allocation5 + $0x270] sm:$0xff]  ;;  %v495_v1 = vld [vmem:[#allocation5 + $0x2b8] sm:$0xff]  ;;  %v488_v21 = vld [vmem:[#allocation5 + $0x280] sm:$0xff] }
  0x6b   :  { %3591 = vmatpush1.bf16.msra.mxu0 %v5768_v40  ;;  %6941 = vst [vmem:[#allocation33_spill] sm:$0xff] %v5776_v0  ;;  %6944 = vst [vmem:[#allocation36_spill] sm:$0xff] %v5783_v44 }
  0x6c   :  { %3655 = vmatpush1.bf16.msra.mxu1 %v5771_v47  ;;  %3593 = vmatprep.subr.bf16.mxu0 %v5776_v0  ;;  %v481_v47 = vld [vmem:[#allocation5 + $0x248] sm:$0xff]  ;;  %6946 = vst [vmem:[#allocation38_spill] sm:$0xff] %v5790_v35  ;;  %v5804_v0 = vpack.c.bf16 %v492_v23, %v488_v21  ;;  %v500_v21 = vld [vmem:[#allocation5 + $0x2e0] sm:$0xff] }
  0x6d   :  { %3657 = vmatprep.subr.bf16.mxu1 %v5778_v43  ;;  %v5788_v40 = vpack.c.bf16 %v485_v59, %v481_v47  ;;  %v5795_v43 = vpack.c.bf16 %v486_v9, %v482_v7  ;;  %v493_v47 = vld [vmem:[#allocation5 + $0x2a8] sm:$0xff]  ;;  %v491_v59 = vld [vmem:[#allocation5 + $0x298] sm:$0xff]  ;;  %v490_v7 = vld [vmem:[#allocation5 + $0x290] sm:$0xff] }
  0x6e   :  { %v5802_v32 = vpack.c.bf16 %v495_v1, %v491_v59  ;;  %6951 = vst [vmem:[#allocation43_spill] sm:$0xff] %v5804_v0  ;;  %v494_v9 = vld [vmem:[#allocation5 + $0x2b0] sm:$0xff]  ;;  %v503_v59 = vld [vmem:[#allocation5 + $0x2f8] sm:$0xff]  ;;  %v496_v1 = vld [vmem:[#allocation5 + $0x2c0] sm:$0xff] }
  0x6f   :  { %3595 = vmatpush1.bf16.msra.mxu0 %v5780_v10  ;;  %6945 = vst [vmem:[#allocation37_spill] sm:$0xff] %v5788_v40  ;;  %6948 = vst [vmem:[#allocation40_spill] sm:$0xff] %v5795_v43 }
  0x70   :  { %3659 = vmatpush1.bf16.msra.mxu1 %v5783_v44  ;;  %3597 = vmatprep.subr.bf16.mxu0 %v5788_v40  ;;  %v489_v44 = vld [vmem:[#allocation5 + $0x288] sm:$0xff]  ;;  %6950 = vst [vmem:[#allocation42_spill] sm:$0xff] %v5802_v32  ;;  %v5816_v40 = vpack.c.bf16 %v500_v21, %v496_v1  ;;  %v508_v1 = vld [vmem:[#allocation5 + $0x320] sm:$0xff] }
  0x71   :  { %3661 = vmatprep.subr.bf16.mxu1 %v5790_v35  ;;  %v5800_v10 = vpack.c.bf16 %v493_v47, %v489_v44  ;;  %v5807_v35 = vpack.c.bf16 %v494_v9, %v490_v7  ;;  %v501_v44 = vld [vmem:[#allocation5 + $0x2e8] sm:$0xff]  ;;  %v499_v47 = vld [vmem:[#allocation5 + $0x2d8] sm:$0xff]  ;;  %v498_v7 = vld [vmem:[#allocation5 + $0x2d0] sm:$0xff] }
  0x72   :  { %v5814_v23 = vpack.c.bf16 %v503_v59, %v499_v47  ;;  %6955 = vst [vmem:[#allocation47_spill] sm:$0xff] %v5816_v40  ;;  %v502_v9 = vld [vmem:[#allocation5 + $0x2f0] sm:$0xff]  ;;  %v511_v47 = vld [vmem:[#allocation5 + $0x338] sm:$0xff]  ;;  %v504_v59 = vld [vmem:[#allocation5 + $0x300] sm:$0xff] }
  0x73   :  { %3599 = vmatpush1.bf16.msra.mxu0 %v5792_v63  ;;  %6949 = vst [vmem:[#allocation41_spill] sm:$0xff] %v5800_v10  ;;  %6952 = vst [vmem:[#allocation44_spill] sm:$0xff] %v5807_v35 }
  0x74   :  { %3663 = vmatpush1.bf16.msra.mxu1 %v5795_v43  ;;  %3601 = vmatprep.subr.bf16.mxu0 %v5800_v10  ;;  %v497_v43 = vld [vmem:[#allocation5 + $0x2c8] sm:$0xff]  ;;  %6954 = vst [vmem:[#allocation46_spill] sm:$0xff] %v5814_v23  ;;  %v5828_v10 = vpack.c.bf16 %v508_v1, %v504_v59  ;;  %v516_v59 = vld [vmem:[#allocation5 + $0x360] sm:$0xff] }
  0x75   :  { %3665 = vmatprep.subr.bf16.mxu1 %v5802_v32  ;;  %v5812_v63 = vpack.c.bf16 %v501_v44, %v497_v43  ;;  %v5819_v32 = vpack.c.bf16 %v502_v9, %v498_v7  ;;  %v509_v43 = vld [vmem:[#allocation5 + $0x328] sm:$0xff]  ;;  %v507_v44 = vld [vmem:[#allocation5 + $0x318] sm:$0xff]  ;;  %v506_v7 = vld [vmem:[#allocation5 + $0x310] sm:$0xff] }
  0x76   :  { %v5826_v21 = vpack.c.bf16 %v511_v47, %v507_v44  ;;  %6959 = vst [vmem:[#allocation51_spill] sm:$0xff] %v5828_v10  ;;  %v510_v9 = vld [vmem:[#allocation5 + $0x330] sm:$0xff]  ;;  %v519_v44 = vld [vmem:[#allocation5 + $0x378] sm:$0xff]  ;;  %v512_v47 = vld [vmem:[#allocation5 + $0x340] sm:$0xff] }
  0x77   :  { %3603 = vmatpush1.bf16.msra.mxu0 %v5804_v0  ;;  %6953 = vst [vmem:[#allocation45_spill] sm:$0xff] %v5812_v63  ;;  %6956 = vst [vmem:[#allocation48_spill] sm:$0xff] %v5819_v32 }
  0x78   :  { %3667 = vmatpush1.bf16.msra.mxu1 %v5807_v35  ;;  %3605 = vmatprep.subr.bf16.mxu0 %v5812_v63  ;;  %v505_v35 = vld [vmem:[#allocation5 + $0x308] sm:$0xff]  ;;  %6958 = vst [vmem:[#allocation50_spill] sm:$0xff] %v5826_v21  ;;  %v5840_v63 = vpack.c.bf16 %v516_v59, %v512_v47  ;;  %v522_v47 = vld [vmem:[#allocation5 + $0x390] sm:$0xff] }
  0x79   :  { %3669 = vmatprep.subr.bf16.mxu1 %v5814_v23  ;;  %v5824_v0 = vpack.c.bf16 %v509_v43, %v505_v35  ;;  %v5831_v23 = vpack.c.bf16 %v510_v9, %v506_v7  ;;  %v517_v35 = vld [vmem:[#allocation5 + $0x368] sm:$0xff]  ;;  %v515_v43 = vld [vmem:[#allocation5 + $0x358] sm:$0xff]  ;;  %v514_v7 = vld [vmem:[#allocation5 + $0x350] sm:$0xff] }
  0x7a   :  { %v5838_v1 = vpack.c.bf16 %v519_v44, %v515_v43  ;;  %6963 = vst [vmem:[#allocation55_spill] sm:$0xff] %v5840_v63  ;;  %v518_v9 = vld [vmem:[#allocation5 + $0x370] sm:$0xff]  ;;  %v520_v43 = vld [vmem:[#allocation5 + $0x380] sm:$0xff] }
  0x7b   :  { %3607 = vmatpush1.bf16.msra.mxu0 %v5816_v40  ;;  %6957 = vst [vmem:[#allocation49_spill] sm:$0xff] %v5824_v0  ;;  %6960 = vst [vmem:[#allocation52_spill] sm:$0xff] %v5831_v23  ;;  %v524_v44 = vld [vmem:[#allocation5 + $0x3a0] sm:$0xff] }
  0x7c   :  { %3671 = vmatpush1.bf16.msra.mxu1 %v5819_v32  ;;  %3609 = vmatprep.subr.bf16.mxu0 %v5824_v0  ;;  %v513_v32 = vld [vmem:[#allocation5 + $0x348] sm:$0xff]  ;;  %6962 = vst [vmem:[#allocation54_spill] sm:$0xff] %v5838_v1  ;;  %v5852_v59 = vpack.c.bf16 %v524_v44, %v520_v43  ;;  %v534_v43 = vld [vmem:[#allocation5 + $0x3f0] sm:$0xff] }
  0x7d   :  { %3673 = vmatprep.subr.bf16.mxu1 %v5826_v21  ;;  %v5836_v40 = vpack.c.bf16 %v517_v35, %v513_v32  ;;  %v521_v0 = vld [vmem:[#allocation5 + $0x388] sm:$0xff]  ;;  %v5849_v35 = vpack.c.bf16 %v527_v55, %v523_v58  ;;  %v531_v55 = vld [vmem:[#allocation5 + $0x3d8] sm:$0xff] }
  0x7e   :  { %v525_v21 = vld [vmem:[#allocation5 + $0x3a8] sm:$0xff]  ;;  %6967 = vst [vmem:[#allocation59_spill] sm:$0xff] %v5852_v59  ;;  %v535_v58 = vld [vmem:[#allocation5 + $0x3f8] sm:$0xff] }
  0x7f   :  { %3611 = vmatpush1.bf16.msra.mxu0 %v5828_v10  ;;  %6961 = vst [vmem:[#allocation53_spill] sm:$0xff] %v5836_v40  ;;  %v5843_v10 = vpack.c.bf16 %v518_v9, %v514_v7  ;;  %v5847_v32 = vpack.c.bf16 %v525_v21, %v521_v0  ;;  %6966 = vst [vmem:[#allocation58_spill] sm:$0xff] %v5849_v35  ;;  %v526_v7 = vld [vmem:[#allocation5 + $0x3b0] sm:$0xff]  ;;  %v529_v9 = vld [vmem:[#allocation5 + $0x3c8] sm:$0xff] }
  0x80   :  { %3675 = vmatpush1.bf16.msra.mxu1 %v5831_v23  ;;  %3613 = vmatprep.subr.bf16.mxu0 %v5836_v40  ;;  %v533_v40 = vld [vmem:[#allocation5 + $0x3e8] sm:$0xff]  ;;  %v528_v21 = vld [vmem:[#allocation5 + $0x3c0] sm:$0xff] }
  0x81   :  { %6964 = vst [vmem:[#allocation56_spill] sm:$0xff] %v5843_v10  ;;  %3677 = vmatprep.subr.bf16.mxu1 %v5838_v1  ;;  %6965 = vst [vmem:[#allocation57_spill] sm:$0xff] %v5847_v32  ;;  %v5856_v1 = vpack.c.bf16 %v526_v7, %v522_v47  ;;  %v5858_v0 = vpack.c.bf16 %v533_v40, %v529_v9  ;;  %v532_v23 = vld [vmem:[#allocation5 + $0x3e0] sm:$0xff]  ;;  %v73_v40 = vlaneseq }
  0x82   :  { %v5863_v44 = vpack.c.bf16 %v532_v23, %v528_v21 }
  0x83   :  { %3615 = vmatpush1.bf16.msra.mxu0 %v5840_v63  ;;  %6968 = vst [vmem:[#allocation60_spill] sm:$0xff] %v5856_v1  ;;  %6969 = vst [vmem:[#allocation61_spill] sm:$0xff] %v5858_v0  ;;  %v5860_v63 = vpack.c.bf16 %v535_v58, %v531_v55  ;;  %v5874_v7 = vshrl.u32 %v73_v40, 7 }
  0x84   :  { %3679 = vmatpush1.bf16.msra.mxu1 %v5843_v10  ;;  %3617 = vmatprep.subr.bf16.mxu0 %v5847_v32  ;;  %v530_v10 = vld [vmem:[#allocation5 + $0x3d0] sm:$0xff]  ;;  %6971 = vst [vmem:[#allocation63_spill] sm:$0xff] %v5863_v44 }
  0x85   :  { %3681 = vmatprep.subr.bf16.mxu1 %v5849_v35  ;;  %6970 = vst [vmem:[#allocation62_spill] sm:$0xff] %v5860_v63  ;;  %v5867_v47 = vpack.c.bf16 %v534_v43, %v530_v10  ;;  %6973 = vst [vmem:[#allocation65_spill] sm:$0xff] %v5874_v7  ;;  %v6879_v23 = vsub.s32 0, %v5874_v7  ;;  %v71_v10 = vld [vmem:[%s6776_s2] sm:$0xf]  ;;  %v6880_v9 = vsub.s32 1, %v5874_v7 }
  0x86   :  { %v6887_v43 = vsub.s32 3, %v5874_v7 }
  0x87   :  { %3619 = vmatpush1.bf16.msra.mxu0 %v5852_v59  ;;  %6972 = vst [vmem:[#allocation64_spill] sm:$0xff] %v5867_v47  ;;  %v5883_v55 = vrot.slane %v71_v10, %v6879_v23  ;;  %v5887_v58 = vrot.slane %v71_v10, %v6880_v9  ;;  %v6896_v9 = vsub.s32 2, %v5874_v7 }
  0x88   :  { %3683 = vmatpush1.bf16.msra.mxu1 %v5856_v1  ;;  %3621 = vmatprep.subr.bf16.mxu0 %v5858_v0  ;;  %v5894_v23 = vrot.slane %v71_v10, %v6887_v43 }
  0x89   :  { %3685 = vmatprep.subr.bf16.mxu1 %v5860_v63  ;;  %6974 = vst [vmem:[#allocation66_spill] sm:$0xff] %v5883_v55  ;;  %6975 = vst [vmem:[#allocation67_spill] sm:$0xff] %v5887_v58 }
  0x8a   :  { %6976 = vst [vmem:[#allocation68_spill] sm:$0xff] %v5894_v23 }
  0x8b   :  { %3623 = vmatpush1.bf16.msra.mxu0 %v5863_v44 }
  0x8c   :  { %3687 = vmatpush1.bf16.msra.mxu1 %v5867_v47  ;;  %3689 = vmatprep.subr.bf16.mxu0 %v5529_v11 }
  0x8d   :  { %3721 = vmatprep.subr.bf16.mxu1 %v5531_v12 }
 0x121   :  { %v624_v21 = vpop.f32.mrb[0].mxu0 }
 0x122   :  { %v5056_v40 = vadd.f32 %v624_v21, %v5883_v55  ;;  %v695_v12 = vpop.f32.mrb[0].mxu1  ;;  %v626_v11 = vpop.f32.mrb[1].mxu0  ;;  %v5900_v21 = vrot.slane %v71_v10, %v6896_v9  ;;  %v6992_v9 = vld [vmem:[#allocation30_spill] sm:$0xff] }
 0x123   :  { %v5057_v47 = vadd.f32 %v626_v11, %v5887_v58  ;;  %v697_v44 = vpop.f32.mrb[1].mxu1 }
 0x124   :  { %v3395_v63 = vmul.f32 -1.442695, %v5056_v40  ;;  %v5073_v1 = vadd.f32 %v697_v44, %v5894_v23  ;;  %v5072_v11 = vadd.f32 %v695_v12, %v5900_v21 }
 0x125   :  { %v3396_v0 = vmul.f32 -1.442695, %v5057_v47 }
 0x126   :  { %5127 = vpow2.f32 %v3395_v63  ;;  %v3397_v55 = vmul.f32 -1.442695, %v5073_v1 }
 0x127   :  { %5129 = vpow2.f32 %v3396_v0 }
 0x128   :  { %5131 = vpow2.f32 %v3397_v55  ;;  %v6981_v55 = vld [vmem:[#allocation19_spill] sm:$0xff] }
 0x129   :  { %5133 = vtanh.f32 %v5072_v11  ;;  %v6983_v11 = vld [vmem:[#allocation21_spill] sm:$0xff] }
 0x130   :  { %v5128_v58 = vpop.eup %5127 }
 0x131   :  { %v5130_v40 = vpop.eup %5129  ;;  %v710_v47 = vadd.f32 1.0, %v5128_v58 }
 0x132   :  { %v711_v43 = vadd.f32 1.0, %v5130_v40  ;;  %v5132_v63 = vpop.eup %5131  ;;  %v6984_v40 = vld [vmem:[#allocation22_spill] sm:$0xff] }
 0x133   :  { %5135 = vrcp.f32 %v710_v47  ;;  %v5134_v59 = vpop.eup %5133  ;;  %v720_v23 = vadd.f32 1.0, %v5132_v63  ;;  %v6985_v47 = vld [vmem:[#allocation23_spill] sm:$0xff]  ;;  %v6986_v63 = vld [vmem:[#allocation24_spill] sm:$0xff] }
 0x134   :  { %5137 = vrcp.f32 %v711_v43  ;;  %v6982_v43 = vld [vmem:[#allocation20_spill] sm:$0xff] }
 0x135   :  { %5139 = vrcp.f32 %v720_v23  ;;  %v6980_v23 = vld [vmem:[#allocation18_spill] sm:$0xff] }
 0x13d   :  { %v5136_v0 = vpop.eup %5135 }
 0x13e   :  { %v5138_v35 = vpop.eup %5137  ;;  %v724_v44 = vmul.f32 %v5136_v0, %v5134_v59  ;;  %v6977_v59 = vmov 0.0   ;;  %v6987_v0 = vld [vmem:[#allocation25_spill] sm:$0xff] }
 0x13f   :  { %v723_v7 = vmul.f32 0.0, %v5138_v35  ;;  %v5140_v12 = vpop.eup %5139  ;;  %v6978_v35 = vld [vmem:[#allocation16_spill] sm:$0xff] }
 0x141   :  { %v5903_v10 = vadd.f32 %v724_v44, %v723_v7  ;;  %v6979_v7 = vld [vmem:[#allocation17_spill] sm:$0xff]  ;;  %v6988_v44 = vld [vmem:[#allocation26_spill] sm:$0xff] }
 0x143   :  { %5141 = vtanh.f32 %v5903_v10 }
 0x14d   :  { %v5142_v1 = vpop.eup %5141 }
 0x14e   :  { %v727_v58 = vmul.f32 %v5142_v1, %v5140_v12  ;;  %v6989_v12 = vld [vmem:[#allocation27_spill] sm:$0xff]  ;;  %v6990_v1 = vld [vmem:[#allocation28_spill] sm:$0xff] }
 0x150   :  { %793 = vmatmul.mubr.f32.vlgmr.msra.gmra.mrb[16].mxu0 %v727_v58  ;;  %864 = vmatmul.mubr.f32.vlgmr.msra.gmra.mrb[16].mxu1 %v727_v58 }
 0x151   :  { %3691 = vmatpush1.bf16.msra.mxu0 %v5533_v16  ;;  %3723 = vmatpush1.bf16.msra.mxu1 %v5542_v20 }
 0x152   :  { %3693 = vmatprep.subr.bf16.mxu0 %v5545_v24  ;;  %3725 = vmatprep.subr.bf16.mxu1 %v5547_v25 }
 0x153   :  { %962 = vmatprep.mubr.f32.mxu0 %v6977_v59  ;;  %1033 = vmatprep.mubr.f32.mxu1 %v6977_v59 }
 0x155   :  { %3695 = vmatpush1.bf16.msra.mxu0 %v5551_v29  ;;  %3727 = vmatpush1.bf16.msra.mxu1 %v5558_v33 }
 0x156   :  { %3697 = vmatprep.subr.bf16.mxu0 %v5562_v37  ;;  %3729 = vmatprep.subr.bf16.mxu1 %v5564_v38 }
 0x159   :  { %3699 = vmatpush1.bf16.msra.mxu0 %v5568_v42  ;;  %3731 = vmatpush1.bf16.msra.mxu1 %v5575_v46 }
 0x15a   :  { %3701 = vmatprep.subr.bf16.mxu0 %v5579_v50  ;;  %3733 = vmatprep.subr.bf16.mxu1 %v5583_v54 }
 0x15d   :  { %3703 = vmatpush1.bf16.msra.mxu0 %v5587_v57  ;;  %3735 = vmatpush1.bf16.msra.mxu1 %v5591_v61 }
 0x15e   :  { %3705 = vmatprep.subr.bf16.mxu0 %v5598_v2  ;;  %3737 = vmatprep.subr.bf16.mxu1 %v5602_v5 }
 0x161   :  { %3707 = vmatpush1.bf16.msra.mxu0 %v5606_v8  ;;  %3739 = vmatpush1.bf16.msra.mxu1 %v5610_v13 }
 0x162   :  { %3709 = vmatprep.subr.bf16.mxu0 %v5617_v18  ;;  %3741 = vmatprep.subr.bf16.mxu1 %v5621_v22 }
 0x165   :  { %3711 = vmatpush1.bf16.msra.mxu0 %v5625_v27  ;;  %3743 = vmatpush1.bf16.msra.mxu1 %v5629_v31 }
 0x166   :  { %3713 = vmatprep.subr.bf16.mxu0 %v5636_v36  ;;  %3745 = vmatprep.subr.bf16.mxu1 %v5640_v41 }
 0x169   :  { %3715 = vmatpush1.bf16.msra.mxu0 %v5644_v45  ;;  %3747 = vmatpush1.bf16.msra.mxu1 %v5651_v51 }
 0x16a   :  { %3717 = vmatprep.subr.bf16.mxu0 %v5655_v56  ;;  %3749 = vmatprep.subr.bf16.mxu1 %v5659_v62 }
 0x16d   :  { %3719 = vmatpush1.bf16.msra.mxu0 %v5663_v3  ;;  %3751 = vmatpush1.bf16.msra.mxu1 %v5667_v4 }
 0x16e   :  { %3753 = vmatprep.subr.bf16.mxu0 %v5669_v6  ;;  %3817 = vmatprep.subr.bf16.mxu1 %v5673_v14 }
 0x170   :  { %963 = vmatmul.mubr.f32.vlgmr.msra.gmra.mrb[2].mxu0 %v727_v58  ;;  %1034 = vmatmul.mubr.f32.vlgmr.msra.gmra.mrb[2].mxu1 %v727_v58  ;;  %v6991_v58 = vld [vmem:[#allocation29_spill] sm:$0xff] }
 0x171   :  { %3755 = vmatpush1.bf16.msra.mxu0 %v5679_v26  ;;  %3819 = vmatpush1.bf16.msra.mxu1 %v5683_v28 }
 0x172   :  { %3757 = vmatprep.subr.bf16.mxu0 %v5685_v30  ;;  %3821 = vmatprep.subr.bf16.mxu1 %v5688_v39 }
 0x175   :  { %3759 = vmatpush1.bf16.msra.mxu0 %v5693_v49  ;;  %3823 = vmatpush1.bf16.msra.mxu1 %v5697_v52 }
 0x176   :  { %3761 = vmatprep.subr.bf16.mxu0 %v5699_v53  ;;  %3825 = vmatprep.subr.bf16.mxu1 %v5702_v60 }
 0x179   :  { %3763 = vmatpush1.bf16.msra.mxu0 %v5707_v15  ;;  %3827 = vmatpush1.bf16.msra.mxu1 %v5711_v17 }
 0x17a   :  { %3765 = vmatprep.subr.bf16.mxu0 %v5713_v19  ;;  %3829 = vmatprep.subr.bf16.mxu1 %v5716_v34 }
 0x17d   :  { %3767 = vmatpush1.bf16.msra.mxu0 %v5719_v48  ;;  %3831 = vmatpush1.bf16.msra.mxu1 %v6978_v35 }
 0x17e   :  { %3769 = vmatprep.subr.bf16.mxu0 %v6979_v7  ;;  %3833 = vmatprep.subr.bf16.mxu1 %v6980_v23 }
 0x181   :  { %3771 = vmatpush1.bf16.msra.mxu0 %v6981_v55  ;;  %3835 = vmatpush1.bf16.msra.mxu1 %v6982_v43  ;;  %v6993_v43 = vld [vmem:[#allocation31_spill] sm:$0xff] }
 0x182   :  { %3773 = vmatprep.subr.bf16.mxu0 %v6983_v11  ;;  %3837 = vmatprep.subr.bf16.mxu1 %v6984_v40  ;;  %v6994_v11 = vld [vmem:[#allocation32_spill] sm:$0xff]  ;;  %v6995_v40 = vld [vmem:[#allocation33_spill] sm:$0xff] }
 0x185   :  { %3775 = vmatpush1.bf16.msra.mxu0 %v6985_v47  ;;  %3839 = vmatpush1.bf16.msra.mxu1 %v6986_v63  ;;  %v6996_v47 = vld [vmem:[#allocation34_spill] sm:$0xff]  ;;  %v6997_v63 = vld [vmem:[#allocation35_spill] sm:$0xff] }
 0x186   :  { %3777 = vmatprep.subr.bf16.mxu0 %v6987_v0  ;;  %3841 = vmatprep.subr.bf16.mxu1 %v6988_v44  ;;  %v6998_v0 = vld [vmem:[#allocation36_spill] sm:$0xff]  ;;  %v6999_v44 = vld [vmem:[#allocation37_spill] sm:$0xff] }
 0x189   :  { %3779 = vmatpush1.bf16.msra.mxu0 %v6989_v12  ;;  %3843 = vmatpush1.bf16.msra.mxu1 %v6990_v1  ;;  %v7000_v12 = vld [vmem:[#allocation38_spill] sm:$0xff]  ;;  %v7001_v1 = vld [vmem:[#allocation39_spill] sm:$0xff] }
 0x18a   :  { %3781 = vmatprep.subr.bf16.mxu0 %v6991_v58  ;;  %3845 = vmatprep.subr.bf16.mxu1 %v6992_v9  ;;  %v7002_v58 = vld [vmem:[#allocation40_spill] sm:$0xff]  ;;  %v7003_v9 = vld [vmem:[#allocation41_spill] sm:$0xff] }
 0x18d   :  { %3783 = vmatpush1.bf16.msra.mxu0 %v6993_v43  ;;  %3847 = vmatpush1.bf16.msra.mxu1 %v6994_v11  ;;  %v7004_v43 = vld [vmem:[#allocation42_spill] sm:$0xff]  ;;  %v7005_v11 = vld [vmem:[#allocation43_spill] sm:$0xff] }
 0x18e   :  { %3785 = vmatprep.subr.bf16.mxu0 %v6995_v40  ;;  %3849 = vmatprep.subr.bf16.mxu1 %v6996_v47  ;;  %v7006_v40 = vld [vmem:[#allocation44_spill] sm:$0xff]  ;;  %v7007_v47 = vld [vmem:[#allocation45_spill] sm:$0xff] }
 0x191   :  { %3787 = vmatpush1.bf16.msra.mxu0 %v6997_v63  ;;  %3851 = vmatpush1.bf16.msra.mxu1 %v6998_v0  ;;  %v7008_v63 = vld [vmem:[#allocation46_spill] sm:$0xff]  ;;  %v7009_v0 = vld [vmem:[#allocation47_spill] sm:$0xff] }
 0x192   :  { %3789 = vmatprep.subr.bf16.mxu0 %v6999_v44  ;;  %3853 = vmatprep.subr.bf16.mxu1 %v7000_v12  ;;  %v7010_v44 = vld [vmem:[#allocation48_spill] sm:$0xff]  ;;  %v7011_v12 = vld [vmem:[#allocation49_spill] sm:$0xff] }
 0x195   :  { %3791 = vmatpush1.bf16.msra.mxu0 %v7001_v1  ;;  %3855 = vmatpush1.bf16.msra.mxu1 %v7002_v58  ;;  %v7012_v1 = vld [vmem:[#allocation50_spill] sm:$0xff]  ;;  %v7013_v58 = vld [vmem:[#allocation51_spill] sm:$0xff] }
 0x196   :  { %3793 = vmatprep.subr.bf16.mxu0 %v7003_v9  ;;  %3857 = vmatprep.subr.bf16.mxu1 %v7004_v43  ;;  %v7014_v9 = vld [vmem:[#allocation52_spill] sm:$0xff]  ;;  %v7015_v43 = vld [vmem:[#allocation53_spill] sm:$0xff] }
 0x199   :  { %3795 = vmatpush1.bf16.msra.mxu0 %v7005_v11  ;;  %3859 = vmatpush1.bf16.msra.mxu1 %v7006_v40  ;;  %v7016_v11 = vld [vmem:[#allocation54_spill] sm:$0xff]  ;;  %v7017_v40 = vld [vmem:[#allocation55_spill] sm:$0xff] }
 0x19a   :  { %3797 = vmatprep.subr.bf16.mxu0 %v7007_v47  ;;  %3861 = vmatprep.subr.bf16.mxu1 %v7008_v63  ;;  %v7018_v47 = vld [vmem:[#allocation56_spill] sm:$0xff] }
 0x19d   :  { %3799 = vmatpush1.bf16.msra.mxu0 %v7009_v0  ;;  %3863 = vmatpush1.bf16.msra.mxu1 %v7010_v44  ;;  %v7019_v0 = vld [vmem:[#allocation58_spill] sm:$0xff]  ;;  %v7020_v44 = vld [vmem:[#allocation59_spill] sm:$0xff] }
 0x19e   :  { %3801 = vmatprep.subr.bf16.mxu0 %v7011_v12  ;;  %3865 = vmatprep.subr.bf16.mxu1 %v7012_v1  ;;  %v7021_v12 = vld [vmem:[#allocation60_spill] sm:$0xff]  ;;  %v7022_v1 = vld [vmem:[#allocation61_spill] sm:$0xff] }
 0x1a1   :  { %3803 = vmatpush1.bf16.msra.mxu0 %v7013_v58  ;;  %3867 = vmatpush1.bf16.msra.mxu1 %v7014_v9  ;;  %v7023_v58 = vld [vmem:[#allocation62_spill] sm:$0xff]  ;;  %v7024_v9 = vld [vmem:[#allocation63_spill] sm:$0xff] }
 0x1a2   :  { %3805 = vmatprep.subr.bf16.mxu0 %v7015_v43  ;;  %3869 = vmatprep.subr.bf16.mxu1 %v7016_v11  ;;  %v7025_v43 = vld [vmem:[#allocation64_spill] sm:$0xff]  ;;  %v7026_v11 = vld [vmem:[#allocation9_spill] sm:$0xff] }
 0x1a5   :  { %3807 = vmatpush1.bf16.msra.mxu0 %v7017_v40  ;;  %3871 = vmatpush1.bf16.msra.mxu1 %v7018_v47  ;;  %v7027_v40 = vld [vmem:[#allocation10_spill] sm:$0xff] }
 0x1a6   :  { %3809 = vmatprep.subr.bf16.mxu0 %v5847_v32  ;;  %3873 = vmatprep.subr.bf16.mxu1 %v7019_v0  ;;  %v536_v0 = vld [vmem:[%s6779_s5] sm:$0xf] }
 0x1a7   :  { %v7028_v32 = vld [vmem:[#allocation65_spill] sm:$0xff] }
 0x1a8   :  { %v7033_v7 = vsub.s32 3, %v7028_v32 }
 0x1a9   :  { %3811 = vmatpush1.bf16.msra.mxu0 %v7020_v44  ;;  %3875 = vmatpush1.bf16.msra.mxu1 %v7021_v12  ;;  %v7029_v44 = vsub.s32 0, %v7028_v32 }
 0x1aa   :  { %3813 = vmatprep.subr.bf16.mxu0 %v7022_v1  ;;  %3877 = vmatprep.subr.bf16.mxu1 %v7023_v58  ;;  %v7031_v1 = vsub.s32 1, %v7028_v32  ;;  %v6019_v35 = vrot.slane %v536_v0, %v7033_v7 }
 0x1ab   :  { %v6009_v47 = vrot.slane %v536_v0, %v7029_v44 }
 0x1ac   :  { %v6013_v12 = vrot.slane %v536_v0, %v7031_v1  ;;  %7034 = vst [vmem:[#allocation70_spill] sm:$0xff] %v6019_v35  ;;  %v7035_v1 = vsub.s32 2, %v7028_v32 }
 0x1ad   :  { %3815 = vmatpush1.bf16.msra.mxu0 %v7024_v9  ;;  %3879 = vmatpush1.bf16.msra.mxu1 %v7025_v43  ;;  %7030 = vst [vmem:[#allocation65_spill] sm:$0xff] %v6009_v47 }
 0x1ae   :  { %3881 = vmatprep.subr.bf16.mxu0 %v7026_v11  ;;  %3913 = vmatprep.subr.bf16.mxu1 %v7027_v40  ;;  %7032 = vst [vmem:[#allocation69_spill] sm:$0xff] %v6013_v12  ;;  %v6024_v48 = vrot.slane %v536_v0, %v7035_v1 }
 0x1b0   :  { %7036 = vst [vmem:[#allocation71_spill] sm:$0xff] %v6024_v48 }
 0x223   :  { %v794_v58 = vpop.f32.mrb[16].mxu0  ;;  %v865_v9 = vpop.f32.mrb[16].mxu1 }
 0x224   :  { %v870_v43 = vadd.f32 %v794_v58, %v6009_v47  ;;  %v796_v63 = vpop.f32.mrb[17].mxu0  ;;  %v867_v11 = vpop.f32.mrb[17].mxu1  ;;  %v872_v58 = vadd.f32 %v865_v9, %v6024_v48  ;;  %v7037_v9 = vld [vmem:[#allocation66_spill] sm:$0xff] }
 0x225   :  { %v871_v40 = vadd.f32 %v796_v63, %v6013_v12  ;;  %v873_v44 = vadd.f32 %v867_v11, %v6019_v35 }
 0x226   :  { %v3398_v55 = vmul.f32 -1.442695, %v870_v43 }
 0x227   :  { %v3399_v23 = vmul.f32 -1.442695, %v871_v40  ;;  %v3400_v34 = vmul.f32 -1.442695, %v873_v44 }
 0x228   :  { %5143 = vpow2.f32 %v3398_v55 }
 0x229   :  { %5145 = vpow2.f32 %v3399_v23 }
 0x22a   :  { %5147 = vpow2.f32 %v3400_v34 }
 0x22b   :  { %5149 = vtanh.f32 %v872_v58 }
 0x232   :  { %v5144_v47 = vpop.eup %5143 }
 0x233   :  { %v5146_v19 = vpop.eup %5145  ;;  %v880_v63 = vadd.f32 1.0, %v5144_v47 }
 0x234   :  { %v881_v43 = vadd.f32 1.0, %v5146_v19  ;;  %v5148_v7 = vpop.eup %5147  ;;  %v7038_v19 = vld [vmem:[#allocation67_spill] sm:$0xff] }
 0x235   :  { %5151 = vrcp.f32 %v880_v63  ;;  %v5150_v55 = vpop.eup %5149  ;;  %v890_v35 = vadd.f32 1.0, %v5148_v7 }
 0x236   :  { %5153 = vrcp.f32 %v881_v43 }
 0x237   :  { %5155 = vrcp.f32 %v890_v35 }
 0x23f   :  { %v5152_v23 = vpop.eup %5151 }
 0x240   :  { %v5154_v40 = vpop.eup %5153  ;;  %v894_v11 = vmul.f32 %v5152_v23, %v5150_v55  ;;  %v7039_v55 = vld [vmem:[#allocation68_spill] sm:$0xff] }
 0x241   :  { %v893_v32 = vmul.f32 0.0, %v5154_v40  ;;  %v5156_v23 = vpop.eup %5155 }
 0x243   :  { %v6027_v0 = vadd.f32 %v894_v11, %v893_v32  ;;  %v964_v44 = vpop.f32.mrb[2].mxu0  ;;  %v1035_v1 = vpop.f32.mrb[2].mxu1 }
 0x244   :  { %v5058_v48 = vadd.f32 %v964_v44, %v7037_v9  ;;  %v966_v47 = vpop.f32.mrb[3].mxu0  ;;  %v1037_v34 = vpop.f32.mrb[3].mxu1  ;;  %v5074_v32 = vadd.f32 %v1035_v1, %v5900_v21 }
 0x245   :  { %5157 = vtanh.f32 %v6027_v0  ;;  %v5059_v58 = vadd.f32 %v966_v47, %v7038_v19  ;;  %v5075_v7 = vadd.f32 %v1037_v34, %v7039_v55 }
 0x246   :  { %v3401_v63 = vmul.f32 -1.442695, %v5058_v48 }
 0x247   :  { %v3402_v43 = vmul.f32 -1.442695, %v5059_v58  ;;  %v3403_v11 = vmul.f32 -1.442695, %v5075_v7 }
 0x248   :  { %5159 = vpow2.f32 %v3401_v63 }
 0x249   :  { %5161 = vpow2.f32 %v3402_v43 }
 0x24a   :  { %5163 = vpow2.f32 %v3403_v11  ;;  %v7043_v11 = vld [vmem:[#allocation16_spill] sm:$0xff] }
 0x24b   :  { %5165 = vtanh.f32 %v5074_v32  ;;  %v7044_v32 = vld [vmem:[#allocation17_spill] sm:$0xff] }
 0x24f   :  { %v5158_v40 = vpop.eup %5157 }
 0x250   :  { %v897_v35 = vmul.f32 %v5158_v40, %v5156_v23 }
 0x252   :  { %v5160_v12 = vpop.eup %5159  ;;  %1132 = vmatprep.mubr.f32.mxu0 %v897_v35  ;;  %1203 = vmatprep.mubr.f32.mxu1 %v897_v35  ;;  %v7045_v35 = vld [vmem:[#allocation18_spill] sm:$0xff] }
 0x253   :  { %v5162_v44 = vpop.eup %5161  ;;  %v1050_v9 = vadd.f32 1.0, %v5160_v12 }
 0x254   :  { %v1051_v47 = vadd.f32 1.0, %v5162_v44  ;;  %v5164_v48 = vpop.eup %5163  ;;  %v7046_v44 = vld [vmem:[#allocation19_spill] sm:$0xff] }
 0x255   :  { %5167 = vrcp.f32 %v1050_v9  ;;  %v5166_v58 = vpop.eup %5165  ;;  %v1060_v55 = vadd.f32 1.0, %v5164_v48  ;;  %v7041_v9 = vld [vmem:[#allocation14_spill] sm:$0xff]  ;;  %v7048_v48 = vld [vmem:[#allocation21_spill] sm:$0xff] }
 0x256   :  { %5169 = vrcp.f32 %v1051_v47  ;;  %v7047_v47 = vld [vmem:[#allocation20_spill] sm:$0xff] }
 0x257   :  { %5171 = vrcp.f32 %v1060_v55  ;;  %v7042_v55 = vld [vmem:[#allocation15_spill] sm:$0xff] }
 0x25f   :  { %v5168_v63 = vpop.eup %5167 }
 0x260   :  { %v5170_v34 = vpop.eup %5169  ;;  %v1064_v43 = vmul.f32 %v5168_v63, %v5166_v58  ;;  %v7049_v58 = vld [vmem:[#allocation22_spill] sm:$0xff]  ;;  %v7050_v63 = vld [vmem:[#allocation23_spill] sm:$0xff] }
 0x261   :  { %v1063_v7 = vmul.f32 %v5170_v34, %v5903_v10  ;;  %v5172_v23 = vpop.eup %5171  ;;  %v7040_v10 = vld [vmem:[#allocation13_spill] sm:$0xff]  ;;  %v7051_v34 = vld [vmem:[#allocation24_spill] sm:$0xff] }
 0x263   :  { %v6035_v1 = vadd.f32 %v1064_v43, %v1063_v7  ;;  %v7052_v43 = vld [vmem:[#allocation25_spill] sm:$0xff]  ;;  %v7053_v7 = vld [vmem:[#allocation26_spill] sm:$0xff] }
 0x265   :  { %5173 = vtanh.f32 %v6035_v1 }
 0x26f   :  { %v5174_v12 = vpop.eup %5173 }
 0x270   :  { %v1067_v40 = vmul.f32 %v5174_v12, %v5172_v23  ;;  %v7054_v23 = vld [vmem:[#allocation27_spill] sm:$0xff]  ;;  %v7055_v12 = vld [vmem:[#allocation28_spill] sm:$0xff] }
 0x272   :  { %1133 = vmatmul.mubr.f32.vlgmr.msra.gmra.mrb[18].mxu0 %v1067_v40  ;;  %1204 = vmatmul.mubr.f32.vlgmr.msra.gmra.mrb[18].mxu1 %v1067_v40 }
 0x273   :  { %3883 = vmatpush1.bf16.msra.mxu0 %v5533_v16  ;;  %3915 = vmatpush1.bf16.msra.mxu1 %v5542_v20 }
 0x274   :  { %3885 = vmatprep.subr.bf16.mxu0 %v5545_v24  ;;  %3917 = vmatprep.subr.bf16.mxu1 %v5547_v25 }
 0x275   :  { %1302 = vmatprep.mubr.f32.mxu0 %v6977_v59  ;;  %1373 = vmatprep.mubr.f32.mxu1 %v6977_v59 }
 0x277   :  { %3887 = vmatpush1.bf16.msra.mxu0 %v5551_v29  ;;  %3919 = vmatpush1.bf16.msra.mxu1 %v5558_v33 }
 0x278   :  { %3889 = vmatprep.subr.bf16.mxu0 %v5562_v37  ;;  %3921 = vmatprep.subr.bf16.mxu1 %v5564_v38 }
 0x27b   :  { %3891 = vmatpush1.bf16.msra.mxu0 %v5568_v42  ;;  %3923 = vmatpush1.bf16.msra.mxu1 %v5575_v46 }
 0x27c   :  { %3893 = vmatprep.subr.bf16.mxu0 %v5579_v50  ;;  %3925 = vmatprep.subr.bf16.mxu1 %v5583_v54 }
 0x27f   :  { %3895 = vmatpush1.bf16.msra.mxu0 %v5587_v57  ;;  %3927 = vmatpush1.bf16.msra.mxu1 %v5591_v61 }
 0x280   :  { %3897 = vmatprep.subr.bf16.mxu0 %v5598_v2  ;;  %3929 = vmatprep.subr.bf16.mxu1 %v5602_v5 }
 0x283   :  { %3899 = vmatpush1.bf16.msra.mxu0 %v5606_v8  ;;  %3931 = vmatpush1.bf16.msra.mxu1 %v5610_v13 }
 0x284   :  { %3901 = vmatprep.subr.bf16.mxu0 %v5617_v18  ;;  %3933 = vmatprep.subr.bf16.mxu1 %v5621_v22 }
 0x287   :  { %3903 = vmatpush1.bf16.msra.mxu0 %v5625_v27  ;;  %3935 = vmatpush1.bf16.msra.mxu1 %v5629_v31 }
 0x288   :  { %3905 = vmatprep.subr.bf16.mxu0 %v5636_v36  ;;  %3937 = vmatprep.subr.bf16.mxu1 %v5640_v41 }
 0x28b   :  { %3907 = vmatpush1.bf16.msra.mxu0 %v5644_v45  ;;  %3939 = vmatpush1.bf16.msra.mxu1 %v5651_v51 }
 0x28c   :  { %3909 = vmatprep.subr.bf16.mxu0 %v5655_v56  ;;  %3941 = vmatprep.subr.bf16.mxu1 %v5659_v62 }
 0x28f   :  { %3911 = vmatpush1.bf16.msra.mxu0 %v5663_v3  ;;  %3943 = vmatpush1.bf16.msra.mxu1 %v5667_v4 }
 0x290   :  { %3945 = vmatprep.subr.bf16.mxu0 %v5669_v6  ;;  %4009 = vmatprep.subr.bf16.mxu1 %v5673_v14 }
 0x292   :  { %1303 = vmatmul.mubr.f32.vlgmr.msra.gmra.mrb[4].mxu0 %v1067_v40  ;;  %1374 = vmatmul.mubr.f32.vlgmr.msra.gmra.mrb[4].mxu1 %v1067_v40  ;;  %v7056_v40 = vld [vmem:[#allocation29_spill] sm:$0xff] }
 0x293   :  { %3947 = vmatpush1.bf16.msra.mxu0 %v5679_v26  ;;  %4011 = vmatpush1.bf16.msra.mxu1 %v5683_v28 }
 0x294   :  { %3949 = vmatprep.subr.bf16.mxu0 %v5685_v30  ;;  %4013 = vmatprep.subr.bf16.mxu1 %v5688_v39 }
 0x297   :  { %3951 = vmatpush1.bf16.msra.mxu0 %v5693_v49  ;;  %4015 = vmatpush1.bf16.msra.mxu1 %v5697_v52 }
 0x298   :  { %3953 = vmatprep.subr.bf16.mxu0 %v5699_v53  ;;  %4017 = vmatprep.subr.bf16.mxu1 %v5702_v60 }
 0x29b   :  { %3955 = vmatpush1.bf16.msra.mxu0 %v5707_v15  ;;  %4019 = vmatpush1.bf16.msra.mxu1 %v5711_v17 }
 0x29c   :  { %3957 = vmatprep.subr.bf16.mxu0 %v7040_v10  ;;  %4021 = vmatprep.subr.bf16.mxu1 %v7041_v9 }
 0x29f   :  { %3959 = vmatpush1.bf16.msra.mxu0 %v7042_v55  ;;  %4023 = vmatpush1.bf16.msra.mxu1 %v7043_v11  ;;  %v7095_v11 = vld [vmem:[#allocation69_spill] sm:$0xff] }
 0x2a0   :  { %3961 = vmatprep.subr.bf16.mxu0 %v7044_v32  ;;  %4025 = vmatprep.subr.bf16.mxu1 %v7045_v35  ;;  %v7094_v35 = vld [vmem:[#allocation65_spill] sm:$0xff] }
 0x2a3   :  { %3963 = vmatpush1.bf16.msra.mxu0 %v7046_v44  ;;  %4027 = vmatpush1.bf16.msra.mxu1 %v7047_v47  ;;  %v7057_v44 = vld [vmem:[#allocation30_spill] sm:$0xff]  ;;  %v7058_v47 = vld [vmem:[#allocation31_spill] sm:$0xff] }
 0x2a4   :  { %3965 = vmatprep.subr.bf16.mxu0 %v7048_v48  ;;  %4029 = vmatprep.subr.bf16.mxu1 %v7049_v58  ;;  %v7059_v48 = vld [vmem:[#allocation32_spill] sm:$0xff]  ;;  %v7060_v58 = vld [vmem:[#allocation33_spill] sm:$0xff] }
 0x2a7   :  { %3967 = vmatpush1.bf16.msra.mxu0 %v7050_v63  ;;  %4031 = vmatpush1.bf16.msra.mxu1 %v7051_v34  ;;  %v7061_v63 = vld [vmem:[#allocation34_spill] sm:$0xff]  ;;  %v7062_v34 = vld [vmem:[#allocation35_spill] sm:$0xff] }
 0x2a8   :  { %3969 = vmatprep.subr.bf16.mxu0 %v7052_v43  ;;  %4033 = vmatprep.subr.bf16.mxu1 %v7053_v7  ;;  %v7063_v43 = vld [vmem:[#allocation36_spill] sm:$0xff]  ;;  %v7064_v7 = vld [vmem:[#allocation37_spill] sm:$0xff] }
 0x2ab   :  { %3971 = vmatpush1.bf16.msra.mxu0 %v7054_v23  ;;  %4035 = vmatpush1.bf16.msra.mxu1 %v7055_v12  ;;  %v7065_v23 = vld [vmem:[#allocation38_spill] sm:$0xff]  ;;  %v7066_v12 = vld [vmem:[#allocation39_spill] sm:$0xff] }
 0x2ac   :  { %3973 = vmatprep.subr.bf16.mxu0 %v7056_v40  ;;  %4037 = vmatprep.subr.bf16.mxu1 %v7057_v44  ;;  %v7067_v40 = vld [vmem:[#allocation40_spill] sm:$0xff]  ;;  %v7068_v44 = vld [vmem:[#allocation41_spill] sm:$0xff] }
 0x2af   :  { %3975 = vmatpush1.bf16.msra.mxu0 %v7058_v47  ;;  %4039 = vmatpush1.bf16.msra.mxu1 %v7059_v48  ;;  %v7069_v47 = vld [vmem:[#allocation42_spill] sm:$0xff]  ;;  %v7070_v48 = vld [vmem:[#allocation43_spill] sm:$0xff] }
 0x2b0   :  { %3977 = vmatprep.subr.bf16.mxu0 %v7060_v58  ;;  %4041 = vmatprep.subr.bf16.mxu1 %v7061_v63  ;;  %v7071_v58 = vld [vmem:[#allocation44_spill] sm:$0xff]  ;;  %v7072_v63 = vld [vmem:[#allocation45_spill] sm:$0xff] }
 0x2b3   :  { %3979 = vmatpush1.bf16.msra.mxu0 %v7062_v34  ;;  %4043 = vmatpush1.bf16.msra.mxu1 %v7063_v43  ;;  %v7073_v34 = vld [vmem:[#allocation46_spill] sm:$0xff]  ;;  %v7074_v43 = vld [vmem:[#allocation47_spill] sm:$0xff] }
 0x2b4   :  { %3981 = vmatprep.subr.bf16.mxu0 %v7064_v7  ;;  %4045 = vmatprep.subr.bf16.mxu1 %v7065_v23  ;;  %v7075_v7 = vld [vmem:[#allocation48_spill] sm:$0xff]  ;;  %v7076_v23 = vld [vmem:[#allocation49_spill] sm:$0xff] }
 0x2b7   :  { %3983 = vmatpush1.bf16.msra.mxu0 %v7066_v12  ;;  %4047 = vmatpush1.bf16.msra.mxu1 %v7067_v40  ;;  %v7077_v12 = vld [vmem:[#allocation50_spill] sm:$0xff]  ;;  %v7078_v40 = vld [vmem:[#allocation51_spill] sm:$0xff] }
 0x2b8   :  { %3985 = vmatprep.subr.bf16.mxu0 %v7068_v44  ;;  %4049 = vmatprep.subr.bf16.mxu1 %v7069_v47  ;;  %v7079_v44 = vld [vmem:[#allocation52_spill] sm:$0xff]  ;;  %v7080_v47 = vld [vmem:[#allocation53_spill] sm:$0xff] }
 0x2bb   :  { %3987 = vmatpush1.bf16.msra.mxu0 %v7070_v48  ;;  %4051 = vmatpush1.bf16.msra.mxu1 %v7071_v58  ;;  %v7081_v48 = vld [vmem:[#allocation54_spill] sm:$0xff]  ;;  %v7082_v58 = vld [vmem:[#allocation55_spill] sm:$0xff] }
 0x2bc   :  { %3989 = vmatprep.subr.bf16.mxu0 %v7072_v63  ;;  %4053 = vmatprep.subr.bf16.mxu1 %v7073_v34  ;;  %v7083_v63 = vld [vmem:[#allocation56_spill] sm:$0xff]  ;;  %v7084_v34 = vld [vmem:[#allocation57_spill] sm:$0xff] }
 0x2bf   :  { %3991 = vmatpush1.bf16.msra.mxu0 %v7074_v43  ;;  %4055 = vmatpush1.bf16.msra.mxu1 %v7075_v7  ;;  %v7085_v43 = vld [vmem:[#allocation58_spill] sm:$0xff]  ;;  %v7086_v7 = vld [vmem:[#allocation59_spill] sm:$0xff] }
 0x2c0   :  { %3993 = vmatprep.subr.bf16.mxu0 %v7076_v23  ;;  %4057 = vmatprep.subr.bf16.mxu1 %v7077_v12  ;;  %v7087_v23 = vld [vmem:[#allocation60_spill] sm:$0xff]  ;;  %v7088_v12 = vld [vmem:[#allocation61_spill] sm:$0xff] }
 0x2c3   :  { %3995 = vmatpush1.bf16.msra.mxu0 %v7078_v40  ;;  %4059 = vmatpush1.bf16.msra.mxu1 %v7079_v44  ;;  %v7089_v40 = vld [vmem:[#allocation62_spill] sm:$0xff]  ;;  %v7090_v44 = vld [vmem:[#allocation63_spill] sm:$0xff] }
 0x2c4   :  { %3997 = vmatprep.subr.bf16.mxu0 %v7080_v47  ;;  %4061 = vmatprep.subr.bf16.mxu1 %v7081_v48  ;;  %v7091_v47 = vld [vmem:[#allocation64_spill] sm:$0xff]  ;;  %v7092_v48 = vld [vmem:[#allocation9_spill] sm:$0xff] }
 0x2c7   :  { %3999 = vmatpush1.bf16.msra.mxu0 %v7082_v58  ;;  %4063 = vmatpush1.bf16.msra.mxu1 %v7083_v63  ;;  %v7093_v58 = vld [vmem:[#allocation10_spill] sm:$0xff] }
 0x2c8   :  { %4001 = vmatprep.subr.bf16.mxu0 %v7084_v34  ;;  %4065 = vmatprep.subr.bf16.mxu1 %v7085_v43 }
 0x2cb   :  { %4003 = vmatpush1.bf16.msra.mxu0 %v7086_v7  ;;  %4067 = vmatpush1.bf16.msra.mxu1 %v7087_v23 }
 0x2cc   :  { %4005 = vmatprep.subr.bf16.mxu0 %v7088_v12  ;;  %4069 = vmatprep.subr.bf16.mxu1 %v7089_v40  ;;  %v7096_v40 = vld [vmem:[#allocation70_spill] sm:$0xff] }
 0x2cf   :  { %4007 = vmatpush1.bf16.msra.mxu0 %v7090_v44  ;;  %4071 = vmatpush1.bf16.msra.mxu1 %v7091_v47  ;;  %v7097_v47 = vld [vmem:[#allocation71_spill] sm:$0xff] }
 0x2d0   :  { %4073 = vmatprep.subr.bf16.mxu0 %v7092_v48  ;;  %4105 = vmatprep.subr.bf16.mxu1 %v7093_v58 }
 0x345   :  { %v1134_v63 = vpop.f32.mrb[18].mxu0  ;;  %v1205_v34 = vpop.f32.mrb[18].mxu1 }
 0x346   :  { %v1210_v43 = vadd.f32 %v1134_v63, %v7094_v35  ;;  %v1136_v32 = vpop.f32.mrb[19].mxu0  ;;  %v1207_v7 = vpop.f32.mrb[19].mxu1  ;;  %v1212_v10 = vadd.f32 %v1205_v34, %v7097_v47  ;;  %v7098_v34 = vld [vmem:[#allocation66_spill] sm:$0xff] }
 0x347   :  { %v1211_v23 = vadd.f32 %v1136_v32, %v7095_v11  ;;  %v1213_v44 = vadd.f32 %v1207_v7, %v7096_v40 }
 0x348   :  { %v3404_v55 = vmul.f32 -1.442695, %v1210_v43 }
 0x349   :  { %v3405_v12 = vmul.f32 -1.442695, %v1211_v23  ;;  %v3406_v9 = vmul.f32 -1.442695, %v1213_v44 }
 0x34a   :  { %5175 = vpow2.f32 %v3404_v55 }
 0x34b   :  { %5177 = vpow2.f32 %v3405_v12 }
 0x34c   :  { %5179 = vpow2.f32 %v3406_v9 }
 0x34d   :  { %5181 = vtanh.f32 %v1212_v10 }
 0x354   :  { %v5176_v48 = vpop.eup %5175 }
 0x355   :  { %v5178_v17 = vpop.eup %5177  ;;  %v1220_v58 = vadd.f32 1.0, %v5176_v48 }
 0x356   :  { %v1221_v15 = vadd.f32 1.0, %v5178_v17  ;;  %v5180_v63 = vpop.eup %5179 }
 0x357   :  { %5183 = vrcp.f32 %v1220_v58  ;;  %v5182_v35 = vpop.eup %5181  ;;  %v1230_v55 = vadd.f32 1.0, %v5180_v63 }
 0x358   :  { %5185 = vrcp.f32 %v1221_v15 }
 0x359   :  { %5187 = vrcp.f32 %v1230_v55 }
 0x361   :  { %v5184_v32 = vpop.eup %5183 }
 0x362   :  { %v5186_v43 = vpop.eup %5185  ;;  %v1234_v23 = vmul.f32 %v5184_v32, %v5182_v35  ;;  %v7099_v35 = vld [vmem:[#allocation68_spill] sm:$0xff] }
 0x363   :  { %v1233_v12 = vmul.f32 %v5186_v43, %v6027_v0  ;;  %v5188_v0 = vpop.eup %5187 }
 0x365   :  { %v1304_v7 = vpop.f32.mrb[4].mxu0  ;;  %v1375_v44 = vpop.f32.mrb[4].mxu1  ;;  %v6141_v40 = vadd.f32 %v1234_v23, %v1233_v12 }
 0x366   :  { %v5060_v48 = vadd.f32 %v1304_v7, %v7098_v34  ;;  %v1306_v9 = vpop.f32.mrb[5].mxu0  ;;  %v1377_v10 = vpop.f32.mrb[5].mxu1  ;;  %v5076_v23 = vadd.f32 %v1375_v44, %v5900_v21 }
 0x367   :  { %v5061_v17 = vadd.f32 %v1306_v9, %v7038_v19  ;;  %5189 = vtanh.f32 %v6141_v40  ;;  %v5077_v63 = vadd.f32 %v1377_v10, %v7099_v35 }
 0x368   :  { %v3407_v15 = vmul.f32 -1.442695, %v5060_v48 }
 0x369   :  { %v3408_v58 = vmul.f32 -1.442695, %v5061_v17  ;;  %v3409_v43 = vmul.f32 -1.442695, %v5077_v63 }
 0x36a   :  { %5191 = vpow2.f32 %v3407_v15 }
 0x36b   :  { %5193 = vpow2.f32 %v3408_v58 }
 0x36c   :  { %5195 = vpow2.f32 %v3409_v43 }
 0x36d   :  { %5197 = vtanh.f32 %v5076_v23  ;;  %v7103_v23 = vld [vmem:[#allocation14_spill] sm:$0xff] }
 0x371   :  { %v5190_v32 = vpop.eup %5189 }
 0x372   :  { %v1237_v55 = vmul.f32 %v5190_v32, %v5188_v0 }
 0x374   :  { %v5192_v12 = vpop.eup %5191  ;;  %1472 = vmatprep.mubr.f32.mxu0 %v1237_v55  ;;  %1543 = vmatprep.mubr.f32.mxu1 %v1237_v55  ;;  %v7104_v55 = vld [vmem:[#allocation15_spill] sm:$0xff] }
 0x375   :  { %v5194_v7 = vpop.eup %5193  ;;  %v1390_v34 = vadd.f32 1.0, %v5192_v12  ;;  %v7105_v12 = vld [vmem:[#allocation16_spill] sm:$0xff] }
 0x376   :  { %v1391_v9 = vadd.f32 1.0, %v5194_v7  ;;  %v5196_v48 = vpop.eup %5195  ;;  %v7106_v7 = vld [vmem:[#allocation17_spill] sm:$0xff] }
 0x377   :  { %5199 = vrcp.f32 %v1390_v34  ;;  %v5198_v17 = vpop.eup %5197  ;;  %v1400_v35 = vadd.f32 1.0, %v5196_v48  ;;  %v7101_v34 = vld [vmem:[#allocation12_spill] sm:$0xff]  ;;  %v7108_v48 = vld [vmem:[#allocation19_spill] sm:$0xff] }
 0x378   :  { %5201 = vrcp.f32 %v1391_v9  ;;  %v7107_v9 = vld [vmem:[#allocation18_spill] sm:$0xff] }
 0x379   :  { %5203 = vrcp.f32 %v1400_v35  ;;  %v7102_v35 = vld [vmem:[#allocation13_spill] sm:$0xff] }
 0x381   :  { %v5200_v15 = vpop.eup %5199 }
 0x382   :  { %v5202_v10 = vpop.eup %5201  ;;  %v1404_v58 = vmul.f32 %v5200_v15, %v5198_v17  ;;  %v7109_v17 = vld [vmem:[#allocation20_spill] sm:$0xff]  ;;  %v7110_v15 = vld [vmem:[#allocation21_spill] sm:$0xff] }
 0x383   :  { %v1403_v63 = vmul.f32 %v5202_v10, %v6035_v1  ;;  %v5204_v0 = vpop.eup %5203  ;;  %v7100_v1 = vld [vmem:[#allocation11_spill] sm:$0xff]  ;;  %v7111_v10 = vld [vmem:[#allocation22_spill] sm:$0xff] }
 0x385   :  { %v6149_v44 = vadd.f32 %v1404_v58, %v1403_v63  ;;  %v7112_v58 = vld [vmem:[#allocation23_spill] sm:$0xff]  ;;  %v7113_v63 = vld [vmem:[#allocation24_spill] sm:$0xff] }
 0x387   :  { %5205 = vtanh.f32 %v6149_v44 }
 0x391   :  { %v5206_v32 = vpop.eup %5205 }
 0x392   :  { %v1407_v43 = vmul.f32 %v5206_v32, %v5204_v0  ;;  %v7114_v0 = vld [vmem:[#allocation25_spill] sm:$0xff]  ;;  %v7115_v32 = vld [vmem:[#allocation26_spill] sm:$0xff] }
 0x394   :  { %1473 = vmatmul.mubr.f32.vlgmr.msra.gmra.mrb[20].mxu0 %v1407_v43  ;;  %1544 = vmatmul.mubr.f32.vlgmr.msra.gmra.mrb[20].mxu1 %v1407_v43 }
 0x395   :  { %4075 = vmatpush1.bf16.msra.mxu0 %v5533_v16  ;;  %4107 = vmatpush1.bf16.msra.mxu1 %v5542_v20 }
 0x396   :  { %4077 = vmatprep.subr.bf16.mxu0 %v5545_v24  ;;  %4109 = vmatprep.subr.bf16.mxu1 %v5547_v25 }
 0x397   :  { %1642 = vmatprep.mubr.f32.mxu0 %v6977_v59  ;;  %1713 = vmatprep.mubr.f32.mxu1 %v6977_v59 }
 0x399   :  { %4079 = vmatpush1.bf16.msra.mxu0 %v5551_v29  ;;  %4111 = vmatpush1.bf16.msra.mxu1 %v5558_v33 }
 0x39a   :  { %4081 = vmatprep.subr.bf16.mxu0 %v5562_v37  ;;  %4113 = vmatprep.subr.bf16.mxu1 %v5564_v38 }
 0x39d   :  { %4083 = vmatpush1.bf16.msra.mxu0 %v5568_v42  ;;  %4115 = vmatpush1.bf16.msra.mxu1 %v5575_v46 }
 0x39e   :  { %4085 = vmatprep.subr.bf16.mxu0 %v5579_v50  ;;  %4117 = vmatprep.subr.bf16.mxu1 %v5583_v54 }
 0x3a1   :  { %4087 = vmatpush1.bf16.msra.mxu0 %v5587_v57  ;;  %4119 = vmatpush1.bf16.msra.mxu1 %v5591_v61 }
 0x3a2   :  { %4089 = vmatprep.subr.bf16.mxu0 %v5598_v2  ;;  %4121 = vmatprep.subr.bf16.mxu1 %v5602_v5 }
 0x3a5   :  { %4091 = vmatpush1.bf16.msra.mxu0 %v5606_v8  ;;  %4123 = vmatpush1.bf16.msra.mxu1 %v5610_v13 }
 0x3a6   :  { %4093 = vmatprep.subr.bf16.mxu0 %v5617_v18  ;;  %4125 = vmatprep.subr.bf16.mxu1 %v5621_v22 }
 0x3a9   :  { %4095 = vmatpush1.bf16.msra.mxu0 %v5625_v27  ;;  %4127 = vmatpush1.bf16.msra.mxu1 %v5629_v31 }
 0x3aa   :  { %4097 = vmatprep.subr.bf16.mxu0 %v5636_v36  ;;  %4129 = vmatprep.subr.bf16.mxu1 %v5640_v41 }
 0x3ad   :  { %4099 = vmatpush1.bf16.msra.mxu0 %v5644_v45  ;;  %4131 = vmatpush1.bf16.msra.mxu1 %v5651_v51 }
 0x3ae   :  { %4101 = vmatprep.subr.bf16.mxu0 %v5655_v56  ;;  %4133 = vmatprep.subr.bf16.mxu1 %v5659_v62 }
 0x3b1   :  { %4103 = vmatpush1.bf16.msra.mxu0 %v5663_v3  ;;  %4135 = vmatpush1.bf16.msra.mxu1 %v5667_v4 }
 0x3b2   :  { %4137 = vmatprep.subr.bf16.mxu0 %v5669_v6  ;;  %4201 = vmatprep.subr.bf16.mxu1 %v5673_v14 }
 0x3b4   :  { %1643 = vmatmul.mubr.f32.vlgmr.msra.gmra.mrb[6].mxu0 %v1407_v43  ;;  %1714 = vmatmul.mubr.f32.vlgmr.msra.gmra.mrb[6].mxu1 %v1407_v43  ;;  %v7116_v43 = vld [vmem:[#allocation27_spill] sm:$0xff] }
 0x3b5   :  { %4139 = vmatpush1.bf16.msra.mxu0 %v5679_v26  ;;  %4203 = vmatpush1.bf16.msra.mxu1 %v5683_v28 }
 0x3b6   :  { %4141 = vmatprep.subr.bf16.mxu0 %v5685_v30  ;;  %4205 = vmatprep.subr.bf16.mxu1 %v5688_v39 }
 0x3b9   :  { %4143 = vmatpush1.bf16.msra.mxu0 %v5693_v49  ;;  %4207 = vmatpush1.bf16.msra.mxu1 %v5697_v52 }
 0x3ba   :  { %4145 = vmatprep.subr.bf16.mxu0 %v5699_v53  ;;  %4209 = vmatprep.subr.bf16.mxu1 %v5702_v60 }
 0x3bd   :  { %4147 = vmatpush1.bf16.msra.mxu0 %v7100_v1  ;;  %4211 = vmatpush1.bf16.msra.mxu1 %v7101_v34 }
 0x3be   :  { %4149 = vmatprep.subr.bf16.mxu0 %v7102_v35  ;;  %4213 = vmatprep.subr.bf16.mxu1 %v7103_v23 }
 0x3c1   :  { %4151 = vmatpush1.bf16.msra.mxu0 %v7104_v55  ;;  %4215 = vmatpush1.bf16.msra.mxu1 %v7105_v12  ;;  %v7156_v12 = vld [vmem:[#allocation65_spill] sm:$0xff] }
 0x3c2   :  { %4153 = vmatprep.subr.bf16.mxu0 %v7106_v7  ;;  %4217 = vmatprep.subr.bf16.mxu1 %v7107_v9  ;;  %v7117_v7 = vld [vmem:[#allocation28_spill] sm:$0xff]  ;;  %v7118_v9 = vld [vmem:[#allocation29_spill] sm:$0xff] }
 0x3c5   :  { %4155 = vmatpush1.bf16.msra.mxu0 %v7108_v48  ;;  %4219 = vmatpush1.bf16.msra.mxu1 %v7109_v17  ;;  %v7119_v48 = vld [vmem:[#allocation30_spill] sm:$0xff]  ;;  %v7120_v17 = vld [vmem:[#allocation31_spill] sm:$0xff] }
 0x3c6   :  { %4157 = vmatprep.subr.bf16.mxu0 %v7110_v15  ;;  %4221 = vmatprep.subr.bf16.mxu1 %v7111_v10  ;;  %v7121_v15 = vld [vmem:[#allocation32_spill] sm:$0xff]  ;;  %v7122_v10 = vld [vmem:[#allocation33_spill] sm:$0xff] }
 0x3c9   :  { %4159 = vmatpush1.bf16.msra.mxu0 %v7112_v58  ;;  %4223 = vmatpush1.bf16.msra.mxu1 %v7113_v63  ;;  %v7123_v58 = vld [vmem:[#allocation34_spill] sm:$0xff]  ;;  %v7124_v63 = vld [vmem:[#allocation35_spill] sm:$0xff] }
 0x3ca   :  { %4161 = vmatprep.subr.bf16.mxu0 %v7114_v0  ;;  %4225 = vmatprep.subr.bf16.mxu1 %v7115_v32  ;;  %v7125_v0 = vld [vmem:[#allocation36_spill] sm:$0xff]  ;;  %v7126_v32 = vld [vmem:[#allocation37_spill] sm:$0xff] }
 0x3cd   :  { %4163 = vmatpush1.bf16.msra.mxu0 %v7116_v43  ;;  %4227 = vmatpush1.bf16.msra.mxu1 %v7117_v7  ;;  %v7127_v43 = vld [vmem:[#allocation38_spill] sm:$0xff]  ;;  %v7128_v7 = vld [vmem:[#allocation39_spill] sm:$0xff] }
 0x3ce   :  { %4165 = vmatprep.subr.bf16.mxu0 %v7118_v9  ;;  %4229 = vmatprep.subr.bf16.mxu1 %v7119_v48  ;;  %v7129_v9 = vld [vmem:[#allocation40_spill] sm:$0xff]  ;;  %v7130_v48 = vld [vmem:[#allocation41_spill] sm:$0xff] }
 0x3d1   :  { %4167 = vmatpush1.bf16.msra.mxu0 %v7120_v17  ;;  %4231 = vmatpush1.bf16.msra.mxu1 %v7121_v15  ;;  %v7131_v17 = vld [vmem:[#allocation42_spill] sm:$0xff]  ;;  %v7132_v15 = vld [vmem:[#allocation43_spill] sm:$0xff] }
 0x3d2   :  { %4169 = vmatprep.subr.bf16.mxu0 %v7122_v10  ;;  %4233 = vmatprep.subr.bf16.mxu1 %v7123_v58  ;;  %v7133_v10 = vld [vmem:[#allocation44_spill] sm:$0xff]  ;;  %v7134_v58 = vld [vmem:[#allocation45_spill] sm:$0xff] }
 0x3d5   :  { %4171 = vmatpush1.bf16.msra.mxu0 %v7124_v63  ;;  %4235 = vmatpush1.bf16.msra.mxu1 %v7125_v0  ;;  %v7135_v63 = vld [vmem:[#allocation46_spill] sm:$0xff]  ;;  %v7136_v0 = vld [vmem:[#allocation47_spill] sm:$0xff] }
 0x3d6   :  { %4173 = vmatprep.subr.bf16.mxu0 %v7126_v32  ;;  %4237 = vmatprep.subr.bf16.mxu1 %v7127_v43  ;;  %v7137_v32 = vld [vmem:[#allocation48_spill] sm:$0xff]  ;;  %v7138_v43 = vld [vmem:[#allocation49_spill] sm:$0xff] }
 0x3d9   :  { %4175 = vmatpush1.bf16.msra.mxu0 %v7128_v7  ;;  %4239 = vmatpush1.bf16.msra.mxu1 %v7129_v9  ;;  %v7139_v7 = vld [vmem:[#allocation50_spill] sm:$0xff]  ;;  %v7140_v9 = vld [vmem:[#allocation51_spill] sm:$0xff] }
 0x3da   :  { %4177 = vmatprep.subr.bf16.mxu0 %v7130_v48  ;;  %4241 = vmatprep.subr.bf16.mxu1 %v7131_v17  ;;  %v7141_v48 = vld [vmem:[#allocation52_spill] sm:$0xff]  ;;  %v7142_v17 = vld [vmem:[#allocation53_spill] sm:$0xff] }
 0x3dd   :  { %4179 = vmatpush1.bf16.msra.mxu0 %v7132_v15  ;;  %4243 = vmatpush1.bf16.msra.mxu1 %v7133_v10  ;;  %v7143_v15 = vld [vmem:[#allocation54_spill] sm:$0xff]  ;;  %v7144_v10 = vld [vmem:[#allocation55_spill] sm:$0xff] }
 0x3de   :  { %4181 = vmatprep.subr.bf16.mxu0 %v7134_v58  ;;  %4245 = vmatprep.subr.bf16.mxu1 %v7135_v63  ;;  %v7145_v58 = vld [vmem:[#allocation56_spill] sm:$0xff]  ;;  %v7146_v63 = vld [vmem:[#allocation57_spill] sm:$0xff] }
 0x3e1   :  { %4183 = vmatpush1.bf16.msra.mxu0 %v7136_v0  ;;  %4247 = vmatpush1.bf16.msra.mxu1 %v7137_v32  ;;  %v7147_v0 = vld [vmem:[#allocation58_spill] sm:$0xff]  ;;  %v7148_v32 = vld [vmem:[#allocation59_spill] sm:$0xff] }
 0x3e2   :  { %4185 = vmatprep.subr.bf16.mxu0 %v7138_v43  ;;  %4249 = vmatprep.subr.bf16.mxu1 %v7139_v7  ;;  %v7149_v43 = vld [vmem:[#allocation60_spill] sm:$0xff]  ;;  %v7150_v7 = vld [vmem:[#allocation61_spill] sm:$0xff] }
 0x3e5   :  { %4187 = vmatpush1.bf16.msra.mxu0 %v7140_v9  ;;  %4251 = vmatpush1.bf16.msra.mxu1 %v7141_v48  ;;  %v7151_v9 = vld [vmem:[#allocation62_spill] sm:$0xff]  ;;  %v7152_v48 = vld [vmem:[#allocation63_spill] sm:$0xff] }
 0x3e6   :  { %4189 = vmatprep.subr.bf16.mxu0 %v7142_v17  ;;  %4253 = vmatprep.subr.bf16.mxu1 %v7143_v15  ;;  %v7153_v17 = vld [vmem:[#allocation64_spill] sm:$0xff]  ;;  %v7154_v15 = vld [vmem:[#allocation9_spill] sm:$0xff] }
 0x3e9   :  { %4191 = vmatpush1.bf16.msra.mxu0 %v7144_v10  ;;  %4255 = vmatpush1.bf16.msra.mxu1 %v7145_v58  ;;  %v7155_v10 = vld [vmem:[#allocation10_spill] sm:$0xff] }
 0x3ea   :  { %4193 = vmatprep.subr.bf16.mxu0 %v7146_v63  ;;  %4257 = vmatprep.subr.bf16.mxu1 %v7147_v0 }
 0x3ed   :  { %4195 = vmatpush1.bf16.msra.mxu0 %v7148_v32  ;;  %4259 = vmatpush1.bf16.msra.mxu1 %v7149_v43 }
 0x3ee   :  { %4197 = vmatprep.subr.bf16.mxu0 %v7150_v7  ;;  %4261 = vmatprep.subr.bf16.mxu1 %v7151_v9  ;;  %v7157_v9 = vld [vmem:[#allocation70_spill] sm:$0xff] }
 0x3f1   :  { %4199 = vmatpush1.bf16.msra.mxu0 %v7152_v48  ;;  %4263 = vmatpush1.bf16.msra.mxu1 %v7153_v17 }
 0x3f2   :  { %4265 = vmatprep.subr.bf16.mxu0 %v7154_v15  ;;  %4297 = vmatprep.subr.bf16.mxu1 %v7155_v10 }
 0x467   :  { %v1474_v58 = vpop.f32.mrb[20].mxu0  ;;  %v1545_v63 = vpop.f32.mrb[20].mxu1 }
 0x468   :  { %v1550_v0 = vadd.f32 %v1474_v58, %v7156_v12  ;;  %v1476_v55 = vpop.f32.mrb[21].mxu0  ;;  %v1547_v32 = vpop.f32.mrb[21].mxu1  ;;  %v1552_v17 = vadd.f32 %v1545_v63, %v7097_v47  ;;  %v7158_v63 = vld [vmem:[#allocation66_spill] sm:$0xff] }
 0x469   :  { %v1551_v43 = vadd.f32 %v1476_v55, %v7095_v11  ;;  %v1553_v48 = vadd.f32 %v1547_v32, %v7157_v9 }
 0x46a   :  { %v3410_v23 = vmul.f32 -1.442695, %v1550_v0 }
 0x46b   :  { %v3411_v7 = vmul.f32 -1.442695, %v1551_v43  ;;  %v3412_v35 = vmul.f32 -1.442695, %v1553_v48 }
 0x46c   :  { %5207 = vpow2.f32 %v3410_v23 }
 0x46d   :  { %5209 = vpow2.f32 %v3411_v7 }
 0x46e   :  { %5211 = vpow2.f32 %v3412_v35 }
 0x46f   :  { %5213 = vtanh.f32 %v1552_v17 }
 0x476   :  { %v5208_v15 = vpop.eup %5207 }
 0x477   :  { %v5210_v34 = vpop.eup %5209  ;;  %v1560_v10 = vadd.f32 1.0, %v5208_v15 }
 0x478   :  { %v1561_v1 = vadd.f32 1.0, %v5210_v34  ;;  %v5212_v58 = vpop.eup %5211 }
 0x479   :  { %5215 = vrcp.f32 %v1560_v10  ;;  %v5214_v12 = vpop.eup %5213  ;;  %v1570_v23 = vadd.f32 1.0, %v5212_v58 }
 0x47a   :  { %5217 = vrcp.f32 %v1561_v1 }
 0x47b   :  { %5219 = vrcp.f32 %v1570_v23 }
 0x483   :  { %v5216_v55 = vpop.eup %5215 }
 0x484   :  { %v5218_v0 = vpop.eup %5217  ;;  %v1574_v43 = vmul.f32 %v5216_v55, %v5214_v12  ;;  %v7159_v12 = vld [vmem:[#allocation68_spill] sm:$0xff] }
 0x485   :  { %v1573_v7 = vmul.f32 %v5218_v0, %v6141_v40  ;;  %v5220_v40 = vpop.eup %5219 }
 0x487   :  { %v1644_v32 = vpop.f32.mrb[6].mxu0  ;;  %v1715_v48 = vpop.f32.mrb[6].mxu1  ;;  %v6255_v9 = vadd.f32 %v1574_v43, %v1573_v7 }
 0x488   :  { %v5062_v15 = vadd.f32 %v1644_v32, %v7158_v63  ;;  %v1646_v35 = vpop.f32.mrb[7].mxu0  ;;  %v1717_v17 = vpop.f32.mrb[7].mxu1  ;;  %v5078_v43 = vadd.f32 %v1715_v48, %v5900_v21 }
 0x489   :  { %v5063_v34 = vadd.f32 %v1646_v35, %v7038_v19  ;;  %5221 = vtanh.f32 %v6255_v9  ;;  %v5079_v58 = vadd.f32 %v1717_v17, %v7159_v12 }
 0x48a   :  { %v3413_v1 = vmul.f32 -1.442695, %v5062_v15 }
 0x48b   :  { %v3414_v10 = vmul.f32 -1.442695, %v5063_v34  ;;  %v3415_v0 = vmul.f32 -1.442695, %v5079_v58 }
 0x48c   :  { %5223 = vpow2.f32 %v3413_v1 }
 0x48d   :  { %5225 = vpow2.f32 %v3414_v10 }
 0x48e   :  { %5227 = vpow2.f32 %v3415_v0 }
 0x48f   :  { %5229 = vtanh.f32 %v5078_v43  ;;  %v7163_v43 = vld [vmem:[#allocation14_spill] sm:$0xff] }
 0x493   :  { %v5222_v55 = vpop.eup %5221 }
 0x494   :  { %v1577_v23 = vmul.f32 %v5222_v55, %v5220_v40 }
 0x496   :  { %v5224_v7 = vpop.eup %5223  ;;  %1812 = vmatprep.mubr.f32.mxu0 %v1577_v23  ;;  %1883 = vmatprep.mubr.f32.mxu1 %v1577_v23  ;;  %v7164_v23 = vld [vmem:[#allocation15_spill] sm:$0xff] }
 0x497   :  { %v5226_v32 = vpop.eup %5225  ;;  %v1730_v63 = vadd.f32 1.0, %v5224_v7  ;;  %v7165_v7 = vld [vmem:[#allocation16_spill] sm:$0xff] }
 0x498   :  { %v1731_v35 = vadd.f32 1.0, %v5226_v32  ;;  %v5228_v15 = vpop.eup %5227  ;;  %v7166_v32 = vld [vmem:[#allocation17_spill] sm:$0xff] }
 0x499   :  { %5231 = vrcp.f32 %v1730_v63  ;;  %v5230_v34 = vpop.eup %5229  ;;  %v1740_v12 = vadd.f32 1.0, %v5228_v15  ;;  %v7161_v63 = vld [vmem:[#allocation12_spill] sm:$0xff]  ;;  %v7168_v15 = vld [vmem:[#allocation19_spill] sm:$0xff] }
 0x49a   :  { %5233 = vrcp.f32 %v1731_v35  ;;  %v7167_v35 = vld [vmem:[#allocation18_spill] sm:$0xff] }
 0x49b   :  { %5235 = vrcp.f32 %v1740_v12  ;;  %v7162_v12 = vld [vmem:[#allocation13_spill] sm:$0xff] }
 0x4a3   :  { %v5232_v1 = vpop.eup %5231 }
 0x4a4   :  { %v5234_v17 = vpop.eup %5233  ;;  %v1744_v10 = vmul.f32 %v5232_v1, %v5230_v34  ;;  %v7169_v34 = vld [vmem:[#allocation20_spill] sm:$0xff]  ;;  %v7170_v1 = vld [vmem:[#allocation21_spill] sm:$0xff] }
 0x4a5   :  { %v1743_v58 = vmul.f32 %v5234_v17, %v6149_v44  ;;  %v5236_v40 = vpop.eup %5235  ;;  %v7160_v44 = vld [vmem:[#allocation11_spill] sm:$0xff]  ;;  %v7171_v17 = vld [vmem:[#allocation22_spill] sm:$0xff] }
 0x4a7   :  { %v6263_v48 = vadd.f32 %v1744_v10, %v1743_v58  ;;  %v7172_v10 = vld [vmem:[#allocation23_spill] sm:$0xff]  ;;  %v7173_v58 = vld [vmem:[#allocation24_spill] sm:$0xff] }
 0x4a9   :  { %5237 = vtanh.f32 %v6263_v48 }
 0x4b3   :  { %v5238_v55 = vpop.eup %5237 }
 0x4b4   :  { %v1747_v0 = vmul.f32 %v5238_v55, %v5236_v40  ;;  %v7174_v40 = vld [vmem:[#allocation25_spill] sm:$0xff]  ;;  %v7175_v55 = vld [vmem:[#allocation26_spill] sm:$0xff] }
 0x4b6   :  { %1813 = vmatmul.mubr.f32.vlgmr.msra.gmra.mrb[22].mxu0 %v1747_v0  ;;  %1884 = vmatmul.mubr.f32.vlgmr.msra.gmra.mrb[22].mxu1 %v1747_v0 }
 0x4b7   :  { %4267 = vmatpush1.bf16.msra.mxu0 %v5533_v16  ;;  %4299 = vmatpush1.bf16.msra.mxu1 %v5542_v20 }
 0x4b8   :  { %4269 = vmatprep.subr.bf16.mxu0 %v5545_v24  ;;  %4301 = vmatprep.subr.bf16.mxu1 %v5547_v25 }
 0x4b9   :  { %1982 = vmatprep.mubr.f32.mxu0 %v6977_v59  ;;  %2053 = vmatprep.mubr.f32.mxu1 %v6977_v59 }
 0x4bb   :  { %4271 = vmatpush1.bf16.msra.mxu0 %v5551_v29  ;;  %4303 = vmatpush1.bf16.msra.mxu1 %v5558_v33 }
 0x4bc   :  { %4273 = vmatprep.subr.bf16.mxu0 %v5562_v37  ;;  %4305 = vmatprep.subr.bf16.mxu1 %v5564_v38 }
 0x4bf   :  { %4275 = vmatpush1.bf16.msra.mxu0 %v5568_v42  ;;  %4307 = vmatpush1.bf16.msra.mxu1 %v5575_v46 }
 0x4c0   :  { %4277 = vmatprep.subr.bf16.mxu0 %v5579_v50  ;;  %4309 = vmatprep.subr.bf16.mxu1 %v5583_v54 }
 0x4c3   :  { %4279 = vmatpush1.bf16.msra.mxu0 %v5587_v57  ;;  %4311 = vmatpush1.bf16.msra.mxu1 %v5591_v61 }
 0x4c4   :  { %4281 = vmatprep.subr.bf16.mxu0 %v5598_v2  ;;  %4313 = vmatprep.subr.bf16.mxu1 %v5602_v5 }
 0x4c7   :  { %4283 = vmatpush1.bf16.msra.mxu0 %v5606_v8  ;;  %4315 = vmatpush1.bf16.msra.mxu1 %v5610_v13 }
 0x4c8   :  { %4285 = vmatprep.subr.bf16.mxu0 %v5617_v18  ;;  %4317 = vmatprep.subr.bf16.mxu1 %v5621_v22 }
 0x4cb   :  { %4287 = vmatpush1.bf16.msra.mxu0 %v5625_v27  ;;  %4319 = vmatpush1.bf16.msra.mxu1 %v5629_v31 }
 0x4cc   :  { %4289 = vmatprep.subr.bf16.mxu0 %v5636_v36  ;;  %4321 = vmatprep.subr.bf16.mxu1 %v5640_v41 }
 0x4cf   :  { %4291 = vmatpush1.bf16.msra.mxu0 %v5644_v45  ;;  %4323 = vmatpush1.bf16.msra.mxu1 %v5651_v51 }
 0x4d0   :  { %4293 = vmatprep.subr.bf16.mxu0 %v5655_v56  ;;  %4325 = vmatprep.subr.bf16.mxu1 %v5659_v62 }
 0x4d3   :  { %4295 = vmatpush1.bf16.msra.mxu0 %v5663_v3  ;;  %4327 = vmatpush1.bf16.msra.mxu1 %v5667_v4 }
 0x4d4   :  { %4329 = vmatprep.subr.bf16.mxu0 %v5669_v6  ;;  %4393 = vmatprep.subr.bf16.mxu1 %v5673_v14 }
 0x4d6   :  { %1983 = vmatmul.mubr.f32.vlgmr.msra.gmra.mrb[8].mxu0 %v1747_v0  ;;  %2054 = vmatmul.mubr.f32.vlgmr.msra.gmra.mrb[8].mxu1 %v1747_v0  ;;  %v7176_v0 = vld [vmem:[#allocation27_spill] sm:$0xff] }
 0x4d7   :  { %4331 = vmatpush1.bf16.msra.mxu0 %v5679_v26  ;;  %4395 = vmatpush1.bf16.msra.mxu1 %v5683_v28 }
 0x4d8   :  { %4333 = vmatprep.subr.bf16.mxu0 %v5685_v30  ;;  %4397 = vmatprep.subr.bf16.mxu1 %v5688_v39 }
 0x4db   :  { %4335 = vmatpush1.bf16.msra.mxu0 %v5693_v49  ;;  %4399 = vmatpush1.bf16.msra.mxu1 %v5697_v52 }
 0x4dc   :  { %4337 = vmatprep.subr.bf16.mxu0 %v5699_v53  ;;  %4401 = vmatprep.subr.bf16.mxu1 %v5702_v60 }
 0x4df   :  { %4339 = vmatpush1.bf16.msra.mxu0 %v7160_v44  ;;  %4403 = vmatpush1.bf16.msra.mxu1 %v7161_v63 }
 0x4e0   :  { %4341 = vmatprep.subr.bf16.mxu0 %v7162_v12  ;;  %4405 = vmatprep.subr.bf16.mxu1 %v7163_v43 }
 0x4e3   :  { %4343 = vmatpush1.bf16.msra.mxu0 %v7164_v23  ;;  %4407 = vmatpush1.bf16.msra.mxu1 %v7165_v7  ;;  %v7216_v7 = vld [vmem:[#allocation65_spill] sm:$0xff] }
 0x4e4   :  { %4345 = vmatprep.subr.bf16.mxu0 %v7166_v32  ;;  %4409 = vmatprep.subr.bf16.mxu1 %v7167_v35  ;;  %v7177_v32 = vld [vmem:[#allocation28_spill] sm:$0xff]  ;;  %v7178_v35 = vld [vmem:[#allocation29_spill] sm:$0xff] }
 0x4e7   :  { %4347 = vmatpush1.bf16.msra.mxu0 %v7168_v15  ;;  %4411 = vmatpush1.bf16.msra.mxu1 %v7169_v34  ;;  %v7179_v15 = vld [vmem:[#allocation30_spill] sm:$0xff]  ;;  %v7180_v34 = vld [vmem:[#allocation31_spill] sm:$0xff] }
 0x4e8   :  { %4349 = vmatprep.subr.bf16.mxu0 %v7170_v1  ;;  %4413 = vmatprep.subr.bf16.mxu1 %v7171_v17  ;;  %v7181_v1 = vld [vmem:[#allocation32_spill] sm:$0xff]  ;;  %v7182_v17 = vld [vmem:[#allocation33_spill] sm:$0xff] }
 0x4eb   :  { %4351 = vmatpush1.bf16.msra.mxu0 %v7172_v10  ;;  %4415 = vmatpush1.bf16.msra.mxu1 %v7173_v58  ;;  %v7183_v10 = vld [vmem:[#allocation34_spill] sm:$0xff]  ;;  %v7184_v58 = vld [vmem:[#allocation35_spill] sm:$0xff] }
 0x4ec   :  { %4353 = vmatprep.subr.bf16.mxu0 %v7174_v40  ;;  %4417 = vmatprep.subr.bf16.mxu1 %v7175_v55  ;;  %v7185_v40 = vld [vmem:[#allocation36_spill] sm:$0xff]  ;;  %v7186_v55 = vld [vmem:[#allocation37_spill] sm:$0xff] }
 0x4ef   :  { %4355 = vmatpush1.bf16.msra.mxu0 %v7176_v0  ;;  %4419 = vmatpush1.bf16.msra.mxu1 %v7177_v32  ;;  %v7187_v0 = vld [vmem:[#allocation38_spill] sm:$0xff]  ;;  %v7188_v32 = vld [vmem:[#allocation39_spill] sm:$0xff] }
 0x4f0   :  { %4357 = vmatprep.subr.bf16.mxu0 %v7178_v35  ;;  %4421 = vmatprep.subr.bf16.mxu1 %v7179_v15  ;;  %v7189_v35 = vld [vmem:[#allocation40_spill] sm:$0xff]  ;;  %v7190_v15 = vld [vmem:[#allocation41_spill] sm:$0xff] }
 0x4f3   :  { %4359 = vmatpush1.bf16.msra.mxu0 %v7180_v34  ;;  %4423 = vmatpush1.bf16.msra.mxu1 %v7181_v1  ;;  %v7191_v34 = vld [vmem:[#allocation42_spill] sm:$0xff]  ;;  %v7192_v1 = vld [vmem:[#allocation43_spill] sm:$0xff] }
 0x4f4   :  { %4361 = vmatprep.subr.bf16.mxu0 %v7182_v17  ;;  %4425 = vmatprep.subr.bf16.mxu1 %v7183_v10  ;;  %v7193_v17 = vld [vmem:[#allocation44_spill] sm:$0xff]  ;;  %v7194_v10 = vld [vmem:[#allocation45_spill] sm:$0xff] }
 0x4f7   :  { %4363 = vmatpush1.bf16.msra.mxu0 %v7184_v58  ;;  %4427 = vmatpush1.bf16.msra.mxu1 %v7185_v40  ;;  %v7195_v58 = vld [vmem:[#allocation46_spill] sm:$0xff]  ;;  %v7196_v40 = vld [vmem:[#allocation47_spill] sm:$0xff] }
 0x4f8   :  { %4365 = vmatprep.subr.bf16.mxu0 %v7186_v55  ;;  %4429 = vmatprep.subr.bf16.mxu1 %v7187_v0  ;;  %v7197_v55 = vld [vmem:[#allocation48_spill] sm:$0xff]  ;;  %v7198_v0 = vld [vmem:[#allocation49_spill] sm:$0xff] }
 0x4fb   :  { %4367 = vmatpush1.bf16.msra.mxu0 %v7188_v32  ;;  %4431 = vmatpush1.bf16.msra.mxu1 %v7189_v35  ;;  %v7199_v32 = vld [vmem:[#allocation50_spill] sm:$0xff]  ;;  %v7200_v35 = vld [vmem:[#allocation51_spill] sm:$0xff] }
 0x4fc   :  { %4369 = vmatprep.subr.bf16.mxu0 %v7190_v15  ;;  %4433 = vmatprep.subr.bf16.mxu1 %v7191_v34  ;;  %v7201_v15 = vld [vmem:[#allocation52_spill] sm:$0xff]  ;;  %v7202_v34 = vld [vmem:[#allocation53_spill] sm:$0xff] }
 0x4ff   :  { %4371 = vmatpush1.bf16.msra.mxu0 %v7192_v1  ;;  %4435 = vmatpush1.bf16.msra.mxu1 %v7193_v17  ;;  %v7203_v1 = vld [vmem:[#allocation54_spill] sm:$0xff]  ;;  %v7204_v17 = vld [vmem:[#allocation55_spill] sm:$0xff] }
 0x500   :  { %4373 = vmatprep.subr.bf16.mxu0 %v7194_v10  ;;  %4437 = vmatprep.subr.bf16.mxu1 %v7195_v58  ;;  %v7205_v10 = vld [vmem:[#allocation56_spill] sm:$0xff]  ;;  %v7206_v58 = vld [vmem:[#allocation57_spill] sm:$0xff] }
 0x503   :  { %4375 = vmatpush1.bf16.msra.mxu0 %v7196_v40  ;;  %4439 = vmatpush1.bf16.msra.mxu1 %v7197_v55  ;;  %v7207_v40 = vld [vmem:[#allocation58_spill] sm:$0xff]  ;;  %v7208_v55 = vld [vmem:[#allocation59_spill] sm:$0xff] }
 0x504   :  { %4377 = vmatprep.subr.bf16.mxu0 %v7198_v0  ;;  %4441 = vmatprep.subr.bf16.mxu1 %v7199_v32  ;;  %v7209_v0 = vld [vmem:[#allocation60_spill] sm:$0xff]  ;;  %v7210_v32 = vld [vmem:[#allocation61_spill] sm:$0xff] }
 0x507   :  { %4379 = vmatpush1.bf16.msra.mxu0 %v7200_v35  ;;  %4443 = vmatpush1.bf16.msra.mxu1 %v7201_v15  ;;  %v7211_v35 = vld [vmem:[#allocation62_spill] sm:$0xff]  ;;  %v7212_v15 = vld [vmem:[#allocation63_spill] sm:$0xff] }
 0x508   :  { %4381 = vmatprep.subr.bf16.mxu0 %v7202_v34  ;;  %4445 = vmatprep.subr.bf16.mxu1 %v7203_v1  ;;  %v7213_v34 = vld [vmem:[#allocation64_spill] sm:$0xff]  ;;  %v7214_v1 = vld [vmem:[#allocation9_spill] sm:$0xff] }
 0x50b   :  { %4383 = vmatpush1.bf16.msra.mxu0 %v7204_v17  ;;  %4447 = vmatpush1.bf16.msra.mxu1 %v7205_v10  ;;  %v7215_v17 = vld [vmem:[#allocation10_spill] sm:$0xff] }
 0x50c   :  { %4385 = vmatprep.subr.bf16.mxu0 %v7206_v58  ;;  %4449 = vmatprep.subr.bf16.mxu1 %v7207_v40 }
 0x50f   :  { %4387 = vmatpush1.bf16.msra.mxu0 %v7208_v55  ;;  %4451 = vmatpush1.bf16.msra.mxu1 %v7209_v0 }
 0x510   :  { %4389 = vmatprep.subr.bf16.mxu0 %v7210_v32  ;;  %4453 = vmatprep.subr.bf16.mxu1 %v7211_v35  ;;  %v7217_v35 = vld [vmem:[#allocation70_spill] sm:$0xff] }
 0x513   :  { %4391 = vmatpush1.bf16.msra.mxu0 %v7212_v15  ;;  %4455 = vmatpush1.bf16.msra.mxu1 %v7213_v34 }
 0x514   :  { %4457 = vmatprep.subr.bf16.mxu0 %v7214_v1  ;;  %4489 = vmatprep.subr.bf16.mxu1 %v7215_v17 }
 0x589   :  { %v1814_v10 = vpop.f32.mrb[22].mxu0  ;;  %v1885_v58 = vpop.f32.mrb[22].mxu1 }
 0x58a   :  { %v1890_v40 = vadd.f32 %v1814_v10, %v7216_v7  ;;  %v1816_v23 = vpop.f32.mrb[23].mxu0  ;;  %v1887_v55 = vpop.f32.mrb[23].mxu1  ;;  %v1892_v34 = vadd.f32 %v1885_v58, %v7097_v47  ;;  %v7218_v58 = vld [vmem:[#allocation66_spill] sm:$0xff] }
 0x58b   :  { %v1891_v0 = vadd.f32 %v1816_v23, %v7095_v11  ;;  %v1893_v15 = vadd.f32 %v1887_v55, %v7217_v35 }
 0x58c   :  { %v3416_v43 = vmul.f32 -1.442695, %v1890_v40 }
 0x58d   :  { %v3417_v32 = vmul.f32 -1.442695, %v1891_v0  ;;  %v3418_v12 = vmul.f32 -1.442695, %v1893_v15 }
 0x58e   :  { %5239 = vpow2.f32 %v3416_v43 }
 0x58f   :  { %5241 = vpow2.f32 %v3417_v32 }
 0x590   :  { %5243 = vpow2.f32 %v3418_v12 }
 0x591   :  { %5245 = vtanh.f32 %v1892_v34 }
 0x598   :  { %v5240_v1 = vpop.eup %5239 }
 0x599   :  { %v5242_v63 = vpop.eup %5241  ;;  %v1900_v17 = vadd.f32 1.0, %v5240_v1 }
 0x59a   :  { %v1901_v44 = vadd.f32 1.0, %v5242_v63  ;;  %v5244_v10 = vpop.eup %5243 }
 0x59b   :  { %5247 = vrcp.f32 %v1900_v17  ;;  %v5246_v7 = vpop.eup %5245  ;;  %v1910_v43 = vadd.f32 1.0, %v5244_v10 }
 0x59c   :  { %5249 = vrcp.f32 %v1901_v44 }
 0x59d   :  { %5251 = vrcp.f32 %v1910_v43 }
 0x5a5   :  { %v5248_v23 = vpop.eup %5247 }
 0x5a6   :  { %v5250_v40 = vpop.eup %5249  ;;  %v1914_v0 = vmul.f32 %v5248_v23, %v5246_v7  ;;  %v7219_v7 = vld [vmem:[#allocation68_spill] sm:$0xff] }
 0x5a7   :  { %v1913_v32 = vmul.f32 %v5250_v40, %v6255_v9  ;;  %v5252_v9 = vpop.eup %5251 }
 0x5a9   :  { %v1984_v55 = vpop.f32.mrb[8].mxu0  ;;  %v2055_v15 = vpop.f32.mrb[8].mxu1  ;;  %v6369_v35 = vadd.f32 %v1914_v0, %v1913_v32 }
 0x5aa   :  { %v5064_v1 = vadd.f32 %v1984_v55, %v7218_v58  ;;  %v1986_v12 = vpop.f32.mrb[9].mxu0  ;;  %v2057_v34 = vpop.f32.mrb[9].mxu1  ;;  %v5080_v0 = vadd.f32 %v2055_v15, %v5900_v21 }
 0x5ab   :  { %v5065_v63 = vadd.f32 %v1986_v12, %v7038_v19  ;;  %5253 = vtanh.f32 %v6369_v35  ;;  %v5081_v10 = vadd.f32 %v2057_v34, %v7219_v7 }
 0x5ac   :  { %v3419_v44 = vmul.f32 -1.442695, %v5064_v1 }
 0x5ad   :  { %v3420_v17 = vmul.f32 -1.442695, %v5065_v63  ;;  %v3421_v40 = vmul.f32 -1.442695, %v5081_v10 }
 0x5ae   :  { %5255 = vpow2.f32 %v3419_v44 }
 0x5af   :  { %5257 = vpow2.f32 %v3420_v17 }
 0x5b0   :  { %5259 = vpow2.f32 %v3421_v40 }
 0x5b1   :  { %5261 = vtanh.f32 %v5080_v0  ;;  %v7223_v0 = vld [vmem:[#allocation14_spill] sm:$0xff] }
 0x5b5   :  { %v5254_v23 = vpop.eup %5253 }
 0x5b6   :  { %v1917_v43 = vmul.f32 %v5254_v23, %v5252_v9 }
 0x5b8   :  { %v5256_v32 = vpop.eup %5255  ;;  %2152 = vmatprep.mubr.f32.mxu0 %v1917_v43  ;;  %2223 = vmatprep.mubr.f32.mxu1 %v1917_v43  ;;  %v7224_v43 = vld [vmem:[#allocation15_spill] sm:$0xff] }
 0x5b9   :  { %v5258_v55 = vpop.eup %5257  ;;  %v2070_v58 = vadd.f32 1.0, %v5256_v32  ;;  %v7225_v32 = vld [vmem:[#allocation16_spill] sm:$0xff] }
 0x5ba   :  { %v2071_v12 = vadd.f32 1.0, %v5258_v55  ;;  %v5260_v1 = vpop.eup %5259  ;;  %v7226_v55 = vld [vmem:[#allocation17_spill] sm:$0xff] }
 0x5bb   :  { %5263 = vrcp.f32 %v2070_v58  ;;  %v5262_v63 = vpop.eup %5261  ;;  %v2080_v7 = vadd.f32 1.0, %v5260_v1  ;;  %v7221_v58 = vld [vmem:[#allocation12_spill] sm:$0xff]  ;;  %v7228_v1 = vld [vmem:[#allocation19_spill] sm:$0xff] }
 0x5bc   :  { %5265 = vrcp.f32 %v2071_v12  ;;  %v7227_v12 = vld [vmem:[#allocation18_spill] sm:$0xff] }
 0x5bd   :  { %5267 = vrcp.f32 %v2080_v7  ;;  %v7222_v7 = vld [vmem:[#allocation13_spill] sm:$0xff] }
 0x5c5   :  { %v5264_v44 = vpop.eup %5263 }
 0x5c6   :  { %v5266_v34 = vpop.eup %5265  ;;  %v2084_v17 = vmul.f32 %v5264_v44, %v5262_v63  ;;  %v7229_v63 = vld [vmem:[#allocation20_spill] sm:$0xff]  ;;  %v7230_v44 = vld [vmem:[#allocation21_spill] sm:$0xff] }
 0x5c7   :  { %v2083_v10 = vmul.f32 %v5266_v34, %v6263_v48  ;;  %v5268_v9 = vpop.eup %5267  ;;  %v7220_v48 = vld [vmem:[#allocation11_spill] sm:$0xff]  ;;  %v7231_v34 = vld [vmem:[#allocation22_spill] sm:$0xff] }
 0x5c9   :  { %v6377_v15 = vadd.f32 %v2084_v17, %v2083_v10  ;;  %v7232_v17 = vld [vmem:[#allocation23_spill] sm:$0xff]  ;;  %v7233_v10 = vld [vmem:[#allocation24_spill] sm:$0xff] }
 0x5cb   :  { %5269 = vtanh.f32 %v6377_v15 }
 0x5d5   :  { %v5270_v23 = vpop.eup %5269 }
 0x5d6   :  { %v2087_v40 = vmul.f32 %v5270_v23, %v5268_v9  ;;  %v7234_v9 = vld [vmem:[#allocation25_spill] sm:$0xff]  ;;  %v7235_v23 = vld [vmem:[#allocation26_spill] sm:$0xff] }
 0x5d8   :  { %2153 = vmatmul.mubr.f32.vlgmr.msra.gmra.mrb[24].mxu0 %v2087_v40  ;;  %2224 = vmatmul.mubr.f32.vlgmr.msra.gmra.mrb[24].mxu1 %v2087_v40 }
 0x5d9   :  { %4459 = vmatpush1.bf16.msra.mxu0 %v5533_v16  ;;  %4491 = vmatpush1.bf16.msra.mxu1 %v5542_v20 }
 0x5da   :  { %4461 = vmatprep.subr.bf16.mxu0 %v5545_v24  ;;  %4493 = vmatprep.subr.bf16.mxu1 %v5547_v25 }
 0x5db   :  { %2322 = vmatprep.mubr.f32.mxu0 %v6977_v59  ;;  %2393 = vmatprep.mubr.f32.mxu1 %v6977_v59 }
 0x5dd   :  { %4463 = vmatpush1.bf16.msra.mxu0 %v5551_v29  ;;  %4495 = vmatpush1.bf16.msra.mxu1 %v5558_v33 }
 0x5de   :  { %4465 = vmatprep.subr.bf16.mxu0 %v5562_v37  ;;  %4497 = vmatprep.subr.bf16.mxu1 %v5564_v38 }
 0x5e1   :  { %4467 = vmatpush1.bf16.msra.mxu0 %v5568_v42  ;;  %4499 = vmatpush1.bf16.msra.mxu1 %v5575_v46 }
 0x5e2   :  { %4469 = vmatprep.subr.bf16.mxu0 %v5579_v50  ;;  %4501 = vmatprep.subr.bf16.mxu1 %v5583_v54 }
 0x5e5   :  { %4471 = vmatpush1.bf16.msra.mxu0 %v5587_v57  ;;  %4503 = vmatpush1.bf16.msra.mxu1 %v5591_v61 }
 0x5e6   :  { %4473 = vmatprep.subr.bf16.mxu0 %v5598_v2  ;;  %4505 = vmatprep.subr.bf16.mxu1 %v5602_v5 }
 0x5e9   :  { %4475 = vmatpush1.bf16.msra.mxu0 %v5606_v8  ;;  %4507 = vmatpush1.bf16.msra.mxu1 %v5610_v13 }
 0x5ea   :  { %4477 = vmatprep.subr.bf16.mxu0 %v5617_v18  ;;  %4509 = vmatprep.subr.bf16.mxu1 %v5621_v22 }
 0x5ed   :  { %4479 = vmatpush1.bf16.msra.mxu0 %v5625_v27  ;;  %4511 = vmatpush1.bf16.msra.mxu1 %v5629_v31 }
 0x5ee   :  { %4481 = vmatprep.subr.bf16.mxu0 %v5636_v36  ;;  %4513 = vmatprep.subr.bf16.mxu1 %v5640_v41 }
 0x5f1   :  { %4483 = vmatpush1.bf16.msra.mxu0 %v5644_v45  ;;  %4515 = vmatpush1.bf16.msra.mxu1 %v5651_v51 }
 0x5f2   :  { %4485 = vmatprep.subr.bf16.mxu0 %v5655_v56  ;;  %4517 = vmatprep.subr.bf16.mxu1 %v5659_v62 }
 0x5f5   :  { %4487 = vmatpush1.bf16.msra.mxu0 %v5663_v3  ;;  %4519 = vmatpush1.bf16.msra.mxu1 %v5667_v4 }
 0x5f6   :  { %4521 = vmatprep.subr.bf16.mxu0 %v5669_v6  ;;  %4585 = vmatprep.subr.bf16.mxu1 %v5673_v14 }
 0x5f8   :  { %2323 = vmatmul.mubr.f32.vlgmr.msra.gmra.mrb[10].mxu0 %v2087_v40  ;;  %2394 = vmatmul.mubr.f32.vlgmr.msra.gmra.mrb[10].mxu1 %v2087_v40  ;;  %v7236_v40 = vld [vmem:[#allocation27_spill] sm:$0xff] }
 0x5f9   :  { %4523 = vmatpush1.bf16.msra.mxu0 %v5679_v26  ;;  %4587 = vmatpush1.bf16.msra.mxu1 %v5683_v28 }
 0x5fa   :  { %4525 = vmatprep.subr.bf16.mxu0 %v5685_v30  ;;  %4589 = vmatprep.subr.bf16.mxu1 %v5688_v39 }
 0x5fd   :  { %4527 = vmatpush1.bf16.msra.mxu0 %v5693_v49  ;;  %4591 = vmatpush1.bf16.msra.mxu1 %v5697_v52 }
 0x5fe   :  { %4529 = vmatprep.subr.bf16.mxu0 %v5699_v53  ;;  %4593 = vmatprep.subr.bf16.mxu1 %v5702_v60 }
 0x601   :  { %4531 = vmatpush1.bf16.msra.mxu0 %v7220_v48  ;;  %4595 = vmatpush1.bf16.msra.mxu1 %v7221_v58 }
 0x602   :  { %4533 = vmatprep.subr.bf16.mxu0 %v7222_v7  ;;  %4597 = vmatprep.subr.bf16.mxu1 %v7223_v0 }
 0x605   :  { %4535 = vmatpush1.bf16.msra.mxu0 %v7224_v43  ;;  %4599 = vmatpush1.bf16.msra.mxu1 %v7225_v32  ;;  %v7276_v32 = vld [vmem:[#allocation65_spill] sm:$0xff] }
 0x606   :  { %4537 = vmatprep.subr.bf16.mxu0 %v7226_v55  ;;  %4601 = vmatprep.subr.bf16.mxu1 %v7227_v12  ;;  %v7237_v55 = vld [vmem:[#allocation28_spill] sm:$0xff]  ;;  %v7238_v12 = vld [vmem:[#allocation29_spill] sm:$0xff] }
 0x609   :  { %4539 = vmatpush1.bf16.msra.mxu0 %v7228_v1  ;;  %4603 = vmatpush1.bf16.msra.mxu1 %v7229_v63  ;;  %v7239_v1 = vld [vmem:[#allocation30_spill] sm:$0xff]  ;;  %v7240_v63 = vld [vmem:[#allocation31_spill] sm:$0xff] }
 0x60a   :  { %4541 = vmatprep.subr.bf16.mxu0 %v7230_v44  ;;  %4605 = vmatprep.subr.bf16.mxu1 %v7231_v34  ;;  %v7241_v44 = vld [vmem:[#allocation32_spill] sm:$0xff]  ;;  %v7242_v34 = vld [vmem:[#allocation33_spill] sm:$0xff] }
 0x60d   :  { %4543 = vmatpush1.bf16.msra.mxu0 %v7232_v17  ;;  %4607 = vmatpush1.bf16.msra.mxu1 %v7233_v10  ;;  %v7243_v17 = vld [vmem:[#allocation34_spill] sm:$0xff]  ;;  %v7244_v10 = vld [vmem:[#allocation35_spill] sm:$0xff] }
 0x60e   :  { %4545 = vmatprep.subr.bf16.mxu0 %v7234_v9  ;;  %4609 = vmatprep.subr.bf16.mxu1 %v7235_v23  ;;  %v7245_v9 = vld [vmem:[#allocation36_spill] sm:$0xff]  ;;  %v7246_v23 = vld [vmem:[#allocation37_spill] sm:$0xff] }
 0x611   :  { %4547 = vmatpush1.bf16.msra.mxu0 %v7236_v40  ;;  %4611 = vmatpush1.bf16.msra.mxu1 %v7237_v55  ;;  %v7247_v40 = vld [vmem:[#allocation38_spill] sm:$0xff]  ;;  %v7248_v55 = vld [vmem:[#allocation39_spill] sm:$0xff] }
 0x612   :  { %4549 = vmatprep.subr.bf16.mxu0 %v7238_v12  ;;  %4613 = vmatprep.subr.bf16.mxu1 %v7239_v1  ;;  %v7249_v12 = vld [vmem:[#allocation40_spill] sm:$0xff]  ;;  %v7250_v1 = vld [vmem:[#allocation41_spill] sm:$0xff] }
 0x615   :  { %4551 = vmatpush1.bf16.msra.mxu0 %v7240_v63  ;;  %4615 = vmatpush1.bf16.msra.mxu1 %v7241_v44  ;;  %v7251_v63 = vld [vmem:[#allocation42_spill] sm:$0xff]  ;;  %v7252_v44 = vld [vmem:[#allocation43_spill] sm:$0xff] }
 0x616   :  { %4553 = vmatprep.subr.bf16.mxu0 %v7242_v34  ;;  %4617 = vmatprep.subr.bf16.mxu1 %v7243_v17  ;;  %v7253_v34 = vld [vmem:[#allocation44_spill] sm:$0xff]  ;;  %v7254_v17 = vld [vmem:[#allocation45_spill] sm:$0xff] }
 0x619   :  { %4555 = vmatpush1.bf16.msra.mxu0 %v7244_v10  ;;  %4619 = vmatpush1.bf16.msra.mxu1 %v7245_v9  ;;  %v7255_v10 = vld [vmem:[#allocation46_spill] sm:$0xff]  ;;  %v7256_v9 = vld [vmem:[#allocation47_spill] sm:$0xff] }
 0x61a   :  { %4557 = vmatprep.subr.bf16.mxu0 %v7246_v23  ;;  %4621 = vmatprep.subr.bf16.mxu1 %v7247_v40  ;;  %v7257_v23 = vld [vmem:[#allocation48_spill] sm:$0xff]  ;;  %v7258_v40 = vld [vmem:[#allocation49_spill] sm:$0xff] }
 0x61d   :  { %4559 = vmatpush1.bf16.msra.mxu0 %v7248_v55  ;;  %4623 = vmatpush1.bf16.msra.mxu1 %v7249_v12  ;;  %v7259_v55 = vld [vmem:[#allocation50_spill] sm:$0xff]  ;;  %v7260_v12 = vld [vmem:[#allocation51_spill] sm:$0xff] }
 0x61e   :  { %4561 = vmatprep.subr.bf16.mxu0 %v7250_v1  ;;  %4625 = vmatprep.subr.bf16.mxu1 %v7251_v63  ;;  %v7261_v1 = vld [vmem:[#allocation52_spill] sm:$0xff]  ;;  %v7262_v63 = vld [vmem:[#allocation53_spill] sm:$0xff] }
 0x621   :  { %4563 = vmatpush1.bf16.msra.mxu0 %v7252_v44  ;;  %4627 = vmatpush1.bf16.msra.mxu1 %v7253_v34  ;;  %v7263_v44 = vld [vmem:[#allocation54_spill] sm:$0xff]  ;;  %v7264_v34 = vld [vmem:[#allocation55_spill] sm:$0xff] }
 0x622   :  { %4565 = vmatprep.subr.bf16.mxu0 %v7254_v17  ;;  %4629 = vmatprep.subr.bf16.mxu1 %v7255_v10  ;;  %v7265_v17 = vld [vmem:[#allocation56_spill] sm:$0xff]  ;;  %v7266_v10 = vld [vmem:[#allocation57_spill] sm:$0xff] }
 0x625   :  { %4567 = vmatpush1.bf16.msra.mxu0 %v7256_v9  ;;  %4631 = vmatpush1.bf16.msra.mxu1 %v7257_v23  ;;  %v7267_v9 = vld [vmem:[#allocation58_spill] sm:$0xff]  ;;  %v7268_v23 = vld [vmem:[#allocation59_spill] sm:$0xff] }
 0x626   :  { %4569 = vmatprep.subr.bf16.mxu0 %v7258_v40  ;;  %4633 = vmatprep.subr.bf16.mxu1 %v7259_v55  ;;  %v7269_v40 = vld [vmem:[#allocation60_spill] sm:$0xff]  ;;  %v7270_v55 = vld [vmem:[#allocation61_spill] sm:$0xff] }
 0x629   :  { %4571 = vmatpush1.bf16.msra.mxu0 %v7260_v12  ;;  %4635 = vmatpush1.bf16.msra.mxu1 %v7261_v1  ;;  %v7271_v12 = vld [vmem:[#allocation62_spill] sm:$0xff]  ;;  %v7272_v1 = vld [vmem:[#allocation63_spill] sm:$0xff] }
 0x62a   :  { %4573 = vmatprep.subr.bf16.mxu0 %v7262_v63  ;;  %4637 = vmatprep.subr.bf16.mxu1 %v7263_v44  ;;  %v7273_v63 = vld [vmem:[#allocation64_spill] sm:$0xff]  ;;  %v7274_v44 = vld [vmem:[#allocation9_spill] sm:$0xff] }
 0x62d   :  { %4575 = vmatpush1.bf16.msra.mxu0 %v7264_v34  ;;  %4639 = vmatpush1.bf16.msra.mxu1 %v7265_v17  ;;  %v7275_v34 = vld [vmem:[#allocation10_spill] sm:$0xff] }
 0x62e   :  { %4577 = vmatprep.subr.bf16.mxu0 %v7266_v10  ;;  %4641 = vmatprep.subr.bf16.mxu1 %v7267_v9 }
 0x631   :  { %4579 = vmatpush1.bf16.msra.mxu0 %v7268_v23  ;;  %4643 = vmatpush1.bf16.msra.mxu1 %v7269_v40 }
 0x632   :  { %4581 = vmatprep.subr.bf16.mxu0 %v7270_v55  ;;  %4645 = vmatprep.subr.bf16.mxu1 %v7271_v12  ;;  %v7277_v12 = vld [vmem:[#allocation70_spill] sm:$0xff] }
 0x635   :  { %4583 = vmatpush1.bf16.msra.mxu0 %v7272_v1  ;;  %4647 = vmatpush1.bf16.msra.mxu1 %v7273_v63 }
 0x636   :  { %4649 = vmatprep.subr.bf16.mxu0 %v7274_v44  ;;  %4681 = vmatprep.subr.bf16.mxu1 %v7275_v34 }
 0x6ab   :  { %v2154_v17 = vpop.f32.mrb[24].mxu0  ;;  %v2225_v10 = vpop.f32.mrb[24].mxu1 }
 0x6ac   :  { %v2230_v9 = vadd.f32 %v2154_v17, %v7276_v32  ;;  %v2156_v43 = vpop.f32.mrb[25].mxu0  ;;  %v2227_v23 = vpop.f32.mrb[25].mxu1  ;;  %v2232_v63 = vadd.f32 %v2225_v10, %v7097_v47  ;;  %v7278_v10 = vld [vmem:[#allocation66_spill] sm:$0xff] }
 0x6ad   :  { %v2231_v40 = vadd.f32 %v2156_v43, %v7095_v11  ;;  %v2233_v1 = vadd.f32 %v2227_v23, %v7277_v12 }
 0x6ae   :  { %v3422_v0 = vmul.f32 -1.442695, %v2230_v9 }
 0x6af   :  { %v3423_v55 = vmul.f32 -1.442695, %v2231_v40  ;;  %v3424_v7 = vmul.f32 -1.442695, %v2233_v1 }
 0x6b0   :  { %5271 = vpow2.f32 %v3422_v0 }
 0x6b1   :  { %5273 = vpow2.f32 %v3423_v55 }
 0x6b2   :  { %5275 = vpow2.f32 %v3424_v7 }
 0x6b3   :  { %5277 = vtanh.f32 %v2232_v63 }
 0x6ba   :  { %v5272_v44 = vpop.eup %5271 }
 0x6bb   :  { %v5274_v58 = vpop.eup %5273  ;;  %v2240_v34 = vadd.f32 1.0, %v5272_v44 }
 0x6bc   :  { %v2241_v48 = vadd.f32 1.0, %v5274_v58  ;;  %v5276_v17 = vpop.eup %5275 }
 0x6bd   :  { %5279 = vrcp.f32 %v2240_v34  ;;  %v5278_v32 = vpop.eup %5277  ;;  %v2250_v0 = vadd.f32 1.0, %v5276_v17 }
 0x6be   :  { %5281 = vrcp.f32 %v2241_v48 }
 0x6bf   :  { %5283 = vrcp.f32 %v2250_v0 }
 0x6c7   :  { %v5280_v43 = vpop.eup %5279 }
 0x6c8   :  { %v5282_v9 = vpop.eup %5281  ;;  %v2254_v40 = vmul.f32 %v5280_v43, %v5278_v32  ;;  %v7279_v32 = vld [vmem:[#allocation68_spill] sm:$0xff] }
 0x6c9   :  { %v2253_v55 = vmul.f32 %v5282_v9, %v6369_v35  ;;  %v5284_v35 = vpop.eup %5283 }
 0x6cb   :  { %v2324_v23 = vpop.f32.mrb[10].mxu0  ;;  %v2395_v1 = vpop.f32.mrb[10].mxu1  ;;  %v6483_v12 = vadd.f32 %v2254_v40, %v2253_v55 }
 0x6cc   :  { %v5066_v44 = vadd.f32 %v2324_v23, %v7278_v10  ;;  %v2326_v7 = vpop.f32.mrb[11].mxu0  ;;  %v2397_v63 = vpop.f32.mrb[11].mxu1  ;;  %v5082_v40 = vadd.f32 %v2395_v1, %v5900_v21 }
 0x6cd   :  { %v5067_v58 = vadd.f32 %v2326_v7, %v7038_v19  ;;  %5285 = vtanh.f32 %v6483_v12  ;;  %v5083_v17 = vadd.f32 %v2397_v63, %v7279_v32 }
 0x6ce   :  { %v3425_v48 = vmul.f32 -1.442695, %v5066_v44 }
 0x6cf   :  { %v3426_v34 = vmul.f32 -1.442695, %v5067_v58  ;;  %v3427_v9 = vmul.f32 -1.442695, %v5083_v17 }
 0x6d0   :  { %5287 = vpow2.f32 %v3425_v48 }
 0x6d1   :  { %5289 = vpow2.f32 %v3426_v34 }
 0x6d2   :  { %5291 = vpow2.f32 %v3427_v9 }
 0x6d3   :  { %5293 = vtanh.f32 %v5082_v40  ;;  %v7283_v40 = vld [vmem:[#allocation14_spill] sm:$0xff] }
 0x6d7   :  { %v5286_v43 = vpop.eup %5285 }
 0x6d8   :  { %v2257_v0 = vmul.f32 %v5286_v43, %v5284_v35 }
 0x6da   :  { %v5288_v55 = vpop.eup %5287  ;;  %2492 = vmatprep.mubr.f32.mxu0 %v2257_v0  ;;  %2563 = vmatprep.mubr.f32.mxu1 %v2257_v0  ;;  %v7284_v0 = vld [vmem:[#allocation15_spill] sm:$0xff] }
 0x6db   :  { %v5290_v23 = vpop.eup %5289  ;;  %v2410_v10 = vadd.f32 1.0, %v5288_v55  ;;  %v7285_v55 = vld [vmem:[#allocation16_spill] sm:$0xff] }
 0x6dc   :  { %v2411_v7 = vadd.f32 1.0, %v5290_v23  ;;  %v5292_v44 = vpop.eup %5291  ;;  %v7286_v23 = vld [vmem:[#allocation17_spill] sm:$0xff] }
 0x6dd   :  { %5295 = vrcp.f32 %v2410_v10  ;;  %v5294_v58 = vpop.eup %5293  ;;  %v2420_v32 = vadd.f32 1.0, %v5292_v44  ;;  %v7281_v10 = vld [vmem:[#allocation12_spill] sm:$0xff]  ;;  %v7288_v44 = vld [vmem:[#allocation19_spill] sm:$0xff] }
 0x6de   :  { %5297 = vrcp.f32 %v2411_v7  ;;  %v7287_v7 = vld [vmem:[#allocation18_spill] sm:$0xff] }
 0x6df   :  { %5299 = vrcp.f32 %v2420_v32  ;;  %v7282_v32 = vld [vmem:[#allocation13_spill] sm:$0xff] }
 0x6e7   :  { %v5296_v48 = vpop.eup %5295 }
 0x6e8   :  { %v5298_v63 = vpop.eup %5297  ;;  %v2424_v34 = vmul.f32 %v5296_v48, %v5294_v58  ;;  %v7289_v58 = vld [vmem:[#allocation20_spill] sm:$0xff]  ;;  %v7290_v48 = vld [vmem:[#allocation21_spill] sm:$0xff] }
 0x6e9   :  { %v2423_v17 = vmul.f32 %v5298_v63, %v6377_v15  ;;  %v5300_v35 = vpop.eup %5299  ;;  %v7280_v15 = vld [vmem:[#allocation11_spill] sm:$0xff]  ;;  %v7291_v63 = vld [vmem:[#allocation22_spill] sm:$0xff] }
 0x6eb   :  { %v6491_v1 = vadd.f32 %v2424_v34, %v2423_v17  ;;  %v7292_v34 = vld [vmem:[#allocation23_spill] sm:$0xff]  ;;  %v7293_v17 = vld [vmem:[#allocation24_spill] sm:$0xff] }
 0x6ed   :  { %5301 = vtanh.f32 %v6491_v1 }
 0x6f7   :  { %v5302_v43 = vpop.eup %5301 }
 0x6f8   :  { %v2427_v9 = vmul.f32 %v5302_v43, %v5300_v35  ;;  %v7294_v35 = vld [vmem:[#allocation25_spill] sm:$0xff]  ;;  %v7295_v43 = vld [vmem:[#allocation26_spill] sm:$0xff] }
 0x6fa   :  { %2493 = vmatmul.mubr.f32.vlgmr.msra.gmra.mrb[26].mxu0 %v2427_v9  ;;  %2564 = vmatmul.mubr.f32.vlgmr.msra.gmra.mrb[26].mxu1 %v2427_v9 }
 0x6fb   :  { %4651 = vmatpush1.bf16.msra.mxu0 %v5533_v16  ;;  %4683 = vmatpush1.bf16.msra.mxu1 %v5542_v20 }
 0x6fc   :  { %4653 = vmatprep.subr.bf16.mxu0 %v5545_v24  ;;  %4685 = vmatprep.subr.bf16.mxu1 %v5547_v25 }
 0x6fd   :  { %2662 = vmatprep.mubr.f32.mxu0 %v6977_v59  ;;  %2733 = vmatprep.mubr.f32.mxu1 %v6977_v59 }
 0x6ff   :  { %4655 = vmatpush1.bf16.msra.mxu0 %v5551_v29  ;;  %4687 = vmatpush1.bf16.msra.mxu1 %v5558_v33 }
 0x700   :  { %4657 = vmatprep.subr.bf16.mxu0 %v5562_v37  ;;  %4689 = vmatprep.subr.bf16.mxu1 %v5564_v38 }
 0x703   :  { %4659 = vmatpush1.bf16.msra.mxu0 %v5568_v42  ;;  %4691 = vmatpush1.bf16.msra.mxu1 %v5575_v46 }
 0x704   :  { %4661 = vmatprep.subr.bf16.mxu0 %v5579_v50  ;;  %4693 = vmatprep.subr.bf16.mxu1 %v5583_v54 }
 0x707   :  { %4663 = vmatpush1.bf16.msra.mxu0 %v5587_v57  ;;  %4695 = vmatpush1.bf16.msra.mxu1 %v5591_v61 }
 0x708   :  { %4665 = vmatprep.subr.bf16.mxu0 %v5598_v2  ;;  %4697 = vmatprep.subr.bf16.mxu1 %v5602_v5 }
 0x70b   :  { %4667 = vmatpush1.bf16.msra.mxu0 %v5606_v8  ;;  %4699 = vmatpush1.bf16.msra.mxu1 %v5610_v13 }
 0x70c   :  { %4669 = vmatprep.subr.bf16.mxu0 %v5617_v18  ;;  %4701 = vmatprep.subr.bf16.mxu1 %v5621_v22 }
 0x70f   :  { %4671 = vmatpush1.bf16.msra.mxu0 %v5625_v27  ;;  %4703 = vmatpush1.bf16.msra.mxu1 %v5629_v31 }
 0x710   :  { %4673 = vmatprep.subr.bf16.mxu0 %v5636_v36  ;;  %4705 = vmatprep.subr.bf16.mxu1 %v5640_v41 }
 0x713   :  { %4675 = vmatpush1.bf16.msra.mxu0 %v5644_v45  ;;  %4707 = vmatpush1.bf16.msra.mxu1 %v5651_v51 }
 0x714   :  { %4677 = vmatprep.subr.bf16.mxu0 %v5655_v56  ;;  %4709 = vmatprep.subr.bf16.mxu1 %v5659_v62 }
 0x717   :  { %4679 = vmatpush1.bf16.msra.mxu0 %v5663_v3  ;;  %4711 = vmatpush1.bf16.msra.mxu1 %v5667_v4 }
 0x718   :  { %4713 = vmatprep.subr.bf16.mxu0 %v5669_v6  ;;  %4777 = vmatprep.subr.bf16.mxu1 %v5673_v14 }
 0x71a   :  { %2663 = vmatmul.mubr.f32.vlgmr.msra.gmra.mrb[12].mxu0 %v2427_v9  ;;  %2734 = vmatmul.mubr.f32.vlgmr.msra.gmra.mrb[12].mxu1 %v2427_v9  ;;  %v7296_v9 = vld [vmem:[#allocation27_spill] sm:$0xff] }
 0x71b   :  { %4715 = vmatpush1.bf16.msra.mxu0 %v5679_v26  ;;  %4779 = vmatpush1.bf16.msra.mxu1 %v5683_v28 }
 0x71c   :  { %4717 = vmatprep.subr.bf16.mxu0 %v5685_v30  ;;  %4781 = vmatprep.subr.bf16.mxu1 %v5688_v39 }
 0x71f   :  { %4719 = vmatpush1.bf16.msra.mxu0 %v5693_v49  ;;  %4783 = vmatpush1.bf16.msra.mxu1 %v5697_v52 }
 0x720   :  { %4721 = vmatprep.subr.bf16.mxu0 %v5699_v53  ;;  %4785 = vmatprep.subr.bf16.mxu1 %v5702_v60 }
 0x723   :  { %4723 = vmatpush1.bf16.msra.mxu0 %v7280_v15  ;;  %4787 = vmatpush1.bf16.msra.mxu1 %v7281_v10 }
 0x724   :  { %4725 = vmatprep.subr.bf16.mxu0 %v7282_v32  ;;  %4789 = vmatprep.subr.bf16.mxu1 %v7283_v40 }
 0x727   :  { %4727 = vmatpush1.bf16.msra.mxu0 %v7284_v0  ;;  %4791 = vmatpush1.bf16.msra.mxu1 %v7285_v55  ;;  %v7336_v55 = vld [vmem:[#allocation65_spill] sm:$0xff] }
 0x728   :  { %4729 = vmatprep.subr.bf16.mxu0 %v7286_v23  ;;  %4793 = vmatprep.subr.bf16.mxu1 %v7287_v7  ;;  %v7297_v23 = vld [vmem:[#allocation28_spill] sm:$0xff]  ;;  %v7298_v7 = vld [vmem:[#allocation29_spill] sm:$0xff] }
 0x72b   :  { %4731 = vmatpush1.bf16.msra.mxu0 %v7288_v44  ;;  %4795 = vmatpush1.bf16.msra.mxu1 %v7289_v58  ;;  %v7299_v44 = vld [vmem:[#allocation30_spill] sm:$0xff]  ;;  %v7300_v58 = vld [vmem:[#allocation31_spill] sm:$0xff] }
 0x72c   :  { %4733 = vmatprep.subr.bf16.mxu0 %v7290_v48  ;;  %4797 = vmatprep.subr.bf16.mxu1 %v7291_v63  ;;  %v7301_v48 = vld [vmem:[#allocation32_spill] sm:$0xff]  ;;  %v7302_v63 = vld [vmem:[#allocation33_spill] sm:$0xff] }
 0x72f   :  { %4735 = vmatpush1.bf16.msra.mxu0 %v7292_v34  ;;  %4799 = vmatpush1.bf16.msra.mxu1 %v7293_v17  ;;  %v7303_v34 = vld [vmem:[#allocation34_spill] sm:$0xff]  ;;  %v7304_v17 = vld [vmem:[#allocation35_spill] sm:$0xff] }
 0x730   :  { %4737 = vmatprep.subr.bf16.mxu0 %v7294_v35  ;;  %4801 = vmatprep.subr.bf16.mxu1 %v7295_v43  ;;  %v7305_v35 = vld [vmem:[#allocation36_spill] sm:$0xff]  ;;  %v7306_v43 = vld [vmem:[#allocation37_spill] sm:$0xff] }
 0x733   :  { %4739 = vmatpush1.bf16.msra.mxu0 %v7296_v9  ;;  %4803 = vmatpush1.bf16.msra.mxu1 %v7297_v23  ;;  %v7307_v9 = vld [vmem:[#allocation38_spill] sm:$0xff]  ;;  %v7308_v23 = vld [vmem:[#allocation39_spill] sm:$0xff] }
 0x734   :  { %4741 = vmatprep.subr.bf16.mxu0 %v7298_v7  ;;  %4805 = vmatprep.subr.bf16.mxu1 %v7299_v44  ;;  %v7309_v7 = vld [vmem:[#allocation40_spill] sm:$0xff]  ;;  %v7310_v44 = vld [vmem:[#allocation41_spill] sm:$0xff] }
 0x737   :  { %4743 = vmatpush1.bf16.msra.mxu0 %v7300_v58  ;;  %4807 = vmatpush1.bf16.msra.mxu1 %v7301_v48  ;;  %v7311_v58 = vld [vmem:[#allocation42_spill] sm:$0xff]  ;;  %v7312_v48 = vld [vmem:[#allocation43_spill] sm:$0xff] }
 0x738   :  { %4745 = vmatprep.subr.bf16.mxu0 %v7302_v63  ;;  %4809 = vmatprep.subr.bf16.mxu1 %v7303_v34  ;;  %v7313_v63 = vld [vmem:[#allocation44_spill] sm:$0xff]  ;;  %v7314_v34 = vld [vmem:[#allocation45_spill] sm:$0xff] }
 0x73b   :  { %4747 = vmatpush1.bf16.msra.mxu0 %v7304_v17  ;;  %4811 = vmatpush1.bf16.msra.mxu1 %v7305_v35  ;;  %v7315_v17 = vld [vmem:[#allocation46_spill] sm:$0xff]  ;;  %v7316_v35 = vld [vmem:[#allocation47_spill] sm:$0xff] }
 0x73c   :  { %4749 = vmatprep.subr.bf16.mxu0 %v7306_v43  ;;  %4813 = vmatprep.subr.bf16.mxu1 %v7307_v9  ;;  %v7317_v43 = vld [vmem:[#allocation48_spill] sm:$0xff]  ;;  %v7318_v9 = vld [vmem:[#allocation49_spill] sm:$0xff] }
 0x73f   :  { %4751 = vmatpush1.bf16.msra.mxu0 %v7308_v23  ;;  %4815 = vmatpush1.bf16.msra.mxu1 %v7309_v7  ;;  %v7319_v23 = vld [vmem:[#allocation50_spill] sm:$0xff]  ;;  %v7320_v7 = vld [vmem:[#allocation51_spill] sm:$0xff] }
 0x740   :  { %4753 = vmatprep.subr.bf16.mxu0 %v7310_v44  ;;  %4817 = vmatprep.subr.bf16.mxu1 %v7311_v58  ;;  %v7321_v44 = vld [vmem:[#allocation52_spill] sm:$0xff]  ;;  %v7322_v58 = vld [vmem:[#allocation53_spill] sm:$0xff] }
 0x743   :  { %4755 = vmatpush1.bf16.msra.mxu0 %v7312_v48  ;;  %4819 = vmatpush1.bf16.msra.mxu1 %v7313_v63  ;;  %v7323_v48 = vld [vmem:[#allocation54_spill] sm:$0xff]  ;;  %v7324_v63 = vld [vmem:[#allocation55_spill] sm:$0xff] }
 0x744   :  { %4757 = vmatprep.subr.bf16.mxu0 %v7314_v34  ;;  %4821 = vmatprep.subr.bf16.mxu1 %v7315_v17  ;;  %v7325_v34 = vld [vmem:[#allocation56_spill] sm:$0xff]  ;;  %v7326_v17 = vld [vmem:[#allocation57_spill] sm:$0xff] }
 0x747   :  { %4759 = vmatpush1.bf16.msra.mxu0 %v7316_v35  ;;  %4823 = vmatpush1.bf16.msra.mxu1 %v7317_v43  ;;  %v7327_v35 = vld [vmem:[#allocation58_spill] sm:$0xff]  ;;  %v7328_v43 = vld [vmem:[#allocation59_spill] sm:$0xff] }
 0x748   :  { %4761 = vmatprep.subr.bf16.mxu0 %v7318_v9  ;;  %4825 = vmatprep.subr.bf16.mxu1 %v7319_v23  ;;  %v7329_v9 = vld [vmem:[#allocation60_spill] sm:$0xff]  ;;  %v7330_v23 = vld [vmem:[#allocation61_spill] sm:$0xff] }
 0x74b   :  { %4763 = vmatpush1.bf16.msra.mxu0 %v7320_v7  ;;  %4827 = vmatpush1.bf16.msra.mxu1 %v7321_v44  ;;  %v7331_v7 = vld [vmem:[#allocation62_spill] sm:$0xff]  ;;  %v7332_v44 = vld [vmem:[#allocation63_spill] sm:$0xff] }
 0x74c   :  { %4765 = vmatprep.subr.bf16.mxu0 %v7322_v58  ;;  %4829 = vmatprep.subr.bf16.mxu1 %v7323_v48  ;;  %v7333_v58 = vld [vmem:[#allocation64_spill] sm:$0xff]  ;;  %v7334_v48 = vld [vmem:[#allocation9_spill] sm:$0xff] }
 0x74f   :  { %4767 = vmatpush1.bf16.msra.mxu0 %v7324_v63  ;;  %4831 = vmatpush1.bf16.msra.mxu1 %v7325_v34  ;;  %v7335_v63 = vld [vmem:[#allocation10_spill] sm:$0xff] }
 0x750   :  { %4769 = vmatprep.subr.bf16.mxu0 %v7326_v17  ;;  %4833 = vmatprep.subr.bf16.mxu1 %v7327_v35 }
 0x753   :  { %4771 = vmatpush1.bf16.msra.mxu0 %v7328_v43  ;;  %4835 = vmatpush1.bf16.msra.mxu1 %v7329_v9 }
 0x754   :  { %4773 = vmatprep.subr.bf16.mxu0 %v7330_v23  ;;  %4837 = vmatprep.subr.bf16.mxu1 %v7331_v7  ;;  %v7337_v7 = vld [vmem:[#allocation70_spill] sm:$0xff] }
 0x757   :  { %4775 = vmatpush1.bf16.msra.mxu0 %v7332_v44  ;;  %4839 = vmatpush1.bf16.msra.mxu1 %v7333_v58 }
 0x758   :  { %4841 = vmatprep.subr.bf16.mxu0 %v7334_v48  ;;  %4873 = vmatprep.subr.bf16.mxu1 %v7335_v63 }
 0x7cd   :  { %v2494_v34 = vpop.f32.mrb[26].mxu0  ;;  %v2565_v17 = vpop.f32.mrb[26].mxu1 }
 0x7ce   :  { %v2570_v35 = vadd.f32 %v2494_v34, %v7336_v55  ;;  %v2496_v0 = vpop.f32.mrb[27].mxu0  ;;  %v2567_v43 = vpop.f32.mrb[27].mxu1  ;;  %v2572_v58 = vadd.f32 %v2565_v17, %v7097_v47  ;;  %v7338_v17 = vld [vmem:[#allocation66_spill] sm:$0xff] }
 0x7cf   :  { %v2571_v9 = vadd.f32 %v2496_v0, %v7095_v11  ;;  %v2573_v44 = vadd.f32 %v2567_v43, %v7337_v7 }
 0x7d0   :  { %v3428_v40 = vmul.f32 -1.442695, %v2570_v35 }
 0x7d1   :  { %v3429_v23 = vmul.f32 -1.442695, %v2571_v9  ;;  %v3430_v32 = vmul.f32 -1.442695, %v2573_v44 }
 0x7d2   :  { %5303 = vpow2.f32 %v3428_v40 }
 0x7d3   :  { %5305 = vpow2.f32 %v3429_v23 }
 0x7d4   :  { %5307 = vpow2.f32 %v3430_v32 }
 0x7d5   :  { %5309 = vtanh.f32 %v2572_v58 }
 0x7dc   :  { %v5304_v48 = vpop.eup %5303 }
 0x7dd   :  { %v5306_v10 = vpop.eup %5305  ;;  %v2580_v63 = vadd.f32 1.0, %v5304_v48 }
 0x7de   :  { %v2581_v15 = vadd.f32 1.0, %v5306_v10  ;;  %v5308_v34 = vpop.eup %5307 }
 0x7df   :  { %5311 = vrcp.f32 %v2580_v63  ;;  %v5310_v55 = vpop.eup %5309  ;;  %v2590_v40 = vadd.f32 1.0, %v5308_v34 }
 0x7e0   :  { %5313 = vrcp.f32 %v2581_v15 }
 0x7e1   :  { %5315 = vrcp.f32 %v2590_v40 }
 0x7e9   :  { %v5312_v0 = vpop.eup %5311 }
 0x7ea   :  { %v5314_v35 = vpop.eup %5313  ;;  %v2594_v9 = vmul.f32 %v5312_v0, %v5310_v55  ;;  %v7339_v55 = vld [vmem:[#allocation68_spill] sm:$0xff] }
 0x7eb   :  { %v2593_v23 = vmul.f32 %v5314_v35, %v6483_v12  ;;  %v5316_v12 = vpop.eup %5315 }
 0x7ed   :  { %v2664_v43 = vpop.f32.mrb[12].mxu0  ;;  %v2735_v44 = vpop.f32.mrb[12].mxu1  ;;  %v6597_v7 = vadd.f32 %v2594_v9, %v2593_v23 }
 0x7ee   :  { %v5068_v48 = vadd.f32 %v2664_v43, %v7338_v17  ;;  %v2666_v32 = vpop.f32.mrb[13].mxu0  ;;  %v2737_v58 = vpop.f32.mrb[13].mxu1  ;;  %v5084_v9 = vadd.f32 %v2735_v44, %v5900_v21 }
 0x7ef   :  { %v5069_v10 = vadd.f32 %v2666_v32, %v7038_v19  ;;  %5317 = vtanh.f32 %v6597_v7  ;;  %v5085_v34 = vadd.f32 %v2737_v58, %v7339_v55 }
 0x7f0   :  { %v3431_v15 = vmul.f32 -1.442695, %v5068_v48 }
 0x7f1   :  { %v3432_v63 = vmul.f32 -1.442695, %v5069_v10  ;;  %v3433_v35 = vmul.f32 -1.442695, %v5085_v34 }
 0x7f2   :  { %5319 = vpow2.f32 %v3431_v15 }
 0x7f3   :  { %5321 = vpow2.f32 %v3432_v63 }
 0x7f4   :  { %5323 = vpow2.f32 %v3433_v35 }
 0x7f5   :  { %5325 = vtanh.f32 %v5084_v9  ;;  %v7383_v9 = vld [vmem:[#allocation54_spill] sm:$0xff] }
 0x7f9   :  { %v5318_v0 = vpop.eup %5317 }
 0x7fa   :  { %v2597_v40 = vmul.f32 %v5318_v0, %v5316_v12 }
 0x7fc   :  { %v5320_v23 = vpop.eup %5319  ;;  %2832 = vmatprep.mubr.f32.mxu0 %v2597_v40  ;;  %2903 = vmatprep.mubr.f32.mxu1 %v2597_v40  ;;  %v7384_v40 = vld [vmem:[#allocation55_spill] sm:$0xff] }
 0x7fd   :  { %v5322_v43 = vpop.eup %5321  ;;  %v2750_v17 = vadd.f32 1.0, %v5320_v23  ;;  %v7385_v23 = vld [vmem:[#allocation56_spill] sm:$0xff] }
 0x7fe   :  { %v2751_v32 = vadd.f32 1.0, %v5322_v43  ;;  %v5324_v48 = vpop.eup %5323  ;;  %v7386_v43 = vld [vmem:[#allocation57_spill] sm:$0xff] }
 0x7ff   :  { %5327 = vrcp.f32 %v2750_v17  ;;  %v5326_v10 = vpop.eup %5325  ;;  %v2760_v55 = vadd.f32 1.0, %v5324_v48  ;;  %v7381_v17 = vld [vmem:[#allocation52_spill] sm:$0xff]  ;;  %v7388_v48 = vld [vmem:[#allocation59_spill] sm:$0xff] }
 0x800   :  { %5329 = vrcp.f32 %v2751_v32  ;;  %v7387_v32 = vld [vmem:[#allocation58_spill] sm:$0xff] }
 0x801   :  { %5331 = vrcp.f32 %v2760_v55  ;;  %v7382_v55 = vld [vmem:[#allocation53_spill] sm:$0xff] }
 0x809   :  { %v5328_v15 = vpop.eup %5327 }
 0x80a   :  { %v5330_v58 = vpop.eup %5329  ;;  %v2764_v63 = vmul.f32 %v5328_v15, %v5326_v10  ;;  %v7389_v10 = vld [vmem:[#allocation60_spill] sm:$0xff]  ;;  %v7390_v15 = vld [vmem:[#allocation61_spill] sm:$0xff] }
 0x80b   :  { %v2763_v34 = vmul.f32 %v5330_v58, %v6491_v1  ;;  %v5332_v12 = vpop.eup %5331  ;;  %v7380_v1 = vld [vmem:[#allocation51_spill] sm:$0xff]  ;;  %v7391_v58 = vld [vmem:[#allocation62_spill] sm:$0xff] }
 0x80d   :  { %v6605_v44 = vadd.f32 %v2764_v63, %v2763_v34  ;;  %v7392_v63 = vld [vmem:[#allocation63_spill] sm:$0xff]  ;;  %v7393_v34 = vld [vmem:[#allocation64_spill] sm:$0xff] }
 0x80f   :  { %5333 = vtanh.f32 %v6605_v44 }
 0x819   :  { %v5334_v0 = vpop.eup %5333 }
 0x81a   :  { %v2767_v35 = vmul.f32 %v5334_v0, %v5332_v12 }
 0x81c   :  { %2833 = vmatmul.mubr.f32.vlgmr.msra.gmra.mrb[28].mxu0 %v2767_v35  ;;  %2904 = vmatmul.mubr.f32.vlgmr.msra.gmra.mrb[28].mxu1 %v2767_v35 }
 0x81d   :  { %4843 = vmatpush1.bf16.msra.mxu0 %v5533_v16  ;;  %4875 = vmatpush1.bf16.msra.mxu1 %v5542_v20  ;;  %v7340_v16 = vld [vmem:[#allocation11_spill] sm:$0xff]  ;;  %v7341_v20 = vld [vmem:[#allocation12_spill] sm:$0xff] }
 0x81e   :  { %4845 = vmatprep.subr.bf16.mxu0 %v5545_v24  ;;  %4877 = vmatprep.subr.bf16.mxu1 %v5547_v25  ;;  %v7342_v24 = vld [vmem:[#allocation13_spill] sm:$0xff]  ;;  %v7343_v25 = vld [vmem:[#allocation14_spill] sm:$0xff] }
 0x81f   :  { %3002 = vmatprep.mubr.f32.mxu0 %v6977_v59  ;;  %3073 = vmatprep.mubr.f32.mxu1 %v6977_v59 }
 0x821   :  { %4847 = vmatpush1.bf16.msra.mxu0 %v5551_v29  ;;  %4879 = vmatpush1.bf16.msra.mxu1 %v5558_v33  ;;  %v7344_v29 = vld [vmem:[#allocation15_spill] sm:$0xff]  ;;  %v7345_v33 = vld [vmem:[#allocation16_spill] sm:$0xff] }
 0x822   :  { %4849 = vmatprep.subr.bf16.mxu0 %v5562_v37  ;;  %4881 = vmatprep.subr.bf16.mxu1 %v5564_v38  ;;  %v7346_v37 = vld [vmem:[#allocation17_spill] sm:$0xff]  ;;  %v7347_v38 = vld [vmem:[#allocation18_spill] sm:$0xff] }
 0x825   :  { %4851 = vmatpush1.bf16.msra.mxu0 %v5568_v42  ;;  %4883 = vmatpush1.bf16.msra.mxu1 %v5575_v46  ;;  %v7348_v42 = vld [vmem:[#allocation19_spill] sm:$0xff]  ;;  %v7349_v46 = vld [vmem:[#allocation20_spill] sm:$0xff] }
 0x826   :  { %4853 = vmatprep.subr.bf16.mxu0 %v5579_v50  ;;  %4885 = vmatprep.subr.bf16.mxu1 %v5583_v54  ;;  %v7350_v50 = vld [vmem:[#allocation21_spill] sm:$0xff]  ;;  %v7351_v54 = vld [vmem:[#allocation22_spill] sm:$0xff] }
 0x829   :  { %4855 = vmatpush1.bf16.msra.mxu0 %v5587_v57  ;;  %4887 = vmatpush1.bf16.msra.mxu1 %v5591_v61  ;;  %v7352_v57 = vld [vmem:[#allocation23_spill] sm:$0xff]  ;;  %v7353_v61 = vld [vmem:[#allocation24_spill] sm:$0xff] }
 0x82a   :  { %4857 = vmatprep.subr.bf16.mxu0 %v5598_v2  ;;  %4889 = vmatprep.subr.bf16.mxu1 %v5602_v5  ;;  %v7354_v2 = vld [vmem:[#allocation25_spill] sm:$0xff]  ;;  %v7355_v5 = vld [vmem:[#allocation26_spill] sm:$0xff] }
 0x82d   :  { %4859 = vmatpush1.bf16.msra.mxu0 %v5606_v8  ;;  %4891 = vmatpush1.bf16.msra.mxu1 %v5610_v13  ;;  %v7356_v8 = vld [vmem:[#allocation27_spill] sm:$0xff]  ;;  %v7357_v13 = vld [vmem:[#allocation28_spill] sm:$0xff] }
 0x82e   :  { %4861 = vmatprep.subr.bf16.mxu0 %v5617_v18  ;;  %4893 = vmatprep.subr.bf16.mxu1 %v5621_v22  ;;  %v7358_v18 = vld [vmem:[#allocation29_spill] sm:$0xff]  ;;  %v7359_v22 = vld [vmem:[#allocation30_spill] sm:$0xff] }
 0x831   :  { %4863 = vmatpush1.bf16.msra.mxu0 %v5625_v27  ;;  %4895 = vmatpush1.bf16.msra.mxu1 %v5629_v31  ;;  %v7360_v27 = vld [vmem:[#allocation31_spill] sm:$0xff]  ;;  %v7361_v31 = vld [vmem:[#allocation32_spill] sm:$0xff] }
 0x832   :  { %4865 = vmatprep.subr.bf16.mxu0 %v5636_v36  ;;  %4897 = vmatprep.subr.bf16.mxu1 %v5640_v41  ;;  %v7362_v36 = vld [vmem:[#allocation33_spill] sm:$0xff]  ;;  %v7363_v41 = vld [vmem:[#allocation34_spill] sm:$0xff] }
 0x835   :  { %4867 = vmatpush1.bf16.msra.mxu0 %v5644_v45  ;;  %4899 = vmatpush1.bf16.msra.mxu1 %v5651_v51  ;;  %v7364_v45 = vld [vmem:[#allocation35_spill] sm:$0xff]  ;;  %v7365_v51 = vld [vmem:[#allocation36_spill] sm:$0xff] }
 0x836   :  { %4869 = vmatprep.subr.bf16.mxu0 %v5655_v56  ;;  %4901 = vmatprep.subr.bf16.mxu1 %v5659_v62  ;;  %v7366_v56 = vld [vmem:[#allocation37_spill] sm:$0xff]  ;;  %v7367_v62 = vld [vmem:[#allocation38_spill] sm:$0xff] }
 0x839   :  { %4871 = vmatpush1.bf16.msra.mxu0 %v5663_v3  ;;  %4903 = vmatpush1.bf16.msra.mxu1 %v5667_v4  ;;  %v7368_v3 = vld [vmem:[#allocation39_spill] sm:$0xff]  ;;  %v7369_v4 = vld [vmem:[#allocation40_spill] sm:$0xff] }
 0x83a   :  { %4905 = vmatprep.subr.bf16.mxu0 %v5669_v6  ;;  %4969 = vmatprep.subr.bf16.mxu1 %v5673_v14  ;;  %v7370_v6 = vld [vmem:[#allocation41_spill] sm:$0xff]  ;;  %v7371_v14 = vld [vmem:[#allocation42_spill] sm:$0xff] }
 0x83c   :  { %3003 = vmatmul.mubr.f32.vlgmr.msra.gmra.mrb[14].mxu0 %v2767_v35  ;;  %3074 = vmatmul.mubr.f32.vlgmr.msra.gmra.mrb[14].mxu1 %v2767_v35  ;;  %v7394_v35 = vld [vmem:[#allocation65_spill] sm:$0xff] }
 0x83d   :  { %4907 = vmatpush1.bf16.msra.mxu0 %v5679_v26  ;;  %4971 = vmatpush1.bf16.msra.mxu1 %v5683_v28  ;;  %v7372_v26 = vld [vmem:[#allocation43_spill] sm:$0xff]  ;;  %v7373_v28 = vld [vmem:[#allocation44_spill] sm:$0xff] }
 0x83e   :  { %4909 = vmatprep.subr.bf16.mxu0 %v5685_v30  ;;  %4973 = vmatprep.subr.bf16.mxu1 %v5688_v39  ;;  %v7374_v30 = vld [vmem:[#allocation45_spill] sm:$0xff]  ;;  %v7375_v39 = vld [vmem:[#allocation46_spill] sm:$0xff] }
 0x841   :  { %4911 = vmatpush1.bf16.msra.mxu0 %v5693_v49  ;;  %4975 = vmatpush1.bf16.msra.mxu1 %v5697_v52  ;;  %v7376_v49 = vld [vmem:[#allocation47_spill] sm:$0xff]  ;;  %v7377_v52 = vld [vmem:[#allocation48_spill] sm:$0xff] }
 0x842   :  { %4913 = vmatprep.subr.bf16.mxu0 %v5699_v53  ;;  %4977 = vmatprep.subr.bf16.mxu1 %v5702_v60  ;;  %v7378_v53 = vld [vmem:[#allocation49_spill] sm:$0xff]  ;;  %v7379_v60 = vld [vmem:[#allocation50_spill] sm:$0xff] }
 0x845   :  { %4915 = vmatpush1.bf16.msra.mxu0 %v7340_v16  ;;  %4979 = vmatpush1.bf16.msra.mxu1 %v7341_v20 }
 0x846   :  { %4917 = vmatprep.subr.bf16.mxu0 %v7342_v24  ;;  %4981 = vmatprep.subr.bf16.mxu1 %v7343_v25 }
 0x849   :  { %4919 = vmatpush1.bf16.msra.mxu0 %v7344_v29  ;;  %4983 = vmatpush1.bf16.msra.mxu1 %v7345_v33 }
 0x84a   :  { %4921 = vmatprep.subr.bf16.mxu0 %v7346_v37  ;;  %4985 = vmatprep.subr.bf16.mxu1 %v7347_v38  ;;  %v7395_v37 = vld [vmem:[#allocation70_spill] sm:$0xff] }
 0x84d   :  { %4923 = vmatpush1.bf16.msra.mxu0 %v7348_v42  ;;  %4987 = vmatpush1.bf16.msra.mxu1 %v7349_v46 }
 0x84e   :  { %4925 = vmatprep.subr.bf16.mxu0 %v7350_v50  ;;  %4989 = vmatprep.subr.bf16.mxu1 %v7351_v54 }
 0x851   :  { %4927 = vmatpush1.bf16.msra.mxu0 %v7352_v57  ;;  %4991 = vmatpush1.bf16.msra.mxu1 %v7353_v61 }
 0x852   :  { %4929 = vmatprep.subr.bf16.mxu0 %v7354_v2  ;;  %4993 = vmatprep.subr.bf16.mxu1 %v7355_v5 }
 0x855   :  { %4931 = vmatpush1.bf16.msra.mxu0 %v7356_v8  ;;  %4995 = vmatpush1.bf16.msra.mxu1 %v7357_v13 }
 0x856   :  { %4933 = vmatprep.subr.bf16.mxu0 %v7358_v18  ;;  %4997 = vmatprep.subr.bf16.mxu1 %v7359_v22 }
 0x859   :  { %4935 = vmatpush1.bf16.msra.mxu0 %v7360_v27  ;;  %4999 = vmatpush1.bf16.msra.mxu1 %v7361_v31 }
 0x85a   :  { %4937 = vmatprep.subr.bf16.mxu0 %v7362_v36  ;;  %5001 = vmatprep.subr.bf16.mxu1 %v7363_v41 }
 0x85d   :  { %4939 = vmatpush1.bf16.msra.mxu0 %v7364_v45  ;;  %5003 = vmatpush1.bf16.msra.mxu1 %v7365_v51  ;;  %v7396_v45 = vld [vmem:[#allocation66_spill] sm:$0xff] }
 0x85e   :  { %4941 = vmatprep.subr.bf16.mxu0 %v7366_v56  ;;  %5005 = vmatprep.subr.bf16.mxu1 %v7367_v62 }
 0x861   :  { %4943 = vmatpush1.bf16.msra.mxu0 %v7368_v3  ;;  %5007 = vmatpush1.bf16.msra.mxu1 %v7369_v4 }
 0x862   :  { %4945 = vmatprep.subr.bf16.mxu0 %v7370_v6  ;;  %5009 = vmatprep.subr.bf16.mxu1 %v7371_v14  ;;  %v7397_v14 = vld [vmem:[#allocation68_spill] sm:$0xff] }
 0x865   :  { %4947 = vmatpush1.bf16.msra.mxu0 %v7372_v26  ;;  %5011 = vmatpush1.bf16.msra.mxu1 %v7373_v28 }
 0x866   :  { %4949 = vmatprep.subr.bf16.mxu0 %v7374_v30  ;;  %5013 = vmatprep.subr.bf16.mxu1 %v7375_v39 }
 0x869   :  { %4951 = vmatpush1.bf16.msra.mxu0 %v7376_v49  ;;  %5015 = vmatpush1.bf16.msra.mxu1 %v7377_v52 }
 0x86a   :  { %4953 = vmatprep.subr.bf16.mxu0 %v7378_v53  ;;  %5017 = vmatprep.subr.bf16.mxu1 %v7379_v60 }
 0x86d   :  { %4955 = vmatpush1.bf16.msra.mxu0 %v7380_v1  ;;  %5019 = vmatpush1.bf16.msra.mxu1 %v7381_v17 }
 0x86e   :  { %4957 = vmatprep.subr.bf16.mxu0 %v7382_v55  ;;  %5021 = vmatprep.subr.bf16.mxu1 %v7383_v9 }
 0x871   :  { %4959 = vmatpush1.bf16.msra.mxu0 %v7384_v40  ;;  %5023 = vmatpush1.bf16.msra.mxu1 %v7385_v23 }
 0x872   :  { %4961 = vmatprep.subr.bf16.mxu0 %v7386_v43  ;;  %5025 = vmatprep.subr.bf16.mxu1 %v7387_v32 }
 0x875   :  { %4963 = vmatpush1.bf16.msra.mxu0 %v7388_v48  ;;  %5027 = vmatpush1.bf16.msra.mxu1 %v7389_v10 }
 0x876   :  { %4965 = vmatprep.subr.bf16.mxu0 %v7390_v15  ;;  %5029 = vmatprep.subr.bf16.mxu1 %v7391_v58  ;;  %v3278_v15 = vld [vmem:[%s6780_s6] sm:$0xff]  ;;  %v3279_v58 = vld [vmem:[%s6780_s6 + $0x8] sm:$0xff] }
 0x879   :  { %4967 = vmatpush1.bf16.msra.mxu0 %v7392_v63  ;;  %5031 = vmatpush1.bf16.msra.mxu1 %v7393_v34  ;;  %v5033_v63 = vpack.c.bf16 %v3279_v58, %v3278_v15  ;;  %v5436_v34 = vmov 0.0|0.0  }
 0x87a   :  { %5032 = vmatprep.subr.bf16.mxu0 %v5436_v34 }
 0x8ef   :  { %v2834_v12 = vpop.f32.mrb[28].mxu0  ;;  %v2905_v0 = vpop.f32.mrb[28].mxu1 }
 0x8f0   :  { %v2910_v16 = vadd.f32 %v2834_v12, %v7394_v35  ;;  %v2836_v20 = vpop.f32.mrb[29].mxu0  ;;  %v2907_v24 = vpop.f32.mrb[29].mxu1  ;;  %v2912_v46 = vadd.f32 %v2905_v0, %v7097_v47  ;;  %v3281_v12 = vld [vmem:[%s6780_s6 + $0x18] sm:$0xff] }
 0x8f1   :  { %v2911_v25 = vadd.f32 %v2836_v20, %v7095_v11  ;;  %v2913_v38 = vadd.f32 %v2907_v24, %v7395_v37  ;;  %v3283_v20 = vld [vmem:[%s6780_s6 + $0x28] sm:$0xff] }
 0x8f2   :  { %v3434_v29 = vmul.f32 -1.442695, %v2910_v16  ;;  %v3282_v16 = vld [vmem:[%s6780_s6 + $0x20] sm:$0xff] }
 0x8f3   :  { %v3435_v33 = vmul.f32 -1.442695, %v2911_v25  ;;  %v3436_v42 = vmul.f32 -1.442695, %v2913_v38  ;;  %v5039_v24 = vpack.c.bf16 %v3283_v20, %v3282_v16  ;;  %v3284_v25 = vld [vmem:[%s6780_s6 + $0x30] sm:$0xff]  ;;  %v3286_v38 = vld [vmem:[%s6780_s6 + $0x40] sm:$0xff] }
 0x8f4   :  { %5335 = vpow2.f32 %v3434_v29  ;;  %v3285_v29 = vld [vmem:[%s6780_s6 + $0x38] sm:$0xff] }
 0x8f5   :  { %5337 = vpow2.f32 %v3435_v33  ;;  %v5042_v33 = vpack.c.bf16 %v3285_v29, %v3284_v25 }
 0x8f6   :  { %5339 = vpow2.f32 %v3436_v42  ;;  %v3287_v42 = vld [vmem:[%s6780_s6 + $0x48] sm:$0xff] }
 0x8f7   :  { %5341 = vtanh.f32 %v2912_v46  ;;  %v5045_v46 = vpack.c.bf16 %v3287_v42, %v3286_v38 }
 0x8fe   :  { %v5336_v50 = vpop.eup %5335 }
 0x8ff   :  { %v5338_v54 = vpop.eup %5337  ;;  %v2920_v57 = vadd.f32 1.0, %v5336_v50  ;;  %v3288_v50 = vld [vmem:[%s6780_s6 + $0x50] sm:$0xff] }
 0x900   :  { %v2921_v61 = vadd.f32 1.0, %v5338_v54  ;;  %v5340_v2 = vpop.eup %5339  ;;  %v3289_v54 = vld [vmem:[%s6780_s6 + $0x58] sm:$0xff] }
 0x901   :  { %5343 = vrcp.f32 %v2920_v57  ;;  %v5342_v5 = vpop.eup %5341  ;;  %v2930_v22 = vadd.f32 1.0, %v5340_v2  ;;  %v3290_v57 = vld [vmem:[%s6780_s6 + $0x60] sm:$0xff]  ;;  %v3291_v2 = vld [vmem:[%s6780_s6 + $0x68] sm:$0xff] }
 0x902   :  { %5345 = vrcp.f32 %v2921_v61  ;;  %v5048_v61 = vpack.c.bf16 %v3289_v54, %v3288_v50 }
 0x903   :  { %5347 = vrcp.f32 %v2930_v22 }
 0x90b   :  { %v5344_v8 = vpop.eup %5343 }
 0x90c   :  { %v5346_v13 = vpop.eup %5345  ;;  %v2934_v18 = vmul.f32 %v5344_v8, %v5342_v5  ;;  %v5051_v5 = vpack.c.bf16 %v3291_v2, %v3290_v57  ;;  %v3292_v8 = vld [vmem:[%s6780_s6 + $0x70] sm:$0xff] }
 0x90d   :  { %v2933_v27 = vmul.f32 %v5346_v13, %v6597_v7  ;;  %v5348_v7 = vpop.eup %5347  ;;  %v3293_v13 = vld [vmem:[%s6780_s6 + $0x78] sm:$0xff] }
 0x90f   :  { %v3004_v31 = vpop.f32.mrb[14].mxu0  ;;  %v3075_v36 = vpop.f32.mrb[14].mxu1  ;;  %v6709_v41 = vadd.f32 %v2934_v18, %v2933_v27  ;;  %v5054_v18 = vpack.c.bf16 %v3293_v13, %v3292_v8 }
 0x910   :  { %v5070_v51 = vadd.f32 %v3004_v31, %v7396_v45  ;;  %v3006_v56 = vpop.f32.mrb[15].mxu0  ;;  %v3077_v62 = vpop.f32.mrb[15].mxu1  ;;  %v5086_v39 = vadd.f32 %v3075_v36, %v5900_v21 }
 0x911   :  { %v5071_v3 = vadd.f32 %v3006_v56, %v7038_v19  ;;  %5349 = vtanh.f32 %v6709_v41  ;;  %v5087_v26 = vadd.f32 %v3077_v62, %v7397_v14 }
 0x912   :  { %v3437_v4 = vmul.f32 -1.442695, %v5070_v51 }
 0x913   :  { %v3438_v6 = vmul.f32 -1.442695, %v5071_v3  ;;  %v3439_v30 = vmul.f32 -1.442695, %v5087_v26 }
 0x914   :  { %5351 = vpow2.f32 %v3437_v4 }
 0x915   :  { %5353 = vpow2.f32 %v3438_v6 }
 0x916   :  { %5355 = vpow2.f32 %v3439_v30 }
 0x917   :  { %5357 = vtanh.f32 %v5086_v39 }
 0x91b   :  { %v5350_v28 = vpop.eup %5349 }
 0x91c   :  { %v2937_v49 = vmul.f32 %v5350_v28, %v5348_v7 }
 0x91e   :  { %v5352_v52 = vpop.eup %5351  ;;  %3172 = vmatprep.mubr.f32.mxu0 %v2937_v49  ;;  %3243 = vmatprep.mubr.f32.mxu1 %v2937_v49 }
 0x91f   :  { %v5354_v53 = vpop.eup %5353  ;;  %v3090_v60 = vadd.f32 1.0, %v5352_v52 }
 0x920   :  { %v3091_v19 = vadd.f32 1.0, %v5354_v53  ;;  %v5356_v1 = vpop.eup %5355 }
 0x921   :  { %5359 = vrcp.f32 %v3090_v60  ;;  %v5358_v17 = vpop.eup %5357  ;;  %v3100_v23 = vadd.f32 1.0, %v5356_v1 }
 0x922   :  { %5361 = vrcp.f32 %v3091_v19  ;;  %v3443_v19 = vld [vmem:[#allocation2] ss:$0 sm:$0xff] }
 0x923   :  { %5363 = vrcp.f32 %v3100_v23 }
 0x92b   :  { %v5360_v55 = vpop.eup %5359 }
 0x92c   :  { %v5362_v9 = vpop.eup %5361  ;;  %v3104_v40 = vmul.f32 %v5360_v55, %v5358_v17 }
 0x92d   :  { %v3103_v43 = vmul.f32 %v5362_v9, %v6605_v44  ;;  %v5364_v32 = vpop.eup %5363  ;;  %v3280_v44 = vld [vmem:[%s6780_s6 + $0x10] sm:$0xff] }
 0x92e   :  { %v5036_v0 = vpack.c.bf16 %v3281_v12, %v3280_v44 }
 0x92f   :  { %v3105_v21 = vadd.f32 %v3104_v40, %v3103_v43 }
 0x931   :  { %5365 = vtanh.f32 %v3105_v21 }
 0x93b   :  { %v5366_v48 = vpop.eup %5365 }
 0x93c   :  { %v3107_v10 = vmul.f32 %v5366_v48, %v5364_v32 }
 0x93e   :  { %3173 = vmatmul.mubr.f32.vlgmr.msra.gmra.mrb[30].mxu0 %v3107_v10  ;;  %3244 = vmatmul.mubr.f32.vlgmr.msra.gmra.mrb[30].mxu1 %v3107_v10 }
 0x93f   :  { %5034 = vmatpush3.bf16.msra.mxu0 %v5033_v63  ;;  %3493 = vmatprep.mubr.msk.f32.mxu0 %vm5437_vm1, %v6977_v59 }
 0x940   :  { %5035 = vmatprep.subr.bf16.mxu0 %v5436_v34 }
 0x943   :  { %5037 = vmatpush3.bf16.msra.mxu0 %v5036_v0 }
 0x944   :  { %5038 = vmatprep.subr.bf16.mxu0 %v5436_v34 }
 0x947   :  { %5040 = vmatpush3.bf16.msra.mxu0 %v5039_v24 }
 0x948   :  { %5041 = vmatprep.subr.bf16.mxu0 %v5436_v34 }
 0x94b   :  { %5043 = vmatpush3.bf16.msra.mxu0 %v5042_v33 }
 0x94c   :  { %5044 = vmatprep.subr.bf16.mxu0 %v5436_v34 }
 0x94f   :  { %5046 = vmatpush3.bf16.msra.mxu0 %v5045_v46 }
 0x950   :  { %5047 = vmatprep.subr.bf16.mxu0 %v5436_v34 }
 0x953   :  { %5049 = vmatpush3.bf16.msra.mxu0 %v5048_v61 }
 0x954   :  { %5050 = vmatprep.subr.bf16.mxu0 %v5436_v34 }
 0x957   :  { %5052 = vmatpush3.bf16.msra.mxu0 %v5051_v5 }
 0x958   :  { %5053 = vmatprep.subr.bf16.mxu0 %v5436_v34 }
 0x95b   :  { %5055 = vmatpush3.bf16.msra.mxu0 %v5054_v18 }
 0xa11   :  { %v3174_v22 = vpop.f32.mrb[30].mxu0  ;;  %v3245_v27 = vpop.f32.mrb[30].mxu1 }
 0xa12   :  { %v3250_v31 = vadd.f32 %v3174_v22, %v7394_v35  ;;  %v3176_v59 = vpop.f32.mrb[31].mxu0  ;;  %v3247_v36 = vpop.f32.mrb[31].mxu1  ;;  %v3252_v4 = vadd.f32 %v3245_v27, %v7097_v47 }
 0xa13   :  { %v3251_v45 = vadd.f32 %v3176_v59, %v7095_v11  ;;  %v3253_v62 = vadd.f32 %v3247_v36, %v7395_v37 }
 0xa14   :  { %v3440_v51 = vmul.f32 -1.442695, %v3250_v31 }
 0xa15   :  { %v3441_v56 = vmul.f32 -1.442695, %v3251_v45  ;;  %v3442_v3 = vmul.f32 -1.442695, %v3253_v62 }
 0xa16   :  { %5367 = vpow2.f32 %v3440_v51 }
 0xa17   :  { %5369 = vpow2.f32 %v3441_v56 }
 0xa18   :  { %5371 = vpow2.f32 %v3442_v3 }
 0xa19   :  { %5373 = vtanh.f32 %v3252_v4 }
 0xa20   :  { %v5368_v6 = vpop.eup %5367 }
 0xa21   :  { %v5370_v14 = vpop.eup %5369  ;;  %v3260_v26 = vadd.f32 1.0, %v5368_v6 }
 0xa22   :  { %v3261_v7 = vadd.f32 1.0, %v5370_v14  ;;  %v5372_v35 = vpop.eup %5371 }
 0xa23   :  { %5375 = vrcp.f32 %v3260_v26  ;;  %v5374_v28 = vpop.eup %5373  ;;  %v3270_v49 = vadd.f32 1.0, %v5372_v35 }
 0xa24   :  { %5377 = vrcp.f32 %v3261_v7 }
 0xa25   :  { %5379 = vrcp.f32 %v3270_v49 }
 0xa2d   :  { %v5376_v11 = vpop.eup %5375 }
 0xa2e   :  { %v5378_v30 = vpop.eup %5377  ;;  %v3274_v39 = vmul.f32 %v5376_v11, %v5374_v28 }
 0xa2f   :  { %v3273_v52 = vmul.f32 %v5378_v30, %v6709_v41  ;;  %v5380_v47 = vpop.eup %5379 }
 0xa31   :  { %v3275_v37 = vadd.f32 %v3274_v39, %v3273_v52 }
 0xa33   :  { %5381 = vtanh.f32 %v3275_v37 }
 0xa3d   :  { %v5382_v53 = vpop.eup %5381 }
 0xa3e   :  { %v3277_v60 = vmul.f32 %v5382_v53, %v5380_v47 }
 0xa40   :  { %3494 = vmatmul.mubr.f32.vlgmr.msra.gmra.mrb[32].mxu0 %v3277_v60 }
 0xb13   :  { %v3367_v1 = vpop.f32.mrb[32].mxu0 }
 0xb14   :  { %v3368_v17 = vadd.f32 %v3443_v19, %v3367_v1  ;;  %v3495_v55 = vpop.f32.mrb[33].mxu0 }
 0xb16   :  { %3372 = vst.msk [vmem:[%s6782_s8] sm:$0xff] %vm3371_vm2, %v3368_v17 }
 0xb17   :  { %3377 = vsyncpa [#allocation4], 1 }
 0xb18   :  { %3378 = vsyncpa [#allocation6], 1 }

</bundles_post_ra>
